<compile_context>
chip_gen: v5e
topology: v5e:2x2
jax: 0.10.0
libtpu: 0.0.40
codegen_flags: <defaults>
</compile_context>

<pallas_src>
import math
import functools

import jax
import jax.numpy as jnp
from jax.experimental import pallas as pl
from jax.experimental.pallas import tpu as pltpu


# --------------------------------------------------------------------------- in-kernel helpers

def _ln(x, g, b, eps):
    mu = jnp.mean(x, axis=-1, keepdims=True)
    var = jnp.mean((x - mu) * (x - mu), axis=-1, keepdims=True)
    return (x - mu) * jax.lax.rsqrt(var + eps) * g + b


def _qk(a, b):
    """(M, d) x (N, d) -> (M, N), contracting the last dims (no explicit transpose)."""
    return jax.lax.dot_general(a, b, (((1,), (1,)), ((), ())),
                               preferred_element_type=jnp.float32)


def _softmax_av(s, v):
    """Row softmax of s (f32) followed by @ v (bf16 MXU), f32 accumulate."""
    m = jnp.max(s, axis=-1, keepdims=True)
    p = jnp.exp(s - m)
    denom = jnp.sum(p, axis=-1, keepdims=True)
    o = jnp.dot(p.astype(v.dtype), v, preferred_element_type=jnp.float32)
    return o * pl.reciprocal(denom, approx=True)


# --------------------------------------------------------------------------- fused per-layer kernel

def _decoder_layer_kernel(*refs, H, hd, Nq, L_mem, eps, has_bias, with_qpos):
    D = H * hd
    it = iter(refs)
    bounds_ref = next(it)                                   # scalar-prefetch (SMEM)
    tgt_ref = next(it); qpos_ref = next(it); qse_ref = next(it)
    bias_ref = next(it) if has_bias else None
    mem_ref = next(it); pos_ref = next(it)
    n1g = next(it); n1b = next(it)
    sa_wc = next(it); sa_bc = next(it); sa_wp = next(it); sa_bp = next(it)
    sa_wo = next(it); sa_bo = next(it)
    n2g = next(it); n2b = next(it)
    ca_wq = next(it); ca_bq = next(it); ca_wkv = next(it); ca_bkv = next(it)
    ca_wkp = next(it); ca_bkp = next(it); ca_wqs = next(it); ca_bqs = next(it)
    if with_qpos:
        ca_wqp = next(it); ca_bqp = next(it)
    ca_wo = next(it); ca_bo = next(it)
    n3g = next(it); n3b = next(it)
    w1 = next(it); b1 = next(it); w2 = next(it); b2 = next(it)
    nfg = next(it); nfb = next(it)
    out_ref = next(it); normed_ref = next(it)
    attn_sc = next(it)                                      # VMEM (Nq, D) f32 scratch

    b = pl.program_id(0)
    x = tgt_ref[...]                                        # (Nq, D) f32 residual stream
    qpos = qpos_ref[...]                                    # (Nq, D) bf16
    qse = qse_ref[...]                                      # (Nq, D) bf16

    # ------------------------------------------------ self-attention
    t1 = _ln(x, n1g[...], n1b[...], eps)
    cproj = jnp.dot(t1.astype(jnp.bfloat16), sa_wc[...],
                    preferred_element_type=jnp.float32) + sa_bc[...]       # [qc|kc|v]
    pproj = jnp.dot(qpos, sa_wp[...],
                    preferred_element_type=jnp.float32) + sa_bp[...]       # [qp|kp]
    q = (cproj[:, 0 * D:1 * D] + pproj[:, 0 * D:1 * D]).astype(jnp.bfloat16)
    k = (cproj[:, 1 * D:2 * D] + pproj[:, 1 * D:2 * D]).astype(jnp.bfloat16)
    v = cproj[:, 2 * D:3 * D].astype(jnp.bfloat16)

    scale = 1.0 / math.sqrt(hd)
    sa_bias = bias_ref[...] if has_bias else None
    # TODO(synk): at prod hd>=64 batch all heads into one dot_general instead of this loop.
    for h in range(H):
        c0 = h * hd
        s = _qk(q[:, c0:c0 + hd], k[:, c0:c0 + hd]) * scale
        if sa_bias is not None:
            s = s + sa_bias
        attn_sc[:, c0:c0 + hd] = _softmax_av(s, v[:, c0:c0 + hd])
    y1 = x + jnp.dot(attn_sc[...].astype(jnp.bfloat16), sa_wo[...],
                     preferred_element_type=jnp.float32) + sa_bo[...]

    # ------------------------------------------------ cross-attention (block-diag over batch)
    t2 = _ln(y1, n2g[...], n2b[...], eps)
    mem = mem_ref[...]                                                     # (L_mem, D) bf16
    q2 = jnp.dot(t2.astype(jnp.bfloat16), ca_wq[...],
                 preferred_element_type=jnp.float32) + ca_bq[...]
    kv = jnp.dot(mem, ca_wkv[...],
                 preferred_element_type=jnp.float32) + ca_bkv[...]         # wide [k|v]
    k2 = kv[:, :D]
    v2 = kv[:, D:].astype(jnp.bfloat16)
    k_pos = jnp.dot(pos_ref[...], ca_wkp[...],
                    preferred_element_type=jnp.float32) + ca_bkp[...]
    qse_p = jnp.dot(qse, ca_wqs[...],
                    preferred_element_type=jnp.float32) + ca_bqs[...]
    if with_qpos:                                   # first layer only (keep_query_pos=False)
        q2 = q2 + jnp.dot(qpos, ca_wqp[...],
                          preferred_element_type=jnp.float32) + ca_bqp[...]
        k2 = k2 + k_pos

    # block-diagonal mask built in-kernel from scalar-prefetched segment bounds
    start = bounds_ref[b, 0]
    end = bounds_ref[b, 1]
    kidx = jax.lax.broadcasted_iota(jnp.int32, (Nq, L_mem), 1)
    mask_bias = jnp.where((kidx >= start) & (kidx < end),
                          jnp.float32(0.0), jnp.float32(-1e30))

    scale2 = 1.0 / math.sqrt(2 * hd)
    q2b = q2.astype(jnp.bfloat16); k2b = k2.astype(jnp.bfloat16)
    qsb = qse_p.astype(jnp.bfloat16); kpb = k_pos.astype(jnp.bfloat16)
    for h in range(H):
        c0 = h * hd
        # [content;sine] x [content;pos] contraction, split into two dots (no concats)
        s = _qk(q2b[:, c0:c0 + hd], k2b[:, c0:c0 + hd]) \
            + _qk(qsb[:, c0:c0 + hd], kpb[:, c0:c0 + hd])
        s = s * scale2 + mask_bias
        attn_sc[:, c0:c0 + hd] = _softmax_av(s, v2[:, c0:c0 + hd])
    y2 = y1 + jnp.dot(attn_sc[...].astype(jnp.bfloat16), ca_wo[...],
                      preferred_element_type=jnp.float32) + ca_bo[...]

    # ------------------------------------------------ FFN + final decoder norm
    t3 = _ln(y2, n3g[...], n3b[...], eps)
    hidden = jnp.maximum(jnp.dot(t3.astype(jnp.bfloat16), w1[...],
                                 preferred_element_type=jnp.float32) + b1[...], 0.0)
    y3 = y2 + jnp.dot(hidden.astype(jnp.bfloat16), w2[...],
                      preferred_element_type=jnp.float32) + b2[...]
    out_ref[...] = y3.astype(out_ref.dtype)
    normed_ref[...] = _ln(y3, nfg[...], nfb[...], eps).astype(normed_ref.dtype)


def decoder_layer(output, query_pos_b, qse_b, sa_bias, memory_b, pos_b, mem_bounds, p,
                  norm_g, norm_b, *, B, Nq, H, is_first, eps=1e-5):
    L, D = output.shape
    hd = D // H
    L_mem = memory_b.shape[0]
    has_bias = sa_bias is not None

    token_spec = pl.BlockSpec((Nq, D), lambda b, bounds: (b, 0))

    def full_spec(arr):
        nd = arr.ndim
        return pl.BlockSpec(arr.shape, lambda b, bounds, nd=nd: (0,) * nd)

    inputs = [output, query_pos_b, qse_b]
    specs = [token_spec, token_spec, token_spec]
    if has_bias:
        inputs.append(sa_bias)
        specs.append(full_spec(sa_bias))
    shared = [memory_b, pos_b,
              p["norm1_g"], p["norm1_b"],
              p["sa_wc"], p["sa_bc"], p["sa_wp"], p["sa_bp"], p["sa_wo"], p["sa_bo"],
              p["norm2_g"], p["norm2_b"],
              p["ca_wq"], p["ca_bq"], p["ca_wkv"], p["ca_bkv"],
              p["ca_wkp"], p["ca_bkp"], p["ca_wqs"], p["ca_bqs"]]
    if is_first:
        shared += [p["ca_wqp"], p["ca_bqp"]]
    shared += [p["ca_wo"], p["ca_bo"],
               p["norm3_g"], p["norm3_b"],
               p["lin1_w"], p["lin1_b"], p["lin2_w"], p["lin2_b"],
               norm_g, norm_b]
    inputs += shared
    specs += [full_spec(a) for a in shared]

    kern = functools.partial(_decoder_layer_kernel, H=H, hd=hd, Nq=Nq, L_mem=L_mem,
                             eps=eps, has_bias=has_bias, with_qpos=is_first)
    out, normed = pl.pallas_call(
        kern,
        out_shape=(jax.ShapeDtypeStruct((L, D), jnp.float32),
                   jax.ShapeDtypeStruct((L, D), jnp.float32)),
        grid_spec=pltpu.PrefetchScalarGridSpec(
            num_scalar_prefetch=1,
            grid=(B,),
            in_specs=specs,
            out_specs=[token_spec, token_spec],
            scratch_shapes=[pltpu.VMEM((Nq, D), jnp.float32)]),
        compiler_params=pltpu.CompilerParams(
            dimension_semantics=("parallel",),
            vmem_limit_bytes=32 * 1024 * 1024),
    )(mem_bounds, *inputs)
    return out, normed


# --------------------------------------------------------------------------- plain-JAX glue

def mlp2(x, layer1, layer2):
    """Tiny 2-layer MLP (ReLU between layers) — left to XLA per review."""
    (w1, b1), (w2, b2) = layer1, layer2
    return jax.nn.relu(x @ w1 + b1) @ w2 + b2


def position_encoding_xy(x, y, d_model):
    # TODO(synk): position_encoding_xy is not in the reference source; reconstructed following
    # DAB-DETR's gen_sineembed_for_position (sin/cos interleave, cat([pos_y, pos_x])).
    scale = 2.0 * math.pi
    half = d_model // 2
    dim_t = jnp.arange(half, dtype=jnp.float32)
    dim_t = 10000.0 ** (2.0 * jnp.floor(dim_t / 2.0) / half)

    def enc(c):
        p = c[:, None] * scale / dim_t
        return jnp.stack([jnp.sin(p[:, 0::2]), jnp.cos(p[:, 1::2])], axis=2).reshape(c.shape[0], -1)

    return jnp.concatenate([enc(y), enc(x)], axis=1)


def mask2bias(mask):
    """2D bool mask (True = masked) -> additive f32 bias shared across batch & heads."""
    if mask is None:
        return None
    return jnp.where(mask, jnp.float32(-1e30), jnp.float32(0.0))


def memory_segment_bounds(memory_lens):
    """Per-batch [start, end) of its memory segment (replaces the dense block-diag bias)."""
    starts, s = [], 0
    for l in memory_lens:
        starts.append(s)
        s += l
    return jnp.array([[st, st + l] for st, l in zip(starts, memory_lens)], dtype=jnp.int32)


# --------------------------------------------------------------------------- decoder stack

def decoder_forward(params, memory, tgt, pos, refpoints_unsigmoid, self_attn_bias,
                    *, memory_lens, tgt_lens, d_model, nhead, num_layers, query_dim):
    B, Nq = len(tgt_lens), tgt_lens[0]
    half = d_model // 2
    output = tgt
    reference_points = jax.nn.sigmoid(refpoints_unsigmoid)            # (L_tgt, 4)
    mem_bounds = memory_segment_bounds(memory_lens)                   # (B, 2) int32, SMEM-prefetched
    memory_b = memory.astype(jnp.bfloat16)                            # halve DMA bytes per layer
    pos_b = pos.astype(jnp.bfloat16)
    intermediate = []

    for layer_id in range(num_layers):
        obj_center = reference_points[:, :query_dim]
        xy_embed = position_encoding_xy(obj_center[:, 0], obj_center[:, 1], d_model)
        wh_embed = position_encoding_xy(obj_center[:, 2], obj_center[:, 3], d_model)
        query_sine_embed = jnp.concatenate([xy_embed, wh_embed], axis=1)     # (L, 2d)
        query_pos = mlp2(query_sine_embed, *params["ref_point_head"])        # (L, d)

        if layer_id == 0:
            pos_transformation = 1.0
        else:
            pos_transformation = mlp2(output, *params["query_scale"])        # cond_elewise

        qse = query_sine_embed[:, :d_model] * pos_transformation

        # modulate_hw_attn=True
        refHW = jax.nn.sigmoid(mlp2(output, *params["ref_anchor_head"]))     # (L, 2)
        qse = jnp.concatenate([
            qse[:, :half] * (refHW[:, 1] / obj_center[:, 3])[:, None],
            qse[:, half:] * (refHW[:, 0] / obj_center[:, 2])[:, None],
        ], axis=1)

        p = params["layers"][layer_id]
        output, normed = decoder_layer(
            output, query_pos.astype(jnp.bfloat16), qse.astype(jnp.bfloat16),
            self_attn_bias, memory_b, pos_b, mem_bounds, p,
            params["norm_g"], params["norm_b"],
            B=B, Nq=Nq, H=nhead, is_first=(layer_id == 0))
        intermediate.append(normed.reshape(B, Nq, d_model))
        # bbox_embed is None in this module -> reference_points never updated

    hs = jnp.stack(intermediate)                     # (num_layers, B, Nq, d_model)
    references = reference_points[None]              # (1, L_tgt, query_dim)
    return hs, references


def transformer_decoder_forward(params, memory, tgt, refpoint_embed, pos_embed, self_attn_mask,
                                *, memory_lens, tgt_lens, d_model, nhead, num_layers, query_dim):
    self_attn_bias = mask2bias(self_attn_mask)       # 2D bias; batch/head broadcast inside kernel
    return decoder_forward(params, memory, tgt, pos_embed, refpoint_embed, self_attn_bias,
                           memory_lens=memory_lens, tgt_lens=tgt_lens,
                           d_model=d_model, nhead=nhead,
                           num_layers=num_layers, query_dim=query_dim)


# --------------------------------------------------------------------------- parameter init

def _xavier(key, din, dout):
    limit = math.sqrt(6.0 / (din + dout))
    return jax.random.uniform(key, (din, dout), jnp.float32, -limit, limit)


def _make_linear(key, din, dout, zero_bias=False):
    k1, k2 = jax.random.split(key)
    w = _xavier(k1, din, dout)
    if zero_bias:
        b = jnp.zeros((dout,), jnp.float32)
    else:
        bound = 1.0 / math.sqrt(din)
        b = jax.random.uniform(k2, (dout,), jnp.float32, -bound, bound)
    return (w, b)


def init_params(key, d_model, nhead, dff, num_layers, query_dim):
    keys = iter(jax.random.split(key, 256))
    nk = lambda: next(keys)
    bf = lambda w: w.astype(jnp.bfloat16)     # MXU weights pre-cast to bf16
    rb = lambda b: b.reshape(1, -1)           # biases pre-reshaped to (1, X), kept f32

    def make_layer():
        sa_qc = _make_linear(nk(), d_model, d_model)
        sa_qp = _make_linear(nk(), d_model, d_model)
        sa_kc = _make_linear(nk(), d_model, d_model)
        sa_kp = _make_linear(nk(), d_model, d_model)
        sa_v = _make_linear(nk(), d_model, d_model)
        sa_out = _make_linear(nk(), d_model, d_model, zero_bias=True)
        ca_qc = _make_linear(nk(), d_model, d_model)
        ca_qp = _make_linear(nk(), d_model, d_model)
        ca_kc = _make_linear(nk(), d_model, d_model)
        ca_kp = _make_linear(nk(), d_model, d_model)
        ca_v = _make_linear(nk(), d_model, d_model)
        ca_qs = _make_linear(nk(), d_model, d_model)
        ca_out = _make_linear(nk(), d_model, d_model, zero_bias=True)
        lin1 = _make_linear(nk(), d_model, dff)
        lin2 = _make_linear(nk(), dff, d_model)
        ones = lambda: jnp.ones((1, d_model), jnp.float32)
        zeros = lambda: jnp.zeros((1, d_model), jnp.float32)
        return {
            # self-attn: fused wide weights [q_content | k_content | v] and [q_pos | k_pos]
            "sa_wc": bf(jnp.concatenate([sa_qc[0], sa_kc[0], sa_v[0]], axis=1)),
            "sa_bc": rb(jnp.concatenate([sa_qc[1], sa_kc[1], sa_v[1]])),
            "sa_wp": bf(jnp.concatenate([sa_qp[0], sa_kp[0]], axis=1)),
            "sa_bp": rb(jnp.concatenate([sa_qp[1], sa_kp[1]])),
            "sa_wo": bf(sa_out[0]), "sa_bo": rb(sa_out[1]),
            "norm1_g": ones(), "norm1_b": zeros(),
            # cross-attn: fused [k_content | v] from memory; others separate
            "ca_wq": bf(ca_qc[0]), "ca_bq": rb(ca_qc[1]),
            "ca_wkv": bf(jnp.concatenate([ca_kc[0], ca_v[0]], axis=1)),
            "ca_bkv": rb(jnp.concatenate([ca_kc[1], ca_v[1]])),
            "ca_wkp": bf(ca_kp[0]), "ca_bkp": rb(ca_kp[1]),
            "ca_wqs": bf(ca_qs[0]), "ca_bqs": rb(ca_qs[1]),
            "ca_wqp": bf(ca_qp[0]), "ca_bqp": rb(ca_qp[1]),   # first layer only
            "ca_wo": bf(ca_out[0]), "ca_bo": rb(ca_out[1]),
            "norm2_g": ones(), "norm2_b": zeros(),
            # FFN
            "lin1_w": bf(lin1[0]), "lin1_b": rb(lin1[1]),
            "lin2_w": bf(lin2[0]), "lin2_b": rb(lin2[1]),
            "norm3_g": ones(), "norm3_b": zeros(),
        }

    return {
        "layers": [make_layer() for _ in range(num_layers)],
        # tiny heads stay f32 plain-JAX (dropped from Pallas per review)
        "query_scale": [_make_linear(nk(), d_model, d_model),
                        _make_linear(nk(), d_model, d_model)],
        "ref_point_head": [_make_linear(nk(), query_dim // 2 * d_model, d_model),
                           _make_linear(nk(), d_model, d_model)],
        "ref_anchor_head": [_make_linear(nk(), d_model, d_model),
                            _make_linear(nk(), d_model, 2)],
        "norm_g": jnp.ones((1, d_model), jnp.float32),
        "norm_b": jnp.zeros((1, d_model), jnp.float32),
    }


# --------------------------------------------------------------------------- main

if __name__ == "__main__":
    d_model, nhead, dff = 32, 4, 64
    num_layers, query_dim = 2, 4
    B, Nq = 2, 8
    tgt_lens = (Nq, Nq)
    memory_lens = (10, 14)
    L_tgt, L_mem = sum(tgt_lens), sum(memory_lens)

    key = jax.random.PRNGKey(0)
    kp, k1, k2, k3, k4 = jax.random.split(key, 5)
    params = init_params(kp, d_model, nhead, dff, num_layers, query_dim)

    memory = jax.random.normal(k1, (L_mem, d_model), jnp.float32)
    tgt = jax.random.normal(k2, (L_tgt, d_model), jnp.float32)
    refpoint_embed = jax.random.normal(k3, (L_tgt, query_dim), jnp.float32)
    pos_embed = jax.random.normal(k4, (L_mem, d_model), jnp.float32)

    # bool self-attention mask over queries (True = masked), broadcast over batch/heads
    idx = jnp.arange(Nq)
    self_attn_mask = idx[None, :] > idx[:, None]

    fwd = jax.jit(functools.partial(
        transformer_decoder_forward,
        memory_lens=memory_lens, tgt_lens=tgt_lens,
        d_model=d_model, nhead=nhead, num_layers=num_layers, query_dim=query_dim))

    hs, references = fwd(params, memory, tgt, refpoint_embed, pos_embed, self_attn_mask)
    hs, references = jax.block_until_ready((hs, references))

    assert hs.shape == (num_layers, B, Nq, d_model), hs.shape
    assert references.shape == (1, L_tgt, query_dim), references.shape
    assert bool(jnp.all(jnp.isfinite(hs)))
    assert bool(jnp.all(jnp.isfinite(references)))
    print("KERNEL_OK")
</pallas_src>

<mosaic_0001>
module attributes {stable_mosaic.version = 11 : i64} {
  func.func @_decoder_layer_kernel(%arg0: i32, %arg1: memref<2x2xi32, #tpu.memory_space<smem>>, %arg2: memref<8x32xf32, #tpu.memory_space<vmem>>, %arg3: memref<8x32xbf16, #tpu.memory_space<vmem>>, %arg4: memref<8x32xbf16, #tpu.memory_space<vmem>>, %arg5: memref<8x8xf32, #tpu.memory_space<vmem>>, %arg6: memref<24x32xbf16, #tpu.memory_space<vmem>>, %arg7: memref<24x32xbf16, #tpu.memory_space<vmem>>, %arg8: memref<1x32xf32, #tpu.memory_space<vmem>>, %arg9: memref<1x32xf32, #tpu.memory_space<vmem>>, %arg10: memref<32x96xbf16, #tpu.memory_space<vmem>>, %arg11: memref<1x96xf32, #tpu.memory_space<vmem>>, %arg12: memref<32x64xbf16, #tpu.memory_space<vmem>>, %arg13: memref<1x64xf32, #tpu.memory_space<vmem>>, %arg14: memref<32x32xbf16, #tpu.memory_space<vmem>>, %arg15: memref<1x32xf32, #tpu.memory_space<vmem>>, %arg16: memref<1x32xf32, #tpu.memory_space<vmem>>, %arg17: memref<1x32xf32, #tpu.memory_space<vmem>>, %arg18: memref<32x32xbf16, #tpu.memory_space<vmem>>, %arg19: memref<1x32xf32, #tpu.memory_space<vmem>>, %arg20: memref<32x64xbf16, #tpu.memory_space<vmem>>, %arg21: memref<1x64xf32, #tpu.memory_space<vmem>>, %arg22: memref<32x32xbf16, #tpu.memory_space<vmem>>, %arg23: memref<1x32xf32, #tpu.memory_space<vmem>>, %arg24: memref<32x32xbf16, #tpu.memory_space<vmem>>, %arg25: memref<1x32xf32, #tpu.memory_space<vmem>>, %arg26: memref<32x32xbf16, #tpu.memory_space<vmem>>, %arg27: memref<1x32xf32, #tpu.memory_space<vmem>>, %arg28: memref<32x32xbf16, #tpu.memory_space<vmem>>, %arg29: memref<1x32xf32, #tpu.memory_space<vmem>>, %arg30: memref<1x32xf32, #tpu.memory_space<vmem>>, %arg31: memref<1x32xf32, #tpu.memory_space<vmem>>, %arg32: memref<32x64xbf16, #tpu.memory_space<vmem>>, %arg33: memref<1x64xf32, #tpu.memory_space<vmem>>, %arg34: memref<64x32xbf16, #tpu.memory_space<vmem>>, %arg35: memref<1x32xf32, #tpu.memory_space<vmem>>, %arg36: memref<1x32xf32, #tpu.memory_space<vmem>>, %arg37: memref<1x32xf32, #tpu.memory_space<vmem>>, %arg38: memref<8x32xf32, #tpu.memory_space<vmem>>, %arg39: memref<8x32xf32, #tpu.memory_space<vmem>>, %arg40: memref<8x32xf32, #tpu.memory_space<vmem>>) attributes {dimension_semantics = [#tpu.dimension_semantics<parallel>], iteration_bounds = array<i64: 2>, scalar_prefetch = 1 : i64, scratch_operands = 1 : i64, tpu.core_type = #tpu.core_type<tc>, window_params = [{transform_indices = @transform_0, window_bounds = array<i64: 8, 32>}, {transform_indices = @transform_1, window_bounds = array<i64: 8, 32>}, {transform_indices = @transform_2, window_bounds = array<i64: 8, 32>}, {pipeline_mode = #tpu.pipeline_mode<synchronous>, transform_indices = @transform_3, window_bounds = array<i64: 8, 8>}, {pipeline_mode = #tpu.pipeline_mode<synchronous>, transform_indices = @transform_4, window_bounds = array<i64: 24, 32>}, {pipeline_mode = #tpu.pipeline_mode<synchronous>, transform_indices = @transform_5, window_bounds = array<i64: 24, 32>}, {pipeline_mode = #tpu.pipeline_mode<synchronous>, transform_indices = @transform_6, window_bounds = array<i64: 1, 32>}, {pipeline_mode = #tpu.pipeline_mode<synchronous>, transform_indices = @transform_7, window_bounds = array<i64: 1, 32>}, {pipeline_mode = #tpu.pipeline_mode<synchronous>, transform_indices = @transform_8, window_bounds = array<i64: 32, 96>}, {pipeline_mode = #tpu.pipeline_mode<synchronous>, transform_indices = @transform_9, window_bounds = array<i64: 1, 96>}, {pipeline_mode = #tpu.pipeline_mode<synchronous>, transform_indices = @transform_10, window_bounds = array<i64: 32, 64>}, {pipeline_mode = #tpu.pipeline_mode<synchronous>, transform_indices = @transform_11, window_bounds = array<i64: 1, 64>}, {pipeline_mode = #tpu.pipeline_mode<synchronous>, transform_indices = @transform_12, window_bounds = array<i64: 32, 32>}, {pipeline_mode = #tpu.pipeline_mode<synchronous>, transform_indices = @transform_13, window_bounds = array<i64: 1, 32>}, {pipeline_mode = #tpu.pipeline_mode<synchronous>, transform_indices = @transform_14, window_bounds = array<i64: 1, 32>}, {pipeline_mode = #tpu.pipeline_mode<synchronous>, transform_indices = @transform_15, window_bounds = array<i64: 1, 32>}, {pipeline_mode = #tpu.pipeline_mode<synchronous>, transform_indices = @transform_16, window_bounds = array<i64: 32, 32>}, {pipeline_mode = #tpu.pipeline_mode<synchronous>, transform_indices = @transform_17, window_bounds = array<i64: 1, 32>}, {pipeline_mode = #tpu.pipeline_mode<synchronous>, transform_indices = @transform_18, window_bounds = array<i64: 32, 64>}, {pipeline_mode = #tpu.pipeline_mode<synchronous>, transform_indices = @transform_19, window_bounds = array<i64: 1, 64>}, {pipeline_mode = #tpu.pipeline_mode<synchronous>, transform_indices = @transform_20, window_bounds = array<i64: 32, 32>}, {pipeline_mode = #tpu.pipeline_mode<synchronous>, transform_indices = @transform_21, window_bounds = array<i64: 1, 32>}, {pipeline_mode = #tpu.pipeline_mode<synchronous>, transform_indices = @transform_22, window_bounds = array<i64: 32, 32>}, {pipeline_mode = #tpu.pipeline_mode<synchronous>, transform_indices = @transform_23, window_bounds = array<i64: 1, 32>}, {pipeline_mode = #tpu.pipeline_mode<synchronous>, transform_indices = @transform_24, window_bounds = array<i64: 32, 32>}, {pipeline_mode = #tpu.pipeline_mode<synchronous>, transform_indices = @transform_25, window_bounds = array<i64: 1, 32>}, {pipeline_mode = #tpu.pipeline_mode<synchronous>, transform_indices = @transform_26, window_bounds = array<i64: 32, 32>}, {pipeline_mode = #tpu.pipeline_mode<synchronous>, transform_indices = @transform_27, window_bounds = array<i64: 1, 32>}, {pipeline_mode = #tpu.pipeline_mode<synchronous>, transform_indices = @transform_28, window_bounds = array<i64: 1, 32>}, {pipeline_mode = #tpu.pipeline_mode<synchronous>, transform_indices = @transform_29, window_bounds = array<i64: 1, 32>}, {pipeline_mode = #tpu.pipeline_mode<synchronous>, transform_indices = @transform_30, window_bounds = array<i64: 32, 64>}, {pipeline_mode = #tpu.pipeline_mode<synchronous>, transform_indices = @transform_31, window_bounds = array<i64: 1, 64>}, {pipeline_mode = #tpu.pipeline_mode<synchronous>, transform_indices = @transform_32, window_bounds = array<i64: 64, 32>}, {pipeline_mode = #tpu.pipeline_mode<synchronous>, transform_indices = @transform_33, window_bounds = array<i64: 1, 32>}, {pipeline_mode = #tpu.pipeline_mode<synchronous>, transform_indices = @transform_34, window_bounds = array<i64: 1, 32>}, {pipeline_mode = #tpu.pipeline_mode<synchronous>, transform_indices = @transform_35, window_bounds = array<i64: 1, 32>}, {transform_indices = @transform_36, window_bounds = array<i64: 8, 32>}, {transform_indices = @transform_37, window_bounds = array<i64: 8, 32>}]} {
    %c0 = arith.constant 0 : index
    %c0_0 = arith.constant 0 : index
    %0 = vector.load %arg2[%c0, %c0_0] : memref<8x32xf32, #tpu.memory_space<vmem>>, vector<8x32xf32>
    %c0_1 = arith.constant 0 : index
    %c0_2 = arith.constant 0 : index
    %1 = vector.load %arg3[%c0_1, %c0_2] : memref<8x32xbf16, #tpu.memory_space<vmem>>, vector<8x32xbf16>
    %c0_3 = arith.constant 0 : index
    %c0_4 = arith.constant 0 : index
    %2 = vector.load %arg4[%c0_3, %c0_4] : memref<8x32xbf16, #tpu.memory_space<vmem>>, vector<8x32xbf16>
    %c0_5 = arith.constant 0 : index
    %c0_6 = arith.constant 0 : index
    %3 = vector.load %arg8[%c0_5, %c0_6] : memref<1x32xf32, #tpu.memory_space<vmem>>, vector<1x32xf32>
    %c0_7 = arith.constant 0 : index
    %c0_8 = arith.constant 0 : index
    %4 = vector.load %arg9[%c0_7, %c0_8] : memref<1x32xf32, #tpu.memory_space<vmem>>, vector<1x32xf32>
    %cst = arith.constant dense<0.000000e+00> : vector<8xf32>
    %5 = vector.multi_reduction <add>, %0, %cst [1] : vector<8x32xf32> to vector<8xf32>
    %6 = vector.shape_cast %5 : vector<8xf32> to vector<8x1xf32>
    %cst_9 = arith.constant 3.200000e+01 : f32
    %7 = vector.broadcast %cst_9 : f32 to vector<8x1xf32>
    %8 = arith.divf %6, %7 : vector<8x1xf32>
    %9 = vector.broadcast %8 : vector<8x1xf32> to vector<8x32xf32>
    %10 = arith.subf %0, %9 : vector<8x32xf32>
    %11 = vector.broadcast %8 : vector<8x1xf32> to vector<8x32xf32>
    %12 = arith.subf %0, %11 : vector<8x32xf32>
    %13 = arith.mulf %10, %12 : vector<8x32xf32>
    %cst_10 = arith.constant dense<0.000000e+00> : vector<8xf32>
    %14 = vector.multi_reduction <add>, %13, %cst_10 [1] : vector<8x32xf32> to vector<8xf32>
    %15 = vector.shape_cast %14 : vector<8xf32> to vector<8x1xf32>
    %cst_11 = arith.constant 3.200000e+01 : f32
    %16 = vector.broadcast %cst_11 : f32 to vector<8x1xf32>
    %17 = arith.divf %15, %16 : vector<8x1xf32>
    %18 = vector.broadcast %8 : vector<8x1xf32> to vector<8x32xf32>
    %19 = arith.subf %0, %18 : vector<8x32xf32>
    %cst_12 = arith.constant 9.99999974E-6 : f32
    %20 = vector.broadcast %cst_12 : f32 to vector<8x1xf32>
    %21 = arith.addf %17, %20 : vector<8x1xf32>
    %22 = math.rsqrt %21 : vector<8x1xf32>
    %23 = vector.broadcast %22 : vector<8x1xf32> to vector<8x32xf32>
    %24 = arith.mulf %19, %23 : vector<8x32xf32>
    %25 = vector.broadcast %3 : vector<1x32xf32> to vector<8x32xf32>
    %26 = arith.mulf %24, %25 : vector<8x32xf32>
    %27 = vector.broadcast %4 : vector<1x32xf32> to vector<8x32xf32>
    %28 = arith.addf %26, %27 : vector<8x32xf32>
    %29 = arith.truncf %28 : vector<8x32xf32> to vector<8x32xbf16>
    %c0_13 = arith.constant 0 : index
    %c0_14 = arith.constant 0 : index
    %30 = vector.load %arg10[%c0_13, %c0_14] : memref<32x96xbf16, #tpu.memory_space<vmem>>, vector<32x96xbf16>
    %cst_15 = arith.constant dense<0.000000e+00> : vector<8x96xf32>
    %31 = tpu.matmul %29, %30, %cst_15 {dimension_numbers = #tpu.dot_dimension_numbers<[1], [0], [0], [1], [0, 0, 1, 1], [], []>} : vector<8x32xbf16>, vector<32x96xbf16>, vector<8x96xf32> -> vector<8x96xf32>
    %c0_16 = arith.constant 0 : index
    %c0_17 = arith.constant 0 : index
    %32 = vector.load %arg11[%c0_16, %c0_17] : memref<1x96xf32, #tpu.memory_space<vmem>>, vector<1x96xf32>
    %33 = vector.broadcast %32 : vector<1x96xf32> to vector<8x96xf32>
    %34 = arith.addf %31, %33 : vector<8x96xf32>
    %c0_18 = arith.constant 0 : index
    %c0_19 = arith.constant 0 : index
    %35 = vector.load %arg12[%c0_18, %c0_19] : memref<32x64xbf16, #tpu.memory_space<vmem>>, vector<32x64xbf16>
    %cst_20 = arith.constant dense<0.000000e+00> : vector<8x64xf32>
    %36 = tpu.matmul %1, %35, %cst_20 {dimension_numbers = #tpu.dot_dimension_numbers<[1], [0], [0], [1], [0, 0, 1, 1], [], []>} : vector<8x32xbf16>, vector<32x64xbf16>, vector<8x64xf32> -> vector<8x64xf32>
    %c0_21 = arith.constant 0 : index
    %c0_22 = arith.constant 0 : index
    %37 = vector.load %arg13[%c0_21, %c0_22] : memref<1x64xf32, #tpu.memory_space<vmem>>, vector<1x64xf32>
    %38 = vector.broadcast %37 : vector<1x64xf32> to vector<8x64xf32>
    %39 = arith.addf %36, %38 : vector<8x64xf32>
    %40 = vector.extract_strided_slice %34 {offsets = [0, 0], sizes = [8, 32], strides = [1, 1]} : vector<8x96xf32> to vector<8x32xf32>
    %41 = vector.extract_strided_slice %39 {offsets = [0, 0], sizes = [8, 32], strides = [1, 1]} : vector<8x64xf32> to vector<8x32xf32>
    %42 = arith.addf %40, %41 : vector<8x32xf32>
    %43 = arith.truncf %42 : vector<8x32xf32> to vector<8x32xbf16>
    %44 = vector.extract_strided_slice %34 {offsets = [0, 32], sizes = [8, 32], strides = [1, 1]} : vector<8x96xf32> to vector<8x32xf32>
    %45 = vector.extract_strided_slice %39 {offsets = [0, 32], sizes = [8, 32], strides = [1, 1]} : vector<8x64xf32> to vector<8x32xf32>
    %46 = arith.addf %44, %45 : vector<8x32xf32>
    %47 = arith.truncf %46 : vector<8x32xf32> to vector<8x32xbf16>
    %48 = vector.extract_strided_slice %34 {offsets = [0, 64], sizes = [8, 32], strides = [1, 1]} : vector<8x96xf32> to vector<8x32xf32>
    %49 = arith.truncf %48 : vector<8x32xf32> to vector<8x32xbf16>
    %c0_23 = arith.constant 0 : index
    %c0_24 = arith.constant 0 : index
    %50 = vector.load %arg5[%c0_23, %c0_24] : memref<8x8xf32, #tpu.memory_space<vmem>>, vector<8x8xf32>
    %51 = vector.extract_strided_slice %43 {offsets = [0, 0], sizes = [8, 8], strides = [1, 1]} : vector<8x32xbf16> to vector<8x8xbf16>
    %52 = vector.extract_strided_slice %47 {offsets = [0, 0], sizes = [8, 8], strides = [1, 1]} : vector<8x32xbf16> to vector<8x8xbf16>
    %cst_25 = arith.constant dense<0.000000e+00> : vector<8x8xf32>
    %53 = tpu.matmul %51, %52, %cst_25 {dimension_numbers = #tpu.dot_dimension_numbers<[1], [1], [0], [0], [0, 0, 1, 0], [], []>} : vector<8x8xbf16>, vector<8x8xbf16>, vector<8x8xf32> -> vector<8x8xf32>
    %cst_26 = arith.constant 0.353553385 : f32
    %54 = vector.broadcast %cst_26 : f32 to vector<8x8xf32>
    %55 = arith.mulf %53, %54 : vector<8x8xf32>
    %56 = arith.addf %55, %50 : vector<8x8xf32>
    %57 = vector.extract_strided_slice %49 {offsets = [0, 0], sizes = [8, 8], strides = [1, 1]} : vector<8x32xbf16> to vector<8x8xbf16>
    %cst_27 = arith.constant dense<0xFF800000> : vector<8xf32>
    %58 = vector.multi_reduction <maximumf>, %56, %cst_27 [1] : vector<8x8xf32> to vector<8xf32>
    %59 = vector.shape_cast %58 : vector<8xf32> to vector<8x1xf32>
    %60 = vector.broadcast %59 : vector<8x1xf32> to vector<8x8xf32>
    %61 = arith.subf %56, %60 : vector<8x8xf32>
    %62 = math.exp %61 : vector<8x8xf32>
    %cst_28 = arith.constant dense<0.000000e+00> : vector<8xf32>
    %63 = vector.multi_reduction <add>, %62, %cst_28 [1] : vector<8x8xf32> to vector<8xf32>
    %64 = vector.shape_cast %63 : vector<8xf32> to vector<8x1xf32>
    %65 = arith.truncf %62 : vector<8x8xf32> to vector<8x8xbf16>
    %cst_29 = arith.constant dense<0.000000e+00> : vector<8x8xf32>
    %66 = tpu.matmul %65, %57, %cst_29 {dimension_numbers = #tpu.dot_dimension_numbers<[1], [0], [0], [1], [0, 0, 1, 1], [], []>} : vector<8x8xbf16>, vector<8x8xbf16>, vector<8x8xf32> -> vector<8x8xf32>
    %67 = tpu.reciprocal %64 {approx = true} : vector<8x1xf32> -> vector<8x1xf32>
    %68 = vector.broadcast %67 : vector<8x1xf32> to vector<8x8xf32>
    %69 = arith.mulf %66, %68 : vector<8x8xf32>
    %c0_30 = arith.constant 0 : index
    %c0_31 = arith.constant 0 : index
    %70 = vector.load %arg40[%c0_30, %c0_31] : memref<8x32xf32, #tpu.memory_space<vmem>>, vector<8x8xf32>
    tpu.vector_store %arg40[%c0_30, %c0_31], %69 {strides = array<i32>} : memref<8x32xf32, #tpu.memory_space<vmem>>, vector<8x8xf32>,
    %71 = vector.extract_strided_slice %43 {offsets = [0, 8], sizes = [8, 8], strides = [1, 1]} : vector<8x32xbf16> to vector<8x8xbf16>
    %72 = vector.extract_strided_slice %47 {offsets = [0, 8], sizes = [8, 8], strides = [1, 1]} : vector<8x32xbf16> to vector<8x8xbf16>
    %cst_32 = arith.constant dense<0.000000e+00> : vector<8x8xf32>
    %73 = tpu.matmul %71, %72, %cst_32 {dimension_numbers = #tpu.dot_dimension_numbers<[1], [1], [0], [0], [0, 0, 1, 0], [], []>} : vector<8x8xbf16>, vector<8x8xbf16>, vector<8x8xf32> -> vector<8x8xf32>
    %cst_33 = arith.constant 0.353553385 : f32
    %74 = vector.broadcast %cst_33 : f32 to vector<8x8xf32>
    %75 = arith.mulf %73, %74 : vector<8x8xf32>
    %76 = arith.addf %75, %50 : vector<8x8xf32>
    %77 = vector.extract_strided_slice %49 {offsets = [0, 8], sizes = [8, 8], strides = [1, 1]} : vector<8x32xbf16> to vector<8x8xbf16>
    %cst_34 = arith.constant dense<0xFF800000> : vector<8xf32>
    %78 = vector.multi_reduction <maximumf>, %76, %cst_34 [1] : vector<8x8xf32> to vector<8xf32>
    %79 = vector.shape_cast %78 : vector<8xf32> to vector<8x1xf32>
    %80 = vector.broadcast %79 : vector<8x1xf32> to vector<8x8xf32>
    %81 = arith.subf %76, %80 : vector<8x8xf32>
    %82 = math.exp %81 : vector<8x8xf32>
    %cst_35 = arith.constant dense<0.000000e+00> : vector<8xf32>
    %83 = vector.multi_reduction <add>, %82, %cst_35 [1] : vector<8x8xf32> to vector<8xf32>
    %84 = vector.shape_cast %83 : vector<8xf32> to vector<8x1xf32>
    %85 = arith.truncf %82 : vector<8x8xf32> to vector<8x8xbf16>
    %cst_36 = arith.constant dense<0.000000e+00> : vector<8x8xf32>
    %86 = tpu.matmul %85, %77, %cst_36 {dimension_numbers = #tpu.dot_dimension_numbers<[1], [0], [0], [1], [0, 0, 1, 1], [], []>} : vector<8x8xbf16>, vector<8x8xbf16>, vector<8x8xf32> -> vector<8x8xf32>
    %87 = tpu.reciprocal %84 {approx = true} : vector<8x1xf32> -> vector<8x1xf32>
    %88 = vector.broadcast %87 : vector<8x1xf32> to vector<8x8xf32>
    %89 = arith.mulf %86, %88 : vector<8x8xf32>
    %c0_37 = arith.constant 0 : index
    %c8 = arith.constant 8 : index
    %90 = vector.load %arg40[%c0_37, %c8] : memref<8x32xf32, #tpu.memory_space<vmem>>, vector<8x8xf32>
    tpu.vector_store %arg40[%c0_37, %c8], %89 {strides = array<i32>} : memref<8x32xf32, #tpu.memory_space<vmem>>, vector<8x8xf32>,
    %91 = vector.extract_strided_slice %43 {offsets = [0, 16], sizes = [8, 8], strides = [1, 1]} : vector<8x32xbf16> to vector<8x8xbf16>
    %92 = vector.extract_strided_slice %47 {offsets = [0, 16], sizes = [8, 8], strides = [1, 1]} : vector<8x32xbf16> to vector<8x8xbf16>
    %cst_38 = arith.constant dense<0.000000e+00> : vector<8x8xf32>
    %93 = tpu.matmul %91, %92, %cst_38 {dimension_numbers = #tpu.dot_dimension_numbers<[1], [1], [0], [0], [0, 0, 1, 0], [], []>} : vector<8x8xbf16>, vector<8x8xbf16>, vector<8x8xf32> -> vector<8x8xf32>
    %cst_39 = arith.constant 0.353553385 : f32
    %94 = vector.broadcast %cst_39 : f32 to vector<8x8xf32>
    %95 = arith.mulf %93, %94 : vector<8x8xf32>
    %96 = arith.addf %95, %50 : vector<8x8xf32>
    %97 = vector.extract_strided_slice %49 {offsets = [0, 16], sizes = [8, 8], strides = [1, 1]} : vector<8x32xbf16> to vector<8x8xbf16>
    %cst_40 = arith.constant dense<0xFF800000> : vector<8xf32>
    %98 = vector.multi_reduction <maximumf>, %96, %cst_40 [1] : vector<8x8xf32> to vector<8xf32>
    %99 = vector.shape_cast %98 : vector<8xf32> to vector<8x1xf32>
    %100 = vector.broadcast %99 : vector<8x1xf32> to vector<8x8xf32>
    %101 = arith.subf %96, %100 : vector<8x8xf32>
    %102 = math.exp %101 : vector<8x8xf32>
    %cst_41 = arith.constant dense<0.000000e+00> : vector<8xf32>
    %103 = vector.multi_reduction <add>, %102, %cst_41 [1] : vector<8x8xf32> to vector<8xf32>
    %104 = vector.shape_cast %103 : vector<8xf32> to vector<8x1xf32>
    %105 = arith.truncf %102 : vector<8x8xf32> to vector<8x8xbf16>
    %cst_42 = arith.constant dense<0.000000e+00> : vector<8x8xf32>
    %106 = tpu.matmul %105, %97, %cst_42 {dimension_numbers = #tpu.dot_dimension_numbers<[1], [0], [0], [1], [0, 0, 1, 1], [], []>} : vector<8x8xbf16>, vector<8x8xbf16>, vector<8x8xf32> -> vector<8x8xf32>
    %107 = tpu.reciprocal %104 {approx = true} : vector<8x1xf32> -> vector<8x1xf32>
    %108 = vector.broadcast %107 : vector<8x1xf32> to vector<8x8xf32>
    %109 = arith.mulf %106, %108 : vector<8x8xf32>
    %c0_43 = arith.constant 0 : index
    %c16 = arith.constant 16 : index
    %110 = vector.load %arg40[%c0_43, %c16] : memref<8x32xf32, #tpu.memory_space<vmem>>, vector<8x8xf32>
    tpu.vector_store %arg40[%c0_43, %c16], %109 {strides = array<i32>} : memref<8x32xf32, #tpu.memory_space<vmem>>, vector<8x8xf32>,
    %111 = vector.extract_strided_slice %43 {offsets = [0, 24], sizes = [8, 8], strides = [1, 1]} : vector<8x32xbf16> to vector<8x8xbf16>
    %112 = vector.extract_strided_slice %47 {offsets = [0, 24], sizes = [8, 8], strides = [1, 1]} : vector<8x32xbf16> to vector<8x8xbf16>
    %cst_44 = arith.constant dense<0.000000e+00> : vector<8x8xf32>
    %113 = tpu.matmul %111, %112, %cst_44 {dimension_numbers = #tpu.dot_dimension_numbers<[1], [1], [0], [0], [0, 0, 1, 0], [], []>} : vector<8x8xbf16>, vector<8x8xbf16>, vector<8x8xf32> -> vector<8x8xf32>
    %cst_45 = arith.constant 0.353553385 : f32
    %114 = vector.broadcast %cst_45 : f32 to vector<8x8xf32>
    %115 = arith.mulf %113, %114 : vector<8x8xf32>
    %116 = arith.addf %115, %50 : vector<8x8xf32>
    %117 = vector.extract_strided_slice %49 {offsets = [0, 24], sizes = [8, 8], strides = [1, 1]} : vector<8x32xbf16> to vector<8x8xbf16>
    %cst_46 = arith.constant dense<0xFF800000> : vector<8xf32>
    %118 = vector.multi_reduction <maximumf>, %116, %cst_46 [1] : vector<8x8xf32> to vector<8xf32>
    %119 = vector.shape_cast %118 : vector<8xf32> to vector<8x1xf32>
    %120 = vector.broadcast %119 : vector<8x1xf32> to vector<8x8xf32>
    %121 = arith.subf %116, %120 : vector<8x8xf32>
    %122 = math.exp %121 : vector<8x8xf32>
    %cst_47 = arith.constant dense<0.000000e+00> : vector<8xf32>
    %123 = vector.multi_reduction <add>, %122, %cst_47 [1] : vector<8x8xf32> to vector<8xf32>
    %124 = vector.shape_cast %123 : vector<8xf32> to vector<8x1xf32>
    %125 = arith.truncf %122 : vector<8x8xf32> to vector<8x8xbf16>
    %cst_48 = arith.constant dense<0.000000e+00> : vector<8x8xf32>
    %126 = tpu.matmul %125, %117, %cst_48 {dimension_numbers = #tpu.dot_dimension_numbers<[1], [0], [0], [1], [0, 0, 1, 1], [], []>} : vector<8x8xbf16>, vector<8x8xbf16>, vector<8x8xf32> -> vector<8x8xf32>
    %127 = tpu.reciprocal %124 {approx = true} : vector<8x1xf32> -> vector<8x1xf32>
    %128 = vector.broadcast %127 : vector<8x1xf32> to vector<8x8xf32>
    %129 = arith.mulf %126, %128 : vector<8x8xf32>
    %c0_49 = arith.constant 0 : index
    %c24 = arith.constant 24 : index
    %130 = vector.load %arg40[%c0_49, %c24] : memref<8x32xf32, #tpu.memory_space<vmem>>, vector<8x8xf32>
    tpu.vector_store %arg40[%c0_49, %c24], %129 {strides = array<i32>} : memref<8x32xf32, #tpu.memory_space<vmem>>, vector<8x8xf32>,
    %c0_50 = arith.constant 0 : index
    %c0_51 = arith.constant 0 : index
    %131 = vector.load %arg40[%c0_50, %c0_51] : memref<8x32xf32, #tpu.memory_space<vmem>>, vector<8x32xf32>
    %132 = arith.truncf %131 : vector<8x32xf32> to vector<8x32xbf16>
    %c0_52 = arith.constant 0 : index
    %c0_53 = arith.constant 0 : index
    %133 = vector.load %arg14[%c0_52, %c0_53] : memref<32x32xbf16, #tpu.memory_space<vmem>>, vector<32x32xbf16>
    %cst_54 = arith.constant dense<0.000000e+00> : vector<8x32xf32>
    %134 = tpu.matmul %132, %133, %cst_54 {dimension_numbers = #tpu.dot_dimension_numbers<[1], [0], [0], [1], [0, 0, 1, 1], [], []>} : vector<8x32xbf16>, vector<32x32xbf16>, vector<8x32xf32> -> vector<8x32xf32>
    %135 = arith.addf %0, %134 : vector<8x32xf32>
    %c0_55 = arith.constant 0 : index
    %c0_56 = arith.constant 0 : index
    %136 = vector.load %arg15[%c0_55, %c0_56] : memref<1x32xf32, #tpu.memory_space<vmem>>, vector<1x32xf32>
    %137 = vector.broadcast %136 : vector<1x32xf32> to vector<8x32xf32>
    %138 = arith.addf %135, %137 : vector<8x32xf32>
    %c0_57 = arith.constant 0 : index
    %c0_58 = arith.constant 0 : index
    %139 = vector.load %arg16[%c0_57, %c0_58] : memref<1x32xf32, #tpu.memory_space<vmem>>, vector<1x32xf32>
    %c0_59 = arith.constant 0 : index
    %c0_60 = arith.constant 0 : index
    %140 = vector.load %arg17[%c0_59, %c0_60] : memref<1x32xf32, #tpu.memory_space<vmem>>, vector<1x32xf32>
    %cst_61 = arith.constant dense<0.000000e+00> : vector<8xf32>
    %141 = vector.multi_reduction <add>, %138, %cst_61 [1] : vector<8x32xf32> to vector<8xf32>
    %142 = vector.shape_cast %141 : vector<8xf32> to vector<8x1xf32>
    %cst_62 = arith.constant 3.200000e+01 : f32
    %143 = vector.broadcast %cst_62 : f32 to vector<8x1xf32>
    %144 = arith.divf %142, %143 : vector<8x1xf32>
    %145 = vector.broadcast %144 : vector<8x1xf32> to vector<8x32xf32>
    %146 = arith.subf %138, %145 : vector<8x32xf32>
    %147 = vector.broadcast %144 : vector<8x1xf32> to vector<8x32xf32>
    %148 = arith.subf %138, %147 : vector<8x32xf32>
    %149 = arith.mulf %146, %148 : vector<8x32xf32>
    %cst_63 = arith.constant dense<0.000000e+00> : vector<8xf32>
    %150 = vector.multi_reduction <add>, %149, %cst_63 [1] : vector<8x32xf32> to vector<8xf32>
    %151 = vector.shape_cast %150 : vector<8xf32> to vector<8x1xf32>
    %cst_64 = arith.constant 3.200000e+01 : f32
    %152 = vector.broadcast %cst_64 : f32 to vector<8x1xf32>
    %153 = arith.divf %151, %152 : vector<8x1xf32>
    %154 = vector.broadcast %144 : vector<8x1xf32> to vector<8x32xf32>
    %155 = arith.subf %138, %154 : vector<8x32xf32>
    %cst_65 = arith.constant 9.99999974E-6 : f32
    %156 = vector.broadcast %cst_65 : f32 to vector<8x1xf32>
    %157 = arith.addf %153, %156 : vector<8x1xf32>
    %158 = math.rsqrt %157 : vector<8x1xf32>
    %159 = vector.broadcast %158 : vector<8x1xf32> to vector<8x32xf32>
    %160 = arith.mulf %155, %159 : vector<8x32xf32>
    %161 = vector.broadcast %139 : vector<1x32xf32> to vector<8x32xf32>
    %162 = arith.mulf %160, %161 : vector<8x32xf32>
    %163 = vector.broadcast %140 : vector<1x32xf32> to vector<8x32xf32>
    %164 = arith.addf %162, %163 : vector<8x32xf32>
    %c0_66 = arith.constant 0 : index
    %c0_67 = arith.constant 0 : index
    %165 = vector.load %arg6[%c0_66, %c0_67] : memref<24x32xbf16, #tpu.memory_space<vmem>>, vector<24x32xbf16>
    %166 = arith.truncf %164 : vector<8x32xf32> to vector<8x32xbf16>
    %c0_68 = arith.constant 0 : index
    %c0_69 = arith.constant 0 : index
    %167 = vector.load %arg18[%c0_68, %c0_69] : memref<32x32xbf16, #tpu.memory_space<vmem>>, vector<32x32xbf16>
    %cst_70 = arith.constant dense<0.000000e+00> : vector<8x32xf32>
    %168 = tpu.matmul %166, %167, %cst_70 {dimension_numbers = #tpu.dot_dimension_numbers<[1], [0], [0], [1], [0, 0, 1, 1], [], []>} : vector<8x32xbf16>, vector<32x32xbf16>, vector<8x32xf32> -> vector<8x32xf32>
    %c0_71 = arith.constant 0 : index
    %c0_72 = arith.constant 0 : index
    %169 = vector.load %arg19[%c0_71, %c0_72] : memref<1x32xf32, #tpu.memory_space<vmem>>, vector<1x32xf32>
    %170 = vector.broadcast %169 : vector<1x32xf32> to vector<8x32xf32>
    %171 = arith.addf %168, %170 : vector<8x32xf32>
    %c0_73 = arith.constant 0 : index
    %c0_74 = arith.constant 0 : index
    %172 = vector.load %arg20[%c0_73, %c0_74] : memref<32x64xbf16, #tpu.memory_space<vmem>>, vector<32x64xbf16>
    %cst_75 = arith.constant dense<0.000000e+00> : vector<24x64xf32>
    %173 = tpu.matmul %165, %172, %cst_75 {dimension_numbers = #tpu.dot_dimension_numbers<[1], [0], [0], [1], [0, 0, 1, 1], [], []>} : vector<24x32xbf16>, vector<32x64xbf16>, vector<24x64xf32> -> vector<24x64xf32>
    %c0_76 = arith.constant 0 : index
    %c0_77 = arith.constant 0 : index
    %174 = vector.load %arg21[%c0_76, %c0_77] : memref<1x64xf32, #tpu.memory_space<vmem>>, vector<1x64xf32>
    %175 = vector.broadcast %174 : vector<1x64xf32> to vector<24x64xf32>
    %176 = arith.addf %173, %175 : vector<24x64xf32>
    %177 = vector.extract_strided_slice %176 {offsets = [0, 0], sizes = [24, 32], strides = [1, 1]} : vector<24x64xf32> to vector<24x32xf32>
    %178 = vector.extract_strided_slice %176 {offsets = [0, 32], sizes = [24, 32], strides = [1, 1]} : vector<24x64xf32> to vector<24x32xf32>
    %179 = arith.truncf %178 : vector<24x32xf32> to vector<24x32xbf16>
    %c0_78 = arith.constant 0 : index
    %c0_79 = arith.constant 0 : index
    %180 = vector.load %arg7[%c0_78, %c0_79] : memref<24x32xbf16, #tpu.memory_space<vmem>>, vector<24x32xbf16>
    %c0_80 = arith.constant 0 : index
    %c0_81 = arith.constant 0 : index
    %181 = vector.load %arg22[%c0_80, %c0_81] : memref<32x32xbf16, #tpu.memory_space<vmem>>, vector<32x32xbf16>
    %cst_82 = arith.constant dense<0.000000e+00> : vector<24x32xf32>
    %182 = tpu.matmul %180, %181, %cst_82 {dimension_numbers = #tpu.dot_dimension_numbers<[1], [0], [0], [1], [0, 0, 1, 1], [], []>} : vector<24x32xbf16>, vector<32x32xbf16>, vector<24x32xf32> -> vector<24x32xf32>
    %c0_83 = arith.constant 0 : index
    %c0_84 = arith.constant 0 : index
    %183 = vector.load %arg23[%c0_83, %c0_84] : memref<1x32xf32, #tpu.memory_space<vmem>>, vector<1x32xf32>
    %184 = vector.broadcast %183 : vector<1x32xf32> to vector<24x32xf32>
    %185 = arith.addf %182, %184 : vector<24x32xf32>
    %c0_85 = arith.constant 0 : index
    %c0_86 = arith.constant 0 : index
    %186 = vector.load %arg24[%c0_85, %c0_86] : memref<32x32xbf16, #tpu.memory_space<vmem>>, vector<32x32xbf16>
    %cst_87 = arith.constant dense<0.000000e+00> : vector<8x32xf32>
    %187 = tpu.matmul %2, %186, %cst_87 {dimension_numbers = #tpu.dot_dimension_numbers<[1], [0], [0], [1], [0, 0, 1, 1], [], []>} : vector<8x32xbf16>, vector<32x32xbf16>, vector<8x32xf32> -> vector<8x32xf32>
    %c0_88 = arith.constant 0 : index
    %c0_89 = arith.constant 0 : index
    %188 = vector.load %arg25[%c0_88, %c0_89] : memref<1x32xf32, #tpu.memory_space<vmem>>, vector<1x32xf32>
    %189 = vector.broadcast %188 : vector<1x32xf32> to vector<8x32xf32>
    %190 = arith.addf %187, %189 : vector<8x32xf32>
    %c0_90 = arith.constant 0 : index
    %c0_91 = arith.constant 0 : index
    %191 = vector.load %arg26[%c0_90, %c0_91] : memref<32x32xbf16, #tpu.memory_space<vmem>>, vector<32x32xbf16>
    %cst_92 = arith.constant dense<0.000000e+00> : vector<8x32xf32>
    %192 = tpu.matmul %1, %191, %cst_92 {dimension_numbers = #tpu.dot_dimension_numbers<[1], [0], [0], [1], [0, 0, 1, 1], [], []>} : vector<8x32xbf16>, vector<32x32xbf16>, vector<8x32xf32> -> vector<8x32xf32>
    %193 = arith.addf %171, %192 : vector<8x32xf32>
    %c0_93 = arith.constant 0 : index
    %c0_94 = arith.constant 0 : index
    %194 = vector.load %arg27[%c0_93, %c0_94] : memref<1x32xf32, #tpu.memory_space<vmem>>, vector<1x32xf32>
    %195 = vector.broadcast %194 : vector<1x32xf32> to vector<8x32xf32>
    %196 = arith.addf %193, %195 : vector<8x32xf32>
    %197 = arith.addf %177, %185 : vector<24x32xf32>
    %198 = arith.index_cast %arg0 : i32 to index
    %c0_95 = arith.constant 0 : index
    %199 = memref.load %arg1[%198, %c0_95] : memref<2x2xi32, #tpu.memory_space<smem>>
    %200 = arith.index_cast %arg0 : i32 to index
    %c1 = arith.constant 1 : index
    %201 = memref.load %arg1[%200, %c1] : memref<2x2xi32, #tpu.memory_space<smem>>
    %202 = tpu.iota {dimensions = array<i32: 1>} : vector<8x24xi32>
    %203 = vector.broadcast %199 : i32 to vector<8x24xi32>
    %204 = arith.cmpi sge, %202, %203 : vector<8x24xi32>
    %205 = vector.broadcast %201 : i32 to vector<8x24xi32>
    %206 = arith.cmpi slt, %202, %205 : vector<8x24xi32>
    %207 = arith.andi %204, %206 : vector<8x24xi1>
    %cst_96 = arith.constant 0.000000e+00 : f32
    %cst_97 = arith.constant -1.000000e+30 : f32
    %208 = vector.broadcast %cst_96 : f32 to vector<8x24xf32>
    %209 = vector.broadcast %cst_97 : f32 to vector<8x24xf32>
    %210 = arith.select %207, %208, %209 : vector<8x24xi1>, vector<8x24xf32>
    %211 = arith.truncf %196 : vector<8x32xf32> to vector<8x32xbf16>
    %212 = arith.truncf %197 : vector<24x32xf32> to vector<24x32xbf16>
    %213 = arith.truncf %190 : vector<8x32xf32> to vector<8x32xbf16>
    %214 = arith.truncf %185 : vector<24x32xf32> to vector<24x32xbf16>
    %215 = vector.extract_strided_slice %211 {offsets = [0, 0], sizes = [8, 8], strides = [1, 1]} : vector<8x32xbf16> to vector<8x8xbf16>
    %216 = vector.extract_strided_slice %212 {offsets = [0, 0], sizes = [24, 8], strides = [1, 1]} : vector<24x32xbf16> to vector<24x8xbf16>
    %cst_98 = arith.constant dense<0.000000e+00> : vector<8x24xf32>
    %217 = tpu.matmul %215, %216, %cst_98 {dimension_numbers = #tpu.dot_dimension_numbers<[1], [1], [0], [0], [0, 0, 1, 0], [], []>} : vector<8x8xbf16>, vector<24x8xbf16>, vector<8x24xf32> -> vector<8x24xf32>
    %218 = vector.extract_strided_slice %213 {offsets = [0, 0], sizes = [8, 8], strides = [1, 1]} : vector<8x32xbf16> to vector<8x8xbf16>
    %219 = vector.extract_strided_slice %214 {offsets = [0, 0], sizes = [24, 8], strides = [1, 1]} : vector<24x32xbf16> to vector<24x8xbf16>
    %cst_99 = arith.constant dense<0.000000e+00> : vector<8x24xf32>
    %220 = tpu.matmul %218, %219, %cst_99 {dimension_numbers = #tpu.dot_dimension_numbers<[1], [1], [0], [0], [0, 0, 1, 0], [], []>} : vector<8x8xbf16>, vector<24x8xbf16>, vector<8x24xf32> -> vector<8x24xf32>
    %221 = arith.addf %217, %220 : vector<8x24xf32>
    %cst_100 = arith.constant 2.500000e-01 : f32
    %222 = vector.broadcast %cst_100 : f32 to vector<8x24xf32>
    %223 = arith.mulf %221, %222 : vector<8x24xf32>
    %224 = arith.addf %223, %210 : vector<8x24xf32>
    %225 = vector.extract_strided_slice %179 {offsets = [0, 0], sizes = [24, 8], strides = [1, 1]} : vector<24x32xbf16> to vector<24x8xbf16>
    %cst_101 = arith.constant dense<0xFF800000> : vector<8xf32>
    %226 = vector.multi_reduction <maximumf>, %224, %cst_101 [1] : vector<8x24xf32> to vector<8xf32>
    %227 = vector.shape_cast %226 : vector<8xf32> to vector<8x1xf32>
    %228 = vector.broadcast %227 : vector<8x1xf32> to vector<8x24xf32>
    %229 = arith.subf %224, %228 : vector<8x24xf32>
    %230 = math.exp %229 : vector<8x24xf32>
    %cst_102 = arith.constant dense<0.000000e+00> : vector<8xf32>
    %231 = vector.multi_reduction <add>, %230, %cst_102 [1] : vector<8x24xf32> to vector<8xf32>
    %232 = vector.shape_cast %231 : vector<8xf32> to vector<8x1xf32>
    %233 = arith.truncf %230 : vector<8x24xf32> to vector<8x24xbf16>
    %cst_103 = arith.constant dense<0.000000e+00> : vector<8x8xf32>
    %234 = tpu.matmul %233, %225, %cst_103 {dimension_numbers = #tpu.dot_dimension_numbers<[1], [0], [0], [1], [0, 0, 1, 1], [], []>} : vector<8x24xbf16>, vector<24x8xbf16>, vector<8x8xf32> -> vector<8x8xf32>
    %235 = tpu.reciprocal %232 {approx = true} : vector<8x1xf32> -> vector<8x1xf32>
    %236 = vector.broadcast %235 : vector<8x1xf32> to vector<8x8xf32>
    %237 = arith.mulf %234, %236 : vector<8x8xf32>
    %c0_104 = arith.constant 0 : index
    %c0_105 = arith.constant 0 : index
    %238 = vector.load %arg40[%c0_104, %c0_105] : memref<8x32xf32, #tpu.memory_space<vmem>>, vector<8x8xf32>
    tpu.vector_store %arg40[%c0_104, %c0_105], %237 {strides = array<i32>} : memref<8x32xf32, #tpu.memory_space<vmem>>, vector<8x8xf32>,
    %239 = vector.extract_strided_slice %211 {offsets = [0, 8], sizes = [8, 8], strides = [1, 1]} : vector<8x32xbf16> to vector<8x8xbf16>
    %240 = vector.extract_strided_slice %212 {offsets = [0, 8], sizes = [24, 8], strides = [1, 1]} : vector<24x32xbf16> to vector<24x8xbf16>
    %cst_106 = arith.constant dense<0.000000e+00> : vector<8x24xf32>
    %241 = tpu.matmul %239, %240, %cst_106 {dimension_numbers = #tpu.dot_dimension_numbers<[1], [1], [0], [0], [0, 0, 1, 0], [], []>} : vector<8x8xbf16>, vector<24x8xbf16>, vector<8x24xf32> -> vector<8x24xf32>
    %242 = vector.extract_strided_slice %213 {offsets = [0, 8], sizes = [8, 8], strides = [1, 1]} : vector<8x32xbf16> to vector<8x8xbf16>
    %243 = vector.extract_strided_slice %214 {offsets = [0, 8], sizes = [24, 8], strides = [1, 1]} : vector<24x32xbf16> to vector<24x8xbf16>
    %cst_107 = arith.constant dense<0.000000e+00> : vector<8x24xf32>
    %244 = tpu.matmul %242, %243, %cst_107 {dimension_numbers = #tpu.dot_dimension_numbers<[1], [1], [0], [0], [0, 0, 1, 0], [], []>} : vector<8x8xbf16>, vector<24x8xbf16>, vector<8x24xf32> -> vector<8x24xf32>
    %245 = arith.addf %241, %244 : vector<8x24xf32>
    %cst_108 = arith.constant 2.500000e-01 : f32
    %246 = vector.broadcast %cst_108 : f32 to vector<8x24xf32>
    %247 = arith.mulf %245, %246 : vector<8x24xf32>
    %248 = arith.addf %247, %210 : vector<8x24xf32>
    %249 = vector.extract_strided_slice %179 {offsets = [0, 8], sizes = [24, 8], strides = [1, 1]} : vector<24x32xbf16> to vector<24x8xbf16>
    %cst_109 = arith.constant dense<0xFF800000> : vector<8xf32>
    %250 = vector.multi_reduction <maximumf>, %248, %cst_109 [1] : vector<8x24xf32> to vector<8xf32>
    %251 = vector.shape_cast %250 : vector<8xf32> to vector<8x1xf32>
    %252 = vector.broadcast %251 : vector<8x1xf32> to vector<8x24xf32>
    %253 = arith.subf %248, %252 : vector<8x24xf32>
    %254 = math.exp %253 : vector<8x24xf32>
    %cst_110 = arith.constant dense<0.000000e+00> : vector<8xf32>
    %255 = vector.multi_reduction <add>, %254, %cst_110 [1] : vector<8x24xf32> to vector<8xf32>
    %256 = vector.shape_cast %255 : vector<8xf32> to vector<8x1xf32>
    %257 = arith.truncf %254 : vector<8x24xf32> to vector<8x24xbf16>
    %cst_111 = arith.constant dense<0.000000e+00> : vector<8x8xf32>
    %258 = tpu.matmul %257, %249, %cst_111 {dimension_numbers = #tpu.dot_dimension_numbers<[1], [0], [0], [1], [0, 0, 1, 1], [], []>} : vector<8x24xbf16>, vector<24x8xbf16>, vector<8x8xf32> -> vector<8x8xf32>
    %259 = tpu.reciprocal %256 {approx = true} : vector<8x1xf32> -> vector<8x1xf32>
    %260 = vector.broadcast %259 : vector<8x1xf32> to vector<8x8xf32>
    %261 = arith.mulf %258, %260 : vector<8x8xf32>
    %c0_112 = arith.constant 0 : index
    %c8_113 = arith.constant 8 : index
    %262 = vector.load %arg40[%c0_112, %c8_113] : memref<8x32xf32, #tpu.memory_space<vmem>>, vector<8x8xf32>
    tpu.vector_store %arg40[%c0_112, %c8_113], %261 {strides = array<i32>} : memref<8x32xf32, #tpu.memory_space<vmem>>, vector<8x8xf32>,
    %263 = vector.extract_strided_slice %211 {offsets = [0, 16], sizes = [8, 8], strides = [1, 1]} : vector<8x32xbf16> to vector<8x8xbf16>
    %264 = vector.extract_strided_slice %212 {offsets = [0, 16], sizes = [24, 8], strides = [1, 1]} : vector<24x32xbf16> to vector<24x8xbf16>
    %cst_114 = arith.constant dense<0.000000e+00> : vector<8x24xf32>
    %265 = tpu.matmul %263, %264, %cst_114 {dimension_numbers = #tpu.dot_dimension_numbers<[1], [1], [0], [0], [0, 0, 1, 0], [], []>} : vector<8x8xbf16>, vector<24x8xbf16>, vector<8x24xf32> -> vector<8x24xf32>
    %266 = vector.extract_strided_slice %213 {offsets = [0, 16], sizes = [8, 8], strides = [1, 1]} : vector<8x32xbf16> to vector<8x8xbf16>
    %267 = vector.extract_strided_slice %214 {offsets = [0, 16], sizes = [24, 8], strides = [1, 1]} : vector<24x32xbf16> to vector<24x8xbf16>
    %cst_115 = arith.constant dense<0.000000e+00> : vector<8x24xf32>
    %268 = tpu.matmul %266, %267, %cst_115 {dimension_numbers = #tpu.dot_dimension_numbers<[1], [1], [0], [0], [0, 0, 1, 0], [], []>} : vector<8x8xbf16>, vector<24x8xbf16>, vector<8x24xf32> -> vector<8x24xf32>
    %269 = arith.addf %265, %268 : vector<8x24xf32>
    %cst_116 = arith.constant 2.500000e-01 : f32
    %270 = vector.broadcast %cst_116 : f32 to vector<8x24xf32>
    %271 = arith.mulf %269, %270 : vector<8x24xf32>
    %272 = arith.addf %271, %210 : vector<8x24xf32>
    %273 = vector.extract_strided_slice %179 {offsets = [0, 16], sizes = [24, 8], strides = [1, 1]} : vector<24x32xbf16> to vector<24x8xbf16>
    %cst_117 = arith.constant dense<0xFF800000> : vector<8xf32>
    %274 = vector.multi_reduction <maximumf>, %272, %cst_117 [1] : vector<8x24xf32> to vector<8xf32>
    %275 = vector.shape_cast %274 : vector<8xf32> to vector<8x1xf32>
    %276 = vector.broadcast %275 : vector<8x1xf32> to vector<8x24xf32>
    %277 = arith.subf %272, %276 : vector<8x24xf32>
    %278 = math.exp %277 : vector<8x24xf32>
    %cst_118 = arith.constant dense<0.000000e+00> : vector<8xf32>
    %279 = vector.multi_reduction <add>, %278, %cst_118 [1] : vector<8x24xf32> to vector<8xf32>
    %280 = vector.shape_cast %279 : vector<8xf32> to vector<8x1xf32>
    %281 = arith.truncf %278 : vector<8x24xf32> to vector<8x24xbf16>
    %cst_119 = arith.constant dense<0.000000e+00> : vector<8x8xf32>
    %282 = tpu.matmul %281, %273, %cst_119 {dimension_numbers = #tpu.dot_dimension_numbers<[1], [0], [0], [1], [0, 0, 1, 1], [], []>} : vector<8x24xbf16>, vector<24x8xbf16>, vector<8x8xf32> -> vector<8x8xf32>
    %283 = tpu.reciprocal %280 {approx = true} : vector<8x1xf32> -> vector<8x1xf32>
    %284 = vector.broadcast %283 : vector<8x1xf32> to vector<8x8xf32>
    %285 = arith.mulf %282, %284 : vector<8x8xf32>
    %c0_120 = arith.constant 0 : index
    %c16_121 = arith.constant 16 : index
    %286 = vector.load %arg40[%c0_120, %c16_121] : memref<8x32xf32, #tpu.memory_space<vmem>>, vector<8x8xf32>
    tpu.vector_store %arg40[%c0_120, %c16_121], %285 {strides = array<i32>} : memref<8x32xf32, #tpu.memory_space<vmem>>, vector<8x8xf32>,
    %287 = vector.extract_strided_slice %211 {offsets = [0, 24], sizes = [8, 8], strides = [1, 1]} : vector<8x32xbf16> to vector<8x8xbf16>
    %288 = vector.extract_strided_slice %212 {offsets = [0, 24], sizes = [24, 8], strides = [1, 1]} : vector<24x32xbf16> to vector<24x8xbf16>
    %cst_122 = arith.constant dense<0.000000e+00> : vector<8x24xf32>
    %289 = tpu.matmul %287, %288, %cst_122 {dimension_numbers = #tpu.dot_dimension_numbers<[1], [1], [0], [0], [0, 0, 1, 0], [], []>} : vector<8x8xbf16>, vector<24x8xbf16>, vector<8x24xf32> -> vector<8x24xf32>
    %290 = vector.extract_strided_slice %213 {offsets = [0, 24], sizes = [8, 8], strides = [1, 1]} : vector<8x32xbf16> to vector<8x8xbf16>
    %291 = vector.extract_strided_slice %214 {offsets = [0, 24], sizes = [24, 8], strides = [1, 1]} : vector<24x32xbf16> to vector<24x8xbf16>
    %cst_123 = arith.constant dense<0.000000e+00> : vector<8x24xf32>
    %292 = tpu.matmul %290, %291, %cst_123 {dimension_numbers = #tpu.dot_dimension_numbers<[1], [1], [0], [0], [0, 0, 1, 0], [], []>} : vector<8x8xbf16>, vector<24x8xbf16>, vector<8x24xf32> -> vector<8x24xf32>
    %293 = arith.addf %289, %292 : vector<8x24xf32>
    %cst_124 = arith.constant 2.500000e-01 : f32
    %294 = vector.broadcast %cst_124 : f32 to vector<8x24xf32>
    %295 = arith.mulf %293, %294 : vector<8x24xf32>
    %296 = arith.addf %295, %210 : vector<8x24xf32>
    %297 = vector.extract_strided_slice %179 {offsets = [0, 24], sizes = [24, 8], strides = [1, 1]} : vector<24x32xbf16> to vector<24x8xbf16>
    %cst_125 = arith.constant dense<0xFF800000> : vector<8xf32>
    %298 = vector.multi_reduction <maximumf>, %296, %cst_125 [1] : vector<8x24xf32> to vector<8xf32>
    %299 = vector.shape_cast %298 : vector<8xf32> to vector<8x1xf32>
    %300 = vector.broadcast %299 : vector<8x1xf32> to vector<8x24xf32>
    %301 = arith.subf %296, %300 : vector<8x24xf32>
    %302 = math.exp %301 : vector<8x24xf32>
    %cst_126 = arith.constant dense<0.000000e+00> : vector<8xf32>
    %303 = vector.multi_reduction <add>, %302, %cst_126 [1] : vector<8x24xf32> to vector<8xf32>
    %304 = vector.shape_cast %303 : vector<8xf32> to vector<8x1xf32>
    %305 = arith.truncf %302 : vector<8x24xf32> to vector<8x24xbf16>
    %cst_127 = arith.constant dense<0.000000e+00> : vector<8x8xf32>
    %306 = tpu.matmul %305, %297, %cst_127 {dimension_numbers = #tpu.dot_dimension_numbers<[1], [0], [0], [1], [0, 0, 1, 1], [], []>} : vector<8x24xbf16>, vector<24x8xbf16>, vector<8x8xf32> -> vector<8x8xf32>
    %307 = tpu.reciprocal %304 {approx = true} : vector<8x1xf32> -> vector<8x1xf32>
    %308 = vector.broadcast %307 : vector<8x1xf32> to vector<8x8xf32>
    %309 = arith.mulf %306, %308 : vector<8x8xf32>
    %c0_128 = arith.constant 0 : index
    %c24_129 = arith.constant 24 : index
    %310 = vector.load %arg40[%c0_128, %c24_129] : memref<8x32xf32, #tpu.memory_space<vmem>>, vector<8x8xf32>
    tpu.vector_store %arg40[%c0_128, %c24_129], %309 {strides = array<i32>} : memref<8x32xf32, #tpu.memory_space<vmem>>, vector<8x8xf32>,
    %c0_130 = arith.constant 0 : index
    %c0_131 = arith.constant 0 : index
    %311 = vector.load %arg40[%c0_130, %c0_131] : memref<8x32xf32, #tpu.memory_space<vmem>>, vector<8x32xf32>
    %312 = arith.truncf %311 : vector<8x32xf32> to vector<8x32xbf16>
    %c0_132 = arith.constant 0 : index
    %c0_133 = arith.constant 0 : index
    %313 = vector.load %arg28[%c0_132, %c0_133] : memref<32x32xbf16, #tpu.memory_space<vmem>>, vector<32x32xbf16>
    %cst_134 = arith.constant dense<0.000000e+00> : vector<8x32xf32>
    %314 = tpu.matmul %312, %313, %cst_134 {dimension_numbers = #tpu.dot_dimension_numbers<[1], [0], [0], [1], [0, 0, 1, 1], [], []>} : vector<8x32xbf16>, vector<32x32xbf16>, vector<8x32xf32> -> vector<8x32xf32>
    %315 = arith.addf %138, %314 : vector<8x32xf32>
    %c0_135 = arith.constant 0 : index
    %c0_136 = arith.constant 0 : index
    %316 = vector.load %arg29[%c0_135, %c0_136] : memref<1x32xf32, #tpu.memory_space<vmem>>, vector<1x32xf32>
    %317 = vector.broadcast %316 : vector<1x32xf32> to vector<8x32xf32>
    %318 = arith.addf %315, %317 : vector<8x32xf32>
    %c0_137 = arith.constant 0 : index
    %c0_138 = arith.constant 0 : index
    %319 = vector.load %arg30[%c0_137, %c0_138] : memref<1x32xf32, #tpu.memory_space<vmem>>, vector<1x32xf32>
    %c0_139 = arith.constant 0 : index
    %c0_140 = arith.constant 0 : index
    %320 = vector.load %arg31[%c0_139, %c0_140] : memref<1x32xf32, #tpu.memory_space<vmem>>, vector<1x32xf32>
    %cst_141 = arith.constant dense<0.000000e+00> : vector<8xf32>
    %321 = vector.multi_reduction <add>, %318, %cst_141 [1] : vector<8x32xf32> to vector<8xf32>
    %322 = vector.shape_cast %321 : vector<8xf32> to vector<8x1xf32>
    %cst_142 = arith.constant 3.200000e+01 : f32
    %323 = vector.broadcast %cst_142 : f32 to vector<8x1xf32>
    %324 = arith.divf %322, %323 : vector<8x1xf32>
    %325 = vector.broadcast %324 : vector<8x1xf32> to vector<8x32xf32>
    %326 = arith.subf %318, %325 : vector<8x32xf32>
    %327 = vector.broadcast %324 : vector<8x1xf32> to vector<8x32xf32>
    %328 = arith.subf %318, %327 : vector<8x32xf32>
    %329 = arith.mulf %326, %328 : vector<8x32xf32>
    %cst_143 = arith.constant dense<0.000000e+00> : vector<8xf32>
    %330 = vector.multi_reduction <add>, %329, %cst_143 [1] : vector<8x32xf32> to vector<8xf32>
    %331 = vector.shape_cast %330 : vector<8xf32> to vector<8x1xf32>
    %cst_144 = arith.constant 3.200000e+01 : f32
    %332 = vector.broadcast %cst_144 : f32 to vector<8x1xf32>
    %333 = arith.divf %331, %332 : vector<8x1xf32>
    %334 = vector.broadcast %324 : vector<8x1xf32> to vector<8x32xf32>
    %335 = arith.subf %318, %334 : vector<8x32xf32>
    %cst_145 = arith.constant 9.99999974E-6 : f32
    %336 = vector.broadcast %cst_145 : f32 to vector<8x1xf32>
    %337 = arith.addf %333, %336 : vector<8x1xf32>
    %338 = math.rsqrt %337 : vector<8x1xf32>
    %339 = vector.broadcast %338 : vector<8x1xf32> to vector<8x32xf32>
    %340 = arith.mulf %335, %339 : vector<8x32xf32>
    %341 = vector.broadcast %319 : vector<1x32xf32> to vector<8x32xf32>
    %342 = arith.mulf %340, %341 : vector<8x32xf32>
    %343 = vector.broadcast %320 : vector<1x32xf32> to vector<8x32xf32>
    %344 = arith.addf %342, %343 : vector<8x32xf32>
    %345 = arith.truncf %344 : vector<8x32xf32> to vector<8x32xbf16>
    %c0_146 = arith.constant 0 : index
    %c0_147 = arith.constant 0 : index
    %346 = vector.load %arg32[%c0_146, %c0_147] : memref<32x64xbf16, #tpu.memory_space<vmem>>, vector<32x64xbf16>
    %cst_148 = arith.constant dense<0.000000e+00> : vector<8x64xf32>
    %347 = tpu.matmul %345, %346, %cst_148 {dimension_numbers = #tpu.dot_dimension_numbers<[1], [0], [0], [1], [0, 0, 1, 1], [], []>} : vector<8x32xbf16>, vector<32x64xbf16>, vector<8x64xf32> -> vector<8x64xf32>
    %c0_149 = arith.constant 0 : index
    %c0_150 = arith.constant 0 : index
    %348 = vector.load %arg33[%c0_149, %c0_150] : memref<1x64xf32, #tpu.memory_space<vmem>>, vector<1x64xf32>
    %349 = vector.broadcast %348 : vector<1x64xf32> to vector<8x64xf32>
    %350 = arith.addf %347, %349 : vector<8x64xf32>
    %cst_151 = arith.constant 0.000000e+00 : f32
    %351 = vector.broadcast %cst_151 : f32 to vector<8x64xf32>
    %352 = arith.maximumf %350, %351 : vector<8x64xf32>
    %353 = arith.truncf %352 : vector<8x64xf32> to vector<8x64xbf16>
    %c0_152 = arith.constant 0 : index
    %c0_153 = arith.constant 0 : index
    %354 = vector.load %arg34[%c0_152, %c0_153] : memref<64x32xbf16, #tpu.memory_space<vmem>>, vector<64x32xbf16>
    %cst_154 = arith.constant dense<0.000000e+00> : vector<8x32xf32>
    %355 = tpu.matmul %353, %354, %cst_154 {dimension_numbers = #tpu.dot_dimension_numbers<[1], [0], [0], [1], [0, 0, 1, 1], [], []>} : vector<8x64xbf16>, vector<64x32xbf16>, vector<8x32xf32> -> vector<8x32xf32>
    %356 = arith.addf %318, %355 : vector<8x32xf32>
    %c0_155 = arith.constant 0 : index
    %c0_156 = arith.constant 0 : index
    %357 = vector.load %arg35[%c0_155, %c0_156] : memref<1x32xf32, #tpu.memory_space<vmem>>, vector<1x32xf32>
    %358 = vector.broadcast %357 : vector<1x32xf32> to vector<8x32xf32>
    %359 = arith.addf %356, %358 : vector<8x32xf32>
    %c0_157 = arith.constant 0 : index
    %c0_158 = arith.constant 0 : index
    %360 = vector.load %arg38[%c0_157, %c0_158] : memref<8x32xf32, #tpu.memory_space<vmem>>, vector<8x32xf32>
    tpu.vector_store %arg38[%c0_157, %c0_158], %359 {strides = array<i32>} : memref<8x32xf32, #tpu.memory_space<vmem>>, vector<8x32xf32>,
    %c0_159 = arith.constant 0 : index
    %c0_160 = arith.constant 0 : index
    %361 = vector.load %arg36[%c0_159, %c0_160] : memref<1x32xf32, #tpu.memory_space<vmem>>, vector<1x32xf32>
    %c0_161 = arith.constant 0 : index
    %c0_162 = arith.constant 0 : index
    %362 = vector.load %arg37[%c0_161, %c0_162] : memref<1x32xf32, #tpu.memory_space<vmem>>, vector<1x32xf32>
    %cst_163 = arith.constant dense<0.000000e+00> : vector<8xf32>
    %363 = vector.multi_reduction <add>, %359, %cst_163 [1] : vector<8x32xf32> to vector<8xf32>
    %364 = vector.shape_cast %363 : vector<8xf32> to vector<8x1xf32>
    %cst_164 = arith.constant 3.200000e+01 : f32
    %365 = vector.broadcast %cst_164 : f32 to vector<8x1xf32>
    %366 = arith.divf %364, %365 : vector<8x1xf32>
    %367 = vector.broadcast %366 : vector<8x1xf32> to vector<8x32xf32>
    %368 = arith.subf %359, %367 : vector<8x32xf32>
    %369 = vector.broadcast %366 : vector<8x1xf32> to vector<8x32xf32>
    %370 = arith.subf %359, %369 : vector<8x32xf32>
    %371 = arith.mulf %368, %370 : vector<8x32xf32>
    %cst_165 = arith.constant dense<0.000000e+00> : vector<8xf32>
    %372 = vector.multi_reduction <add>, %371, %cst_165 [1] : vector<8x32xf32> to vector<8xf32>
    %373 = vector.shape_cast %372 : vector<8xf32> to vector<8x1xf32>
    %cst_166 = arith.constant 3.200000e+01 : f32
    %374 = vector.broadcast %cst_166 : f32 to vector<8x1xf32>
    %375 = arith.divf %373, %374 : vector<8x1xf32>
    %376 = vector.broadcast %366 : vector<8x1xf32> to vector<8x32xf32>
    %377 = arith.subf %359, %376 : vector<8x32xf32>
    %cst_167 = arith.constant 9.99999974E-6 : f32
    %378 = vector.broadcast %cst_167 : f32 to vector<8x1xf32>
    %379 = arith.addf %375, %378 : vector<8x1xf32>
    %380 = math.rsqrt %379 : vector<8x1xf32>
    %381 = vector.broadcast %380 : vector<8x1xf32> to vector<8x32xf32>
    %382 = arith.mulf %377, %381 : vector<8x32xf32>
    %383 = vector.broadcast %361 : vector<1x32xf32> to vector<8x32xf32>
    %384 = arith.mulf %382, %383 : vector<8x32xf32>
    %385 = vector.broadcast %362 : vector<1x32xf32> to vector<8x32xf32>
    %386 = arith.addf %384, %385 : vector<8x32xf32>
    %c0_168 = arith.constant 0 : index
    %c0_169 = arith.constant 0 : index
    %387 = vector.load %arg39[%c0_168, %c0_169] : memref<8x32xf32, #tpu.memory_space<vmem>>, vector<8x32xf32>
    tpu.vector_store %arg39[%c0_168, %c0_169], %386 {strides = array<i32>} : memref<8x32xf32, #tpu.memory_space<vmem>>, vector<8x32xf32>,
    return
  }
  func.func @transform_0(%arg0: i32, %arg1: memref<2x2xi32, #tpu.memory_space<smem>>) -> (i32, i32) {
    %c0_i32 = arith.constant 0 : i32
    %c0_i32_0 = arith.constant 0 : i32
    return %arg0, %c0_i32 : i32, i32
  }
  func.func @transform_1(%arg0: i32, %arg1: memref<2x2xi32, #tpu.memory_space<smem>>) -> (i32, i32) {
    %c0_i32 = arith.constant 0 : i32
    %c0_i32_0 = arith.constant 0 : i32
    return %arg0, %c0_i32 : i32, i32
  }
  func.func @transform_2(%arg0: i32, %arg1: memref<2x2xi32, #tpu.memory_space<smem>>) -> (i32, i32) {
    %c0_i32 = arith.constant 0 : i32
    %c0_i32_0 = arith.constant 0 : i32
    return %arg0, %c0_i32 : i32, i32
  }
  func.func @transform_3(%arg0: i32, %arg1: memref<2x2xi32, #tpu.memory_space<smem>>) -> (i32, i32) {
    %c0_i32 = arith.constant 0 : i32
    %c0_i32_0 = arith.constant 0 : i32
    %c0_i32_1 = arith.constant 0 : i32
    return %c0_i32, %c0_i32_0 : i32, i32
  }
  func.func @transform_4(%arg0: i32, %arg1: memref<2x2xi32, #tpu.memory_space<smem>>) -> (i32, i32) {
    %c0_i32 = arith.constant 0 : i32
    %c0_i32_0 = arith.constant 0 : i32
    %c0_i32_1 = arith.constant 0 : i32
    return %c0_i32, %c0_i32_0 : i32, i32
  }
  func.func @transform_5(%arg0: i32, %arg1: memref<2x2xi32, #tpu.memory_space<smem>>) -> (i32, i32) {
    %c0_i32 = arith.constant 0 : i32
    %c0_i32_0 = arith.constant 0 : i32
    %c0_i32_1 = arith.constant 0 : i32
    return %c0_i32, %c0_i32_0 : i32, i32
  }
  func.func @transform_6(%arg0: i32, %arg1: memref<2x2xi32, #tpu.memory_space<smem>>) -> (i32, i32) {
    %c0_i32 = arith.constant 0 : i32
    %c0_i32_0 = arith.constant 0 : i32
    %c0_i32_1 = arith.constant 0 : i32
    return %c0_i32, %c0_i32_0 : i32, i32
  }
  func.func @transform_7(%arg0: i32, %arg1: memref<2x2xi32, #tpu.memory_space<smem>>) -> (i32, i32) {
    %c0_i32 = arith.constant 0 : i32
    %c0_i32_0 = arith.constant 0 : i32
    %c0_i32_1 = arith.constant 0 : i32
    return %c0_i32, %c0_i32_0 : i32, i32
  }
  func.func @transform_8(%arg0: i32, %arg1: memref<2x2xi32, #tpu.memory_space<smem>>) -> (i32, i32) {
    %c0_i32 = arith.constant 0 : i32
    %c0_i32_0 = arith.constant 0 : i32
    %c0_i32_1 = arith.constant 0 : i32
    return %c0_i32, %c0_i32_0 : i32, i32
  }
  func.func @transform_9(%arg0: i32, %arg1: memref<2x2xi32, #tpu.memory_space<smem>>) -> (i32, i32) {
    %c0_i32 = arith.constant 0 : i32
    %c0_i32_0 = arith.constant 0 : i32
    %c0_i32_1 = arith.constant 0 : i32
    return %c0_i32, %c0_i32_0 : i32, i32
  }
  func.func @transform_10(%arg0: i32, %arg1: memref<2x2xi32, #tpu.memory_space<smem>>) -> (i32, i32) {
    %c0_i32 = arith.constant 0 : i32
    %c0_i32_0 = arith.constant 0 : i32
    %c0_i32_1 = arith.constant 0 : i32
    return %c0_i32, %c0_i32_0 : i32, i32
  }
  func.func @transform_11(%arg0: i32, %arg1: memref<2x2xi32, #tpu.memory_space<smem>>) -> (i32, i32) {
    %c0_i32 = arith.constant 0 : i32
    %c0_i32_0 = arith.constant 0 : i32
    %c0_i32_1 = arith.constant 0 : i32
    return %c0_i32, %c0_i32_0 : i32, i32
  }
  func.func @transform_12(%arg0: i32, %arg1: memref<2x2xi32, #tpu.memory_space<smem>>) -> (i32, i32) {
    %c0_i32 = arith.constant 0 : i32
    %c0_i32_0 = arith.constant 0 : i32
    %c0_i32_1 = arith.constant 0 : i32
    return %c0_i32, %c0_i32_0 : i32, i32
  }
  func.func @transform_13(%arg0: i32, %arg1: memref<2x2xi32, #tpu.memory_space<smem>>) -> (i32, i32) {
    %c0_i32 = arith.constant 0 : i32
    %c0_i32_0 = arith.constant 0 : i32
    %c0_i32_1 = arith.constant 0 : i32
    return %c0_i32, %c0_i32_0 : i32, i32
  }
  func.func @transform_14(%arg0: i32, %arg1: memref<2x2xi32, #tpu.memory_space<smem>>) -> (i32, i32) {
    %c0_i32 = arith.constant 0 : i32
    %c0_i32_0 = arith.constant 0 : i32
    %c0_i32_1 = arith.constant 0 : i32
    return %c0_i32, %c0_i32_0 : i32, i32
  }
  func.func @transform_15(%arg0: i32, %arg1: memref<2x2xi32, #tpu.memory_space<smem>>) -> (i32, i32) {
    %c0_i32 = arith.constant 0 : i32
    %c0_i32_0 = arith.constant 0 : i32
    %c0_i32_1 = arith.constant 0 : i32
    return %c0_i32, %c0_i32_0 : i32, i32
  }
  func.func @transform_16(%arg0: i32, %arg1: memref<2x2xi32, #tpu.memory_space<smem>>) -> (i32, i32) {
    %c0_i32 = arith.constant 0 : i32
    %c0_i32_0 = arith.constant 0 : i32
    %c0_i32_1 = arith.constant 0 : i32
    return %c0_i32, %c0_i32_0 : i32, i32
  }
  func.func @transform_17(%arg0: i32, %arg1: memref<2x2xi32, #tpu.memory_space<smem>>) -> (i32, i32) {
    %c0_i32 = arith.constant 0 : i32
    %c0_i32_0 = arith.constant 0 : i32
    %c0_i32_1 = arith.constant 0 : i32
    return %c0_i32, %c0_i32_0 : i32, i32
  }
  func.func @transform_18(%arg0: i32, %arg1: memref<2x2xi32, #tpu.memory_space<smem>>) -> (i32, i32) {
    %c0_i32 = arith.constant 0 : i32
    %c0_i32_0 = arith.constant 0 : i32
    %c0_i32_1 = arith.constant 0 : i32
    return %c0_i32, %c0_i32_0 : i32, i32
  }
  func.func @transform_19(%arg0: i32, %arg1: memref<2x2xi32, #tpu.memory_space<smem>>) -> (i32, i32) {
    %c0_i32 = arith.constant 0 : i32
    %c0_i32_0 = arith.constant 0 : i32
    %c0_i32_1 = arith.constant 0 : i32
    return %c0_i32, %c0_i32_0 : i32, i32
  }
  func.func @transform_20(%arg0: i32, %arg1: memref<2x2xi32, #tpu.memory_space<smem>>) -> (i32, i32) {
    %c0_i32 = arith.constant 0 : i32
    %c0_i32_0 = arith.constant 0 : i32
    %c0_i32_1 = arith.constant 0 : i32
    return %c0_i32, %c0_i32_0 : i32, i32
  }
  func.func @transform_21(%arg0: i32, %arg1: memref<2x2xi32, #tpu.memory_space<smem>>) -> (i32, i32) {
    %c0_i32 = arith.constant 0 : i32
    %c0_i32_0 = arith.constant 0 : i32
    %c0_i32_1 = arith.constant 0 : i32
    return %c0_i32, %c0_i32_0 : i32, i32
  }
  func.func @transform_22(%arg0: i32, %arg1: memref<2x2xi32, #tpu.memory_space<smem>>) -> (i32, i32) {
    %c0_i32 = arith.constant 0 : i32
    %c0_i32_0 = arith.constant 0 : i32
    %c0_i32_1 = arith.constant 0 : i32
    return %c0_i32, %c0_i32_0 : i32, i32
  }
  func.func @transform_23(%arg0: i32, %arg1: memref<2x2xi32, #tpu.memory_space<smem>>) -> (i32, i32) {
    %c0_i32 = arith.constant 0 : i32
    %c0_i32_0 = arith.constant 0 : i32
    %c0_i32_1 = arith.constant 0 : i32
    return %c0_i32, %c0_i32_0 : i32, i32
  }
  func.func @transform_24(%arg0: i32, %arg1: memref<2x2xi32, #tpu.memory_space<smem>>) -> (i32, i32) {
    %c0_i32 = arith.constant 0 : i32
    %c0_i32_0 = arith.constant 0 : i32
    %c0_i32_1 = arith.constant 0 : i32
    return %c0_i32, %c0_i32_0 : i32, i32
  }
  func.func @transform_25(%arg0: i32, %arg1: memref<2x2xi32, #tpu.memory_space<smem>>) -> (i32, i32) {
    %c0_i32 = arith.constant 0 : i32
    %c0_i32_0 = arith.constant 0 : i32
    %c0_i32_1 = arith.constant 0 : i32
    return %c0_i32, %c0_i32_0 : i32, i32
  }
  func.func @transform_26(%arg0: i32, %arg1: memref<2x2xi32, #tpu.memory_space<smem>>) -> (i32, i32) {
    %c0_i32 = arith.constant 0 : i32
    %c0_i32_0 = arith.constant 0 : i32
    %c0_i32_1 = arith.constant 0 : i32
    return %c0_i32, %c0_i32_0 : i32, i32
  }
  func.func @transform_27(%arg0: i32, %arg1: memref<2x2xi32, #tpu.memory_space<smem>>) -> (i32, i32) {
    %c0_i32 = arith.constant 0 : i32
    %c0_i32_0 = arith.constant 0 : i32
    %c0_i32_1 = arith.constant 0 : i32
    return %c0_i32, %c0_i32_0 : i32, i32
  }
  func.func @transform_28(%arg0: i32, %arg1: memref<2x2xi32, #tpu.memory_space<smem>>) -> (i32, i32) {
    %c0_i32 = arith.constant 0 : i32
    %c0_i32_0 = arith.constant 0 : i32
    %c0_i32_1 = arith.constant 0 : i32
    return %c0_i32, %c0_i32_0 : i32, i32
  }
  func.func @transform_29(%arg0: i32, %arg1: memref<2x2xi32, #tpu.memory_space<smem>>) -> (i32, i32) {
    %c0_i32 = arith.constant 0 : i32
    %c0_i32_0 = arith.constant 0 : i32
    %c0_i32_1 = arith.constant 0 : i32
    return %c0_i32, %c0_i32_0 : i32, i32
  }
  func.func @transform_30(%arg0: i32, %arg1: memref<2x2xi32, #tpu.memory_space<smem>>) -> (i32, i32) {
    %c0_i32 = arith.constant 0 : i32
    %c0_i32_0 = arith.constant 0 : i32
    %c0_i32_1 = arith.constant 0 : i32
    return %c0_i32, %c0_i32_0 : i32, i32
  }
  func.func @transform_31(%arg0: i32, %arg1: memref<2x2xi32, #tpu.memory_space<smem>>) -> (i32, i32) {
    %c0_i32 = arith.constant 0 : i32
    %c0_i32_0 = arith.constant 0 : i32
    %c0_i32_1 = arith.constant 0 : i32
    return %c0_i32, %c0_i32_0 : i32, i32
  }
  func.func @transform_32(%arg0: i32, %arg1: memref<2x2xi32, #tpu.memory_space<smem>>) -> (i32, i32) {
    %c0_i32 = arith.constant 0 : i32
    %c0_i32_0 = arith.constant 0 : i32
    %c0_i32_1 = arith.constant 0 : i32
    return %c0_i32, %c0_i32_0 : i32, i32
  }
  func.func @transform_33(%arg0: i32, %arg1: memref<2x2xi32, #tpu.memory_space<smem>>) -> (i32, i32) {
    %c0_i32 = arith.constant 0 : i32
    %c0_i32_0 = arith.constant 0 : i32
    %c0_i32_1 = arith.constant 0 : i32
    return %c0_i32, %c0_i32_0 : i32, i32
  }
  func.func @transform_34(%arg0: i32, %arg1: memref<2x2xi32, #tpu.memory_space<smem>>) -> (i32, i32) {
    %c0_i32 = arith.constant 0 : i32
    %c0_i32_0 = arith.constant 0 : i32
    %c0_i32_1 = arith.constant 0 : i32
    return %c0_i32, %c0_i32_0 : i32, i32
  }
  func.func @transform_35(%arg0: i32, %arg1: memref<2x2xi32, #tpu.memory_space<smem>>) -> (i32, i32) {
    %c0_i32 = arith.constant 0 : i32
    %c0_i32_0 = arith.constant 0 : i32
    %c0_i32_1 = arith.constant 0 : i32
    return %c0_i32, %c0_i32_0 : i32, i32
  }
  func.func @transform_36(%arg0: i32, %arg1: memref<2x2xi32, #tpu.memory_space<smem>>) -> (i32, i32) {
    %c0_i32 = arith.constant 0 : i32
    %c0_i32_0 = arith.constant 0 : i32
    return %arg0, %c0_i32 : i32, i32
  }
  func.func @transform_37(%arg0: i32, %arg1: memref<2x2xi32, #tpu.memory_space<smem>>) -> (i32, i32) {
    %c0_i32 = arith.constant 0 : i32
    %c0_i32_0 = arith.constant 0 : i32
    return %arg0, %c0_i32 : i32, i32
  }
}

module attributes {stable_mosaic.version = 11 : i64} {
  func.func @_decoder_layer_kernel(%arg0: i32, %arg1: memref<2x2xi32, #tpu.memory_space<smem>>, %arg2: memref<8x32xf32, #tpu.memory_space<vmem>>, %arg3: memref<8x32xbf16, #tpu.memory_space<vmem>>, %arg4: memref<8x32xbf16, #tpu.memory_space<vmem>>, %arg5: memref<8x8xf32, #tpu.memory_space<vmem>>, %arg6: memref<24x32xbf16, #tpu.memory_space<vmem>>, %arg7: memref<24x32xbf16, #tpu.memory_space<vmem>>, %arg8: memref<1x32xf32, #tpu.memory_space<vmem>>, %arg9: memref<1x32xf32, #tpu.memory_space<vmem>>, %arg10: memref<32x96xbf16, #tpu.memory_space<vmem>>, %arg11: memref<1x96xf32, #tpu.memory_space<vmem>>, %arg12: memref<32x64xbf16, #tpu.memory_space<vmem>>, %arg13: memref<1x64xf32, #tpu.memory_space<vmem>>, %arg14: memref<32x32xbf16, #tpu.memory_space<vmem>>, %arg15: memref<1x32xf32, #tpu.memory_space<vmem>>, %arg16: memref<1x32xf32, #tpu.memory_space<vmem>>, %arg17: memref<1x32xf32, #tpu.memory_space<vmem>>, %arg18: memref<32x32xbf16, #tpu.memory_space<vmem>>, %arg19: memref<1x32xf32, #tpu.memory_space<vmem>>, %arg20: memref<32x64xbf16, #tpu.memory_space<vmem>>, %arg21: memref<1x64xf32, #tpu.memory_space<vmem>>, %arg22: memref<32x32xbf16, #tpu.memory_space<vmem>>, %arg23: memref<1x32xf32, #tpu.memory_space<vmem>>, %arg24: memref<32x32xbf16, #tpu.memory_space<vmem>>, %arg25: memref<1x32xf32, #tpu.memory_space<vmem>>, %arg26: memref<32x32xbf16, #tpu.memory_space<vmem>>, %arg27: memref<1x32xf32, #tpu.memory_space<vmem>>, %arg28: memref<1x32xf32, #tpu.memory_space<vmem>>, %arg29: memref<1x32xf32, #tpu.memory_space<vmem>>, %arg30: memref<32x64xbf16, #tpu.memory_space<vmem>>, %arg31: memref<1x64xf32, #tpu.memory_space<vmem>>, %arg32: memref<64x32xbf16, #tpu.memory_space<vmem>>, %arg33: memref<1x32xf32, #tpu.memory_space<vmem>>, %arg34: memref<1x32xf32, #tpu.memory_space<vmem>>, %arg35: memref<1x32xf32, #tpu.memory_space<vmem>>, %arg36: memref<8x32xf32, #tpu.memory_space<vmem>>, %arg37: memref<8x32xf32, #tpu.memory_space<vmem>>, %arg38: memref<8x32xf32, #tpu.memory_space<vmem>>) attributes {dimension_semantics = [#tpu.dimension_semantics<parallel>], iteration_bounds = array<i64: 2>, scalar_prefetch = 1 : i64, scratch_operands = 1 : i64, tpu.core_type = #tpu.core_type<tc>, window_params = [{transform_indices = @transform_0, window_bounds = array<i64: 8, 32>}, {transform_indices = @transform_1, window_bounds = array<i64: 8, 32>}, {transform_indices = @transform_2, window_bounds = array<i64: 8, 32>}, {pipeline_mode = #tpu.pipeline_mode<synchronous>, transform_indices = @transform_3, window_bounds = array<i64: 8, 8>}, {pipeline_mode = #tpu.pipeline_mode<synchronous>, transform_indices = @transform_4, window_bounds = array<i64: 24, 32>}, {pipeline_mode = #tpu.pipeline_mode<synchronous>, transform_indices = @transform_5, window_bounds = array<i64: 24, 32>}, {pipeline_mode = #tpu.pipeline_mode<synchronous>, transform_indices = @transform_6, window_bounds = array<i64: 1, 32>}, {pipeline_mode = #tpu.pipeline_mode<synchronous>, transform_indices = @transform_7, window_bounds = array<i64: 1, 32>}, {pipeline_mode = #tpu.pipeline_mode<synchronous>, transform_indices = @transform_8, window_bounds = array<i64: 32, 96>}, {pipeline_mode = #tpu.pipeline_mode<synchronous>, transform_indices = @transform_9, window_bounds = array<i64: 1, 96>}, {pipeline_mode = #tpu.pipeline_mode<synchronous>, transform_indices = @transform_10, window_bounds = array<i64: 32, 64>}, {pipeline_mode = #tpu.pipeline_mode<synchronous>, transform_indices = @transform_11, window_bounds = array<i64: 1, 64>}, {pipeline_mode = #tpu.pipeline_mode<synchronous>, transform_indices = @transform_12, window_bounds = array<i64: 32, 32>}, {pipeline_mode = #tpu.pipeline_mode<synchronous>, transform_indices = @transform_13, window_bounds = array<i64: 1, 32>}, {pipeline_mode = #tpu.pipeline_mode<synchronous>, transform_indices = @transform_14, window_bounds = array<i64: 1, 32>}, {pipeline_mode = #tpu.pipeline_mode<synchronous>, transform_indices = @transform_15, window_bounds = array<i64: 1, 32>}, {pipeline_mode = #tpu.pipeline_mode<synchronous>, transform_indices = @transform_16, window_bounds = array<i64: 32, 32>}, {pipeline_mode = #tpu.pipeline_mode<synchronous>, transform_indices = @transform_17, window_bounds = array<i64: 1, 32>}, {pipeline_mode = #tpu.pipeline_mode<synchronous>, transform_indices = @transform_18, window_bounds = array<i64: 32, 64>}, {pipeline_mode = #tpu.pipeline_mode<synchronous>, transform_indices = @transform_19, window_bounds = array<i64: 1, 64>}, {pipeline_mode = #tpu.pipeline_mode<synchronous>, transform_indices = @transform_20, window_bounds = array<i64: 32, 32>}, {pipeline_mode = #tpu.pipeline_mode<synchronous>, transform_indices = @transform_21, window_bounds = array<i64: 1, 32>}, {pipeline_mode = #tpu.pipeline_mode<synchronous>, transform_indices = @transform_22, window_bounds = array<i64: 32, 32>}, {pipeline_mode = #tpu.pipeline_mode<synchronous>, transform_indices = @transform_23, window_bounds = array<i64: 1, 32>}, {pipeline_mode = #tpu.pipeline_mode<synchronous>, transform_indices = @transform_24, window_bounds = array<i64: 32, 32>}, {pipeline_mode = #tpu.pipeline_mode<synchronous>, transform_indices = @transform_25, window_bounds = array<i64: 1, 32>}, {pipeline_mode = #tpu.pipeline_mode<synchronous>, transform_indices = @transform_26, window_bounds = array<i64: 1, 32>}, {pipeline_mode = #tpu.pipeline_mode<synchronous>, transform_indices = @transform_27, window_bounds = array<i64: 1, 32>}, {pipeline_mode = #tpu.pipeline_mode<synchronous>, transform_indices = @transform_28, window_bounds = array<i64: 32, 64>}, {pipeline_mode = #tpu.pipeline_mode<synchronous>, transform_indices = @transform_29, window_bounds = array<i64: 1, 64>}, {pipeline_mode = #tpu.pipeline_mode<synchronous>, transform_indices = @transform_30, window_bounds = array<i64: 64, 32>}, {pipeline_mode = #tpu.pipeline_mode<synchronous>, transform_indices = @transform_31, window_bounds = array<i64: 1, 32>}, {pipeline_mode = #tpu.pipeline_mode<synchronous>, transform_indices = @transform_32, window_bounds = array<i64: 1, 32>}, {pipeline_mode = #tpu.pipeline_mode<synchronous>, transform_indices = @transform_33, window_bounds = array<i64: 1, 32>}, {transform_indices = @transform_34, window_bounds = array<i64: 8, 32>}, {transform_indices = @transform_35, window_bounds = array<i64: 8, 32>}]} {
    %c0 = arith.constant 0 : index
    %c0_0 = arith.constant 0 : index
    %0 = vector.load %arg2[%c0, %c0_0] : memref<8x32xf32, #tpu.memory_space<vmem>>, vector<8x32xf32>
    %c0_1 = arith.constant 0 : index
    %c0_2 = arith.constant 0 : index
    %1 = vector.load %arg3[%c0_1, %c0_2] : memref<8x32xbf16, #tpu.memory_space<vmem>>, vector<8x32xbf16>
    %c0_3 = arith.constant 0 : index
    %c0_4 = arith.constant 0 : index
    %2 = vector.load %arg4[%c0_3, %c0_4] : memref<8x32xbf16, #tpu.memory_space<vmem>>, vector<8x32xbf16>
    %c0_5 = arith.constant 0 : index
    %c0_6 = arith.constant 0 : index
    %3 = vector.load %arg8[%c0_5, %c0_6] : memref<1x32xf32, #tpu.memory_space<vmem>>, vector<1x32xf32>
    %c0_7 = arith.constant 0 : index
    %c0_8 = arith.constant 0 : index
    %4 = vector.load %arg9[%c0_7, %c0_8] : memref<1x32xf32, #tpu.memory_space<vmem>>, vector<1x32xf32>
    %cst = arith.constant dense<0.000000e+00> : vector<8xf32>
    %5 = vector.multi_reduction <add>, %0, %cst [1] : vector<8x32xf32> to vector<8xf32>
    %6 = vector.shape_cast %5 : vector<8xf32> to vector<8x1xf32>
    %cst_9 = arith.constant 3.200000e+01 : f32
    %7 = vector.broadcast %cst_9 : f32 to vector<8x1xf32>
    %8 = arith.divf %6, %7 : vector<8x1xf32>
    %9 = vector.broadcast %8 : vector<8x1xf32> to vector<8x32xf32>
    %10 = arith.subf %0, %9 : vector<8x32xf32>
    %11 = vector.broadcast %8 : vector<8x1xf32> to vector<8x32xf32>
    %12 = arith.subf %0, %11 : vector<8x32xf32>
    %13 = arith.mulf %10, %12 : vector<8x32xf32>
    %cst_10 = arith.constant dense<0.000000e+00> : vector<8xf32>
    %14 = vector.multi_reduction <add>, %13, %cst_10 [1] : vector<8x32xf32> to vector<8xf32>
    %15 = vector.shape_cast %14 : vector<8xf32> to vector<8x1xf32>
    %cst_11 = arith.constant 3.200000e+01 : f32
    %16 = vector.broadcast %cst_11 : f32 to vector<8x1xf32>
    %17 = arith.divf %15, %16 : vector<8x1xf32>
    %18 = vector.broadcast %8 : vector<8x1xf32> to vector<8x32xf32>
    %19 = arith.subf %0, %18 : vector<8x32xf32>
    %cst_12 = arith.constant 9.99999974E-6 : f32
    %20 = vector.broadcast %cst_12 : f32 to vector<8x1xf32>
    %21 = arith.addf %17, %20 : vector<8x1xf32>
    %22 = math.rsqrt %21 : vector<8x1xf32>
    %23 = vector.broadcast %22 : vector<8x1xf32> to vector<8x32xf32>
    %24 = arith.mulf %19, %23 : vector<8x32xf32>
    %25 = vector.broadcast %3 : vector<1x32xf32> to vector<8x32xf32>
    %26 = arith.mulf %24, %25 : vector<8x32xf32>
    %27 = vector.broadcast %4 : vector<1x32xf32> to vector<8x32xf32>
    %28 = arith.addf %26, %27 : vector<8x32xf32>
    %29 = arith.truncf %28 : vector<8x32xf32> to vector<8x32xbf16>
    %c0_13 = arith.constant 0 : index
    %c0_14 = arith.constant 0 : index
    %30 = vector.load %arg10[%c0_13, %c0_14] : memref<32x96xbf16, #tpu.memory_space<vmem>>, vector<32x96xbf16>
    %cst_15 = arith.constant dense<0.000000e+00> : vector<8x96xf32>
    %31 = tpu.matmul %29, %30, %cst_15 {dimension_numbers = #tpu.dot_dimension_numbers<[1], [0], [0], [1], [0, 0, 1, 1], [], []>} : vector<8x32xbf16>, vector<32x96xbf16>, vector<8x96xf32> -> vector<8x96xf32>
    %c0_16 = arith.constant 0 : index
    %c0_17 = arith.constant 0 : index
    %32 = vector.load %arg11[%c0_16, %c0_17] : memref<1x96xf32, #tpu.memory_space<vmem>>, vector<1x96xf32>
    %33 = vector.broadcast %32 : vector<1x96xf32> to vector<8x96xf32>
    %34 = arith.addf %31, %33 : vector<8x96xf32>
    %c0_18 = arith.constant 0 : index
    %c0_19 = arith.constant 0 : index
    %35 = vector.load %arg12[%c0_18, %c0_19] : memref<32x64xbf16, #tpu.memory_space<vmem>>, vector<32x64xbf16>
    %cst_20 = arith.constant dense<0.000000e+00> : vector<8x64xf32>
    %36 = tpu.matmul %1, %35, %cst_20 {dimension_numbers = #tpu.dot_dimension_numbers<[1], [0], [0], [1], [0, 0, 1, 1], [], []>} : vector<8x32xbf16>, vector<32x64xbf16>, vector<8x64xf32> -> vector<8x64xf32>
    %c0_21 = arith.constant 0 : index
    %c0_22 = arith.constant 0 : index
    %37 = vector.load %arg13[%c0_21, %c0_22] : memref<1x64xf32, #tpu.memory_space<vmem>>, vector<1x64xf32>
    %38 = vector.broadcast %37 : vector<1x64xf32> to vector<8x64xf32>
    %39 = arith.addf %36, %38 : vector<8x64xf32>
    %40 = vector.extract_strided_slice %34 {offsets = [0, 0], sizes = [8, 32], strides = [1, 1]} : vector<8x96xf32> to vector<8x32xf32>
    %41 = vector.extract_strided_slice %39 {offsets = [0, 0], sizes = [8, 32], strides = [1, 1]} : vector<8x64xf32> to vector<8x32xf32>
    %42 = arith.addf %40, %41 : vector<8x32xf32>
    %43 = arith.truncf %42 : vector<8x32xf32> to vector<8x32xbf16>
    %44 = vector.extract_strided_slice %34 {offsets = [0, 32], sizes = [8, 32], strides = [1, 1]} : vector<8x96xf32> to vector<8x32xf32>
    %45 = vector.extract_strided_slice %39 {offsets = [0, 32], sizes = [8, 32], strides = [1, 1]} : vector<8x64xf32> to vector<8x32xf32>
    %46 = arith.addf %44, %45 : vector<8x32xf32>
    %47 = arith.truncf %46 : vector<8x32xf32> to vector<8x32xbf16>
    %48 = vector.extract_strided_slice %34 {offsets = [0, 64], sizes = [8, 32], strides = [1, 1]} : vector<8x96xf32> to vector<8x32xf32>
    %49 = arith.truncf %48 : vector<8x32xf32> to vector<8x32xbf16>
    %c0_23 = arith.constant 0 : index
    %c0_24 = arith.constant 0 : index
    %50 = vector.load %arg5[%c0_23, %c0_24] : memref<8x8xf32, #tpu.memory_space<vmem>>, vector<8x8xf32>
    %51 = vector.extract_strided_slice %43 {offsets = [0, 0], sizes = [8, 8], strides = [1, 1]} : vector<8x32xbf16> to vector<8x8xbf16>
    %52 = vector.extract_strided_slice %47 {offsets = [0, 0], sizes = [8, 8], strides = [1, 1]} : vector<8x32xbf16> to vector<8x8xbf16>
    %cst_25 = arith.constant dense<0.000000e+00> : vector<8x8xf32>
    %53 = tpu.matmul %51, %52, %cst_25 {dimension_numbers = #tpu.dot_dimension_numbers<[1], [1], [0], [0], [0, 0, 1, 0], [], []>} : vector<8x8xbf16>, vector<8x8xbf16>, vector<8x8xf32> -> vector<8x8xf32>
    %cst_26 = arith.constant 0.353553385 : f32
    %54 = vector.broadcast %cst_26 : f32 to vector<8x8xf32>
    %55 = arith.mulf %53, %54 : vector<8x8xf32>
    %56 = arith.addf %55, %50 : vector<8x8xf32>
    %57 = vector.extract_strided_slice %49 {offsets = [0, 0], sizes = [8, 8], strides = [1, 1]} : vector<8x32xbf16> to vector<8x8xbf16>
    %cst_27 = arith.constant dense<0xFF800000> : vector<8xf32>
    %58 = vector.multi_reduction <maximumf>, %56, %cst_27 [1] : vector<8x8xf32> to vector<8xf32>
    %59 = vector.shape_cast %58 : vector<8xf32> to vector<8x1xf32>
    %60 = vector.broadcast %59 : vector<8x1xf32> to vector<8x8xf32>
    %61 = arith.subf %56, %60 : vector<8x8xf32>
    %62 = math.exp %61 : vector<8x8xf32>
    %cst_28 = arith.constant dense<0.000000e+00> : vector<8xf32>
    %63 = vector.multi_reduction <add>, %62, %cst_28 [1] : vector<8x8xf32> to vector<8xf32>
    %64 = vector.shape_cast %63 : vector<8xf32> to vector<8x1xf32>
    %65 = arith.truncf %62 : vector<8x8xf32> to vector<8x8xbf16>
    %cst_29 = arith.constant dense<0.000000e+00> : vector<8x8xf32>
    %66 = tpu.matmul %65, %57, %cst_29 {dimension_numbers = #tpu.dot_dimension_numbers<[1], [0], [0], [1], [0, 0, 1, 1], [], []>} : vector<8x8xbf16>, vector<8x8xbf16>, vector<8x8xf32> -> vector<8x8xf32>
    %67 = tpu.reciprocal %64 {approx = true} : vector<8x1xf32> -> vector<8x1xf32>
    %68 = vector.broadcast %67 : vector<8x1xf32> to vector<8x8xf32>
    %69 = arith.mulf %66, %68 : vector<8x8xf32>
    %c0_30 = arith.constant 0 : index
    %c0_31 = arith.constant 0 : index
    %70 = vector.load %arg38[%c0_30, %c0_31] : memref<8x32xf32, #tpu.memory_space<vmem>>, vector<8x8xf32>
    tpu.vector_store %arg38[%c0_30, %c0_31], %69 {strides = array<i32>} : memref<8x32xf32, #tpu.memory_space<vmem>>, vector<8x8xf32>,
    %71 = vector.extract_strided_slice %43 {offsets = [0, 8], sizes = [8, 8], strides = [1, 1]} : vector<8x32xbf16> to vector<8x8xbf16>
    %72 = vector.extract_strided_slice %47 {offsets = [0, 8], sizes = [8, 8], strides = [1, 1]} : vector<8x32xbf16> to vector<8x8xbf16>
    %cst_32 = arith.constant dense<0.000000e+00> : vector<8x8xf32>
    %73 = tpu.matmul %71, %72, %cst_32 {dimension_numbers = #tpu.dot_dimension_numbers<[1], [1], [0], [0], [0, 0, 1, 0], [], []>} : vector<8x8xbf16>, vector<8x8xbf16>, vector<8x8xf32> -> vector<8x8xf32>
    %cst_33 = arith.constant 0.353553385 : f32
    %74 = vector.broadcast %cst_33 : f32 to vector<8x8xf32>
    %75 = arith.mulf %73, %74 : vector<8x8xf32>
    %76 = arith.addf %75, %50 : vector<8x8xf32>
    %77 = vector.extract_strided_slice %49 {offsets = [0, 8], sizes = [8, 8], strides = [1, 1]} : vector<8x32xbf16> to vector<8x8xbf16>
    %cst_34 = arith.constant dense<0xFF800000> : vector<8xf32>
    %78 = vector.multi_reduction <maximumf>, %76, %cst_34 [1] : vector<8x8xf32> to vector<8xf32>
    %79 = vector.shape_cast %78 : vector<8xf32> to vector<8x1xf32>
    %80 = vector.broadcast %79 : vector<8x1xf32> to vector<8x8xf32>
    %81 = arith.subf %76, %80 : vector<8x8xf32>
    %82 = math.exp %81 : vector<8x8xf32>
    %cst_35 = arith.constant dense<0.000000e+00> : vector<8xf32>
    %83 = vector.multi_reduction <add>, %82, %cst_35 [1] : vector<8x8xf32> to vector<8xf32>
    %84 = vector.shape_cast %83 : vector<8xf32> to vector<8x1xf32>
    %85 = arith.truncf %82 : vector<8x8xf32> to vector<8x8xbf16>
    %cst_36 = arith.constant dense<0.000000e+00> : vector<8x8xf32>
    %86 = tpu.matmul %85, %77, %cst_36 {dimension_numbers = #tpu.dot_dimension_numbers<[1], [0], [0], [1], [0, 0, 1, 1], [], []>} : vector<8x8xbf16>, vector<8x8xbf16>, vector<8x8xf32> -> vector<8x8xf32>
    %87 = tpu.reciprocal %84 {approx = true} : vector<8x1xf32> -> vector<8x1xf32>
    %88 = vector.broadcast %87 : vector<8x1xf32> to vector<8x8xf32>
    %89 = arith.mulf %86, %88 : vector<8x8xf32>
    %c0_37 = arith.constant 0 : index
    %c8 = arith.constant 8 : index
    %90 = vector.load %arg38[%c0_37, %c8] : memref<8x32xf32, #tpu.memory_space<vmem>>, vector<8x8xf32>
    tpu.vector_store %arg38[%c0_37, %c8], %89 {strides = array<i32>} : memref<8x32xf32, #tpu.memory_space<vmem>>, vector<8x8xf32>,
    %91 = vector.extract_strided_slice %43 {offsets = [0, 16], sizes = [8, 8], strides = [1, 1]} : vector<8x32xbf16> to vector<8x8xbf16>
    %92 = vector.extract_strided_slice %47 {offsets = [0, 16], sizes = [8, 8], strides = [1, 1]} : vector<8x32xbf16> to vector<8x8xbf16>
    %cst_38 = arith.constant dense<0.000000e+00> : vector<8x8xf32>
    %93 = tpu.matmul %91, %92, %cst_38 {dimension_numbers = #tpu.dot_dimension_numbers<[1], [1], [0], [0], [0, 0, 1, 0], [], []>} : vector<8x8xbf16>, vector<8x8xbf16>, vector<8x8xf32> -> vector<8x8xf32>
    %cst_39 = arith.constant 0.353553385 : f32
    %94 = vector.broadcast %cst_39 : f32 to vector<8x8xf32>
    %95 = arith.mulf %93, %94 : vector<8x8xf32>
    %96 = arith.addf %95, %50 : vector<8x8xf32>
    %97 = vector.extract_strided_slice %49 {offsets = [0, 16], sizes = [8, 8], strides = [1, 1]} : vector<8x32xbf16> to vector<8x8xbf16>
    %cst_40 = arith.constant dense<0xFF800000> : vector<8xf32>
    %98 = vector.multi_reduction <maximumf>, %96, %cst_40 [1] : vector<8x8xf32> to vector<8xf32>
    %99 = vector.shape_cast %98 : vector<8xf32> to vector<8x1xf32>
    %100 = vector.broadcast %99 : vector<8x1xf32> to vector<8x8xf32>
    %101 = arith.subf %96, %100 : vector<8x8xf32>
    %102 = math.exp %101 : vector<8x8xf32>
    %cst_41 = arith.constant dense<0.000000e+00> : vector<8xf32>
    %103 = vector.multi_reduction <add>, %102, %cst_41 [1] : vector<8x8xf32> to vector<8xf32>
    %104 = vector.shape_cast %103 : vector<8xf32> to vector<8x1xf32>
    %105 = arith.truncf %102 : vector<8x8xf32> to vector<8x8xbf16>
    %cst_42 = arith.constant dense<0.000000e+00> : vector<8x8xf32>
    %106 = tpu.matmul %105, %97, %cst_42 {dimension_numbers = #tpu.dot_dimension_numbers<[1], [0], [0], [1], [0, 0, 1, 1], [], []>} : vector<8x8xbf16>, vector<8x8xbf16>, vector<8x8xf32> -> vector<8x8xf32>
    %107 = tpu.reciprocal %104 {approx = true} : vector<8x1xf32> -> vector<8x1xf32>
    %108 = vector.broadcast %107 : vector<8x1xf32> to vector<8x8xf32>
    %109 = arith.mulf %106, %108 : vector<8x8xf32>
    %c0_43 = arith.constant 0 : index
    %c16 = arith.constant 16 : index
    %110 = vector.load %arg38[%c0_43, %c16] : memref<8x32xf32, #tpu.memory_space<vmem>>, vector<8x8xf32>
    tpu.vector_store %arg38[%c0_43, %c16], %109 {strides = array<i32>} : memref<8x32xf32, #tpu.memory_space<vmem>>, vector<8x8xf32>,
    %111 = vector.extract_strided_slice %43 {offsets = [0, 24], sizes = [8, 8], strides = [1, 1]} : vector<8x32xbf16> to vector<8x8xbf16>
    %112 = vector.extract_strided_slice %47 {offsets = [0, 24], sizes = [8, 8], strides = [1, 1]} : vector<8x32xbf16> to vector<8x8xbf16>
    %cst_44 = arith.constant dense<0.000000e+00> : vector<8x8xf32>
    %113 = tpu.matmul %111, %112, %cst_44 {dimension_numbers = #tpu.dot_dimension_numbers<[1], [1], [0], [0], [0, 0, 1, 0], [], []>} : vector<8x8xbf16>, vector<8x8xbf16>, vector<8x8xf32> -> vector<8x8xf32>
    %cst_45 = arith.constant 0.353553385 : f32
    %114 = vector.broadcast %cst_45 : f32 to vector<8x8xf32>
    %115 = arith.mulf %113, %114 : vector<8x8xf32>
    %116 = arith.addf %115, %50 : vector<8x8xf32>
    %117 = vector.extract_strided_slice %49 {offsets = [0, 24], sizes = [8, 8], strides = [1, 1]} : vector<8x32xbf16> to vector<8x8xbf16>
    %cst_46 = arith.constant dense<0xFF800000> : vector<8xf32>
    %118 = vector.multi_reduction <maximumf>, %116, %cst_46 [1] : vector<8x8xf32> to vector<8xf32>
    %119 = vector.shape_cast %118 : vector<8xf32> to vector<8x1xf32>
    %120 = vector.broadcast %119 : vector<8x1xf32> to vector<8x8xf32>
    %121 = arith.subf %116, %120 : vector<8x8xf32>
    %122 = math.exp %121 : vector<8x8xf32>
    %cst_47 = arith.constant dense<0.000000e+00> : vector<8xf32>
    %123 = vector.multi_reduction <add>, %122, %cst_47 [1] : vector<8x8xf32> to vector<8xf32>
    %124 = vector.shape_cast %123 : vector<8xf32> to vector<8x1xf32>
    %125 = arith.truncf %122 : vector<8x8xf32> to vector<8x8xbf16>
    %cst_48 = arith.constant dense<0.000000e+00> : vector<8x8xf32>
    %126 = tpu.matmul %125, %117, %cst_48 {dimension_numbers = #tpu.dot_dimension_numbers<[1], [0], [0], [1], [0, 0, 1, 1], [], []>} : vector<8x8xbf16>, vector<8x8xbf16>, vector<8x8xf32> -> vector<8x8xf32>
    %127 = tpu.reciprocal %124 {approx = true} : vector<8x1xf32> -> vector<8x1xf32>
    %128 = vector.broadcast %127 : vector<8x1xf32> to vector<8x8xf32>
    %129 = arith.mulf %126, %128 : vector<8x8xf32>
    %c0_49 = arith.constant 0 : index
    %c24 = arith.constant 24 : index
    %130 = vector.load %arg38[%c0_49, %c24] : memref<8x32xf32, #tpu.memory_space<vmem>>, vector<8x8xf32>
    tpu.vector_store %arg38[%c0_49, %c24], %129 {strides = array<i32>} : memref<8x32xf32, #tpu.memory_space<vmem>>, vector<8x8xf32>,
    %c0_50 = arith.constant 0 : index
    %c0_51 = arith.constant 0 : index
    %131 = vector.load %arg38[%c0_50, %c0_51] : memref<8x32xf32, #tpu.memory_space<vmem>>, vector<8x32xf32>
    %132 = arith.truncf %131 : vector<8x32xf32> to vector<8x32xbf16>
    %c0_52 = arith.constant 0 : index
    %c0_53 = arith.constant 0 : index
    %133 = vector.load %arg14[%c0_52, %c0_53] : memref<32x32xbf16, #tpu.memory_space<vmem>>, vector<32x32xbf16>
    %cst_54 = arith.constant dense<0.000000e+00> : vector<8x32xf32>
    %134 = tpu.matmul %132, %133, %cst_54 {dimension_numbers = #tpu.dot_dimension_numbers<[1], [0], [0], [1], [0, 0, 1, 1], [], []>} : vector<8x32xbf16>, vector<32x32xbf16>, vector<8x32xf32> -> vector<8x32xf32>
    %135 = arith.addf %0, %134 : vector<8x32xf32>
    %c0_55 = arith.constant 0 : index
    %c0_56 = arith.constant 0 : index
    %136 = vector.load %arg15[%c0_55, %c0_56] : memref<1x32xf32, #tpu.memory_space<vmem>>, vector<1x32xf32>
    %137 = vector.broadcast %136 : vector<1x32xf32> to vector<8x32xf32>
    %138 = arith.addf %135, %137 : vector<8x32xf32>
    %c0_57 = arith.constant 0 : index
    %c0_58 = arith.constant 0 : index
    %139 = vector.load %arg16[%c0_57, %c0_58] : memref<1x32xf32, #tpu.memory_space<vmem>>, vector<1x32xf32>
    %c0_59 = arith.constant 0 : index
    %c0_60 = arith.constant 0 : index
    %140 = vector.load %arg17[%c0_59, %c0_60] : memref<1x32xf32, #tpu.memory_space<vmem>>, vector<1x32xf32>
    %cst_61 = arith.constant dense<0.000000e+00> : vector<8xf32>
    %141 = vector.multi_reduction <add>, %138, %cst_61 [1] : vector<8x32xf32> to vector<8xf32>
    %142 = vector.shape_cast %141 : vector<8xf32> to vector<8x1xf32>
    %cst_62 = arith.constant 3.200000e+01 : f32
    %143 = vector.broadcast %cst_62 : f32 to vector<8x1xf32>
    %144 = arith.divf %142, %143 : vector<8x1xf32>
    %145 = vector.broadcast %144 : vector<8x1xf32> to vector<8x32xf32>
    %146 = arith.subf %138, %145 : vector<8x32xf32>
    %147 = vector.broadcast %144 : vector<8x1xf32> to vector<8x32xf32>
    %148 = arith.subf %138, %147 : vector<8x32xf32>
    %149 = arith.mulf %146, %148 : vector<8x32xf32>
    %cst_63 = arith.constant dense<0.000000e+00> : vector<8xf32>
    %150 = vector.multi_reduction <add>, %149, %cst_63 [1] : vector<8x32xf32> to vector<8xf32>
    %151 = vector.shape_cast %150 : vector<8xf32> to vector<8x1xf32>
    %cst_64 = arith.constant 3.200000e+01 : f32
    %152 = vector.broadcast %cst_64 : f32 to vector<8x1xf32>
    %153 = arith.divf %151, %152 : vector<8x1xf32>
    %154 = vector.broadcast %144 : vector<8x1xf32> to vector<8x32xf32>
    %155 = arith.subf %138, %154 : vector<8x32xf32>
    %cst_65 = arith.constant 9.99999974E-6 : f32
    %156 = vector.broadcast %cst_65 : f32 to vector<8x1xf32>
    %157 = arith.addf %153, %156 : vector<8x1xf32>
    %158 = math.rsqrt %157 : vector<8x1xf32>
    %159 = vector.broadcast %158 : vector<8x1xf32> to vector<8x32xf32>
    %160 = arith.mulf %155, %159 : vector<8x32xf32>
    %161 = vector.broadcast %139 : vector<1x32xf32> to vector<8x32xf32>
    %162 = arith.mulf %160, %161 : vector<8x32xf32>
    %163 = vector.broadcast %140 : vector<1x32xf32> to vector<8x32xf32>
    %164 = arith.addf %162, %163 : vector<8x32xf32>
    %c0_66 = arith.constant 0 : index
    %c0_67 = arith.constant 0 : index
    %165 = vector.load %arg6[%c0_66, %c0_67] : memref<24x32xbf16, #tpu.memory_space<vmem>>, vector<24x32xbf16>
    %166 = arith.truncf %164 : vector<8x32xf32> to vector<8x32xbf16>
    %c0_68 = arith.constant 0 : index
    %c0_69 = arith.constant 0 : index
    %167 = vector.load %arg18[%c0_68, %c0_69] : memref<32x32xbf16, #tpu.memory_space<vmem>>, vector<32x32xbf16>
    %cst_70 = arith.constant dense<0.000000e+00> : vector<8x32xf32>
    %168 = tpu.matmul %166, %167, %cst_70 {dimension_numbers = #tpu.dot_dimension_numbers<[1], [0], [0], [1], [0, 0, 1, 1], [], []>} : vector<8x32xbf16>, vector<32x32xbf16>, vector<8x32xf32> -> vector<8x32xf32>
    %c0_71 = arith.constant 0 : index
    %c0_72 = arith.constant 0 : index
    %169 = vector.load %arg19[%c0_71, %c0_72] : memref<1x32xf32, #tpu.memory_space<vmem>>, vector<1x32xf32>
    %170 = vector.broadcast %169 : vector<1x32xf32> to vector<8x32xf32>
    %171 = arith.addf %168, %170 : vector<8x32xf32>
    %c0_73 = arith.constant 0 : index
    %c0_74 = arith.constant 0 : index
    %172 = vector.load %arg20[%c0_73, %c0_74] : memref<32x64xbf16, #tpu.memory_space<vmem>>, vector<32x64xbf16>
    %cst_75 = arith.constant dense<0.000000e+00> : vector<24x64xf32>
    %173 = tpu.matmul %165, %172, %cst_75 {dimension_numbers = #tpu.dot_dimension_numbers<[1], [0], [0], [1], [0, 0, 1, 1], [], []>} : vector<24x32xbf16>, vector<32x64xbf16>, vector<24x64xf32> -> vector<24x64xf32>
    %c0_76 = arith.constant 0 : index
    %c0_77 = arith.constant 0 : index
    %174 = vector.load %arg21[%c0_76, %c0_77] : memref<1x64xf32, #tpu.memory_space<vmem>>, vector<1x64xf32>
    %175 = vector.broadcast %174 : vector<1x64xf32> to vector<24x64xf32>
    %176 = arith.addf %173, %175 : vector<24x64xf32>
    %177 = vector.extract_strided_slice %176 {offsets = [0, 0], sizes = [24, 32], strides = [1, 1]} : vector<24x64xf32> to vector<24x32xf32>
    %178 = vector.extract_strided_slice %176 {offsets = [0, 32], sizes = [24, 32], strides = [1, 1]} : vector<24x64xf32> to vector<24x32xf32>
    %179 = arith.truncf %178 : vector<24x32xf32> to vector<24x32xbf16>
    %c0_78 = arith.constant 0 : index
    %c0_79 = arith.constant 0 : index
    %180 = vector.load %arg7[%c0_78, %c0_79] : memref<24x32xbf16, #tpu.memory_space<vmem>>, vector<24x32xbf16>
    %c0_80 = arith.constant 0 : index
    %c0_81 = arith.constant 0 : index
    %181 = vector.load %arg22[%c0_80, %c0_81] : memref<32x32xbf16, #tpu.memory_space<vmem>>, vector<32x32xbf16>
    %cst_82 = arith.constant dense<0.000000e+00> : vector<24x32xf32>
    %182 = tpu.matmul %180, %181, %cst_82 {dimension_numbers = #tpu.dot_dimension_numbers<[1], [0], [0], [1], [0, 0, 1, 1], [], []>} : vector<24x32xbf16>, vector<32x32xbf16>, vector<24x32xf32> -> vector<24x32xf32>
    %c0_83 = arith.constant 0 : index
    %c0_84 = arith.constant 0 : index
    %183 = vector.load %arg23[%c0_83, %c0_84] : memref<1x32xf32, #tpu.memory_space<vmem>>, vector<1x32xf32>
    %184 = vector.broadcast %183 : vector<1x32xf32> to vector<24x32xf32>
    %185 = arith.addf %182, %184 : vector<24x32xf32>
    %c0_85 = arith.constant 0 : index
    %c0_86 = arith.constant 0 : index
    %186 = vector.load %arg24[%c0_85, %c0_86] : memref<32x32xbf16, #tpu.memory_space<vmem>>, vector<32x32xbf16>
    %cst_87 = arith.constant dense<0.000000e+00> : vector<8x32xf32>
    %187 = tpu.matmul %2, %186, %cst_87 {dimension_numbers = #tpu.dot_dimension_numbers<[1], [0], [0], [1], [0, 0, 1, 1], [], []>} : vector<8x32xbf16>, vector<32x32xbf16>, vector<8x32xf32> -> vector<8x32xf32>
    %c0_88 = arith.constant 0 : index
    %c0_89 = arith.constant 0 : index
    %188 = vector.load %arg25[%c0_88, %c0_89] : memref<1x32xf32, #tpu.memory_space<vmem>>, vector<1x32xf32>
    %189 = vector.broadcast %188 : vector<1x32xf32> to vector<8x32xf32>
    %190 = arith.addf %187, %189 : vector<8x32xf32>
    %191 = arith.index_cast %arg0 : i32 to index
    %c0_90 = arith.constant 0 : index
    %192 = memref.load %arg1[%191, %c0_90] : memref<2x2xi32, #tpu.memory_space<smem>>
    %193 = arith.index_cast %arg0 : i32 to index
    %c1 = arith.constant 1 : index
    %194 = memref.load %arg1[%193, %c1] : memref<2x2xi32, #tpu.memory_space<smem>>
    %195 = tpu.iota {dimensions = array<i32: 1>} : vector<8x24xi32>
    %196 = vector.broadcast %192 : i32 to vector<8x24xi32>
    %197 = arith.cmpi sge, %195, %196 : vector<8x24xi32>
    %198 = vector.broadcast %194 : i32 to vector<8x24xi32>
    %199 = arith.cmpi slt, %195, %198 : vector<8x24xi32>
    %200 = arith.andi %197, %199 : vector<8x24xi1>
    %cst_91 = arith.constant 0.000000e+00 : f32
    %cst_92 = arith.constant -1.000000e+30 : f32
    %201 = vector.broadcast %cst_91 : f32 to vector<8x24xf32>
    %202 = vector.broadcast %cst_92 : f32 to vector<8x24xf32>
    %203 = arith.select %200, %201, %202 : vector<8x24xi1>, vector<8x24xf32>
    %204 = arith.truncf %171 : vector<8x32xf32> to vector<8x32xbf16>
    %205 = arith.truncf %177 : vector<24x32xf32> to vector<24x32xbf16>
    %206 = arith.truncf %190 : vector<8x32xf32> to vector<8x32xbf16>
    %207 = arith.truncf %185 : vector<24x32xf32> to vector<24x32xbf16>
    %208 = vector.extract_strided_slice %204 {offsets = [0, 0], sizes = [8, 8], strides = [1, 1]} : vector<8x32xbf16> to vector<8x8xbf16>
    %209 = vector.extract_strided_slice %205 {offsets = [0, 0], sizes = [24, 8], strides = [1, 1]} : vector<24x32xbf16> to vector<24x8xbf16>
    %cst_93 = arith.constant dense<0.000000e+00> : vector<8x24xf32>
    %210 = tpu.matmul %208, %209, %cst_93 {dimension_numbers = #tpu.dot_dimension_numbers<[1], [1], [0], [0], [0, 0, 1, 0], [], []>} : vector<8x8xbf16>, vector<24x8xbf16>, vector<8x24xf32> -> vector<8x24xf32>
    %211 = vector.extract_strided_slice %206 {offsets = [0, 0], sizes = [8, 8], strides = [1, 1]} : vector<8x32xbf16> to vector<8x8xbf16>
    %212 = vector.extract_strided_slice %207 {offsets = [0, 0], sizes = [24, 8], strides = [1, 1]} : vector<24x32xbf16> to vector<24x8xbf16>
    %cst_94 = arith.constant dense<0.000000e+00> : vector<8x24xf32>
    %213 = tpu.matmul %211, %212, %cst_94 {dimension_numbers = #tpu.dot_dimension_numbers<[1], [1], [0], [0], [0, 0, 1, 0], [], []>} : vector<8x8xbf16>, vector<24x8xbf16>, vector<8x24xf32> -> vector<8x24xf32>
    %214 = arith.addf %210, %213 : vector<8x24xf32>
    %cst_95 = arith.constant 2.500000e-01 : f32
    %215 = vector.broadcast %cst_95 : f32 to vector<8x24xf32>
    %216 = arith.mulf %214, %215 : vector<8x24xf32>
    %217 = arith.addf %216, %203 : vector<8x24xf32>
    %218 = vector.extract_strided_slice %179 {offsets = [0, 0], sizes = [24, 8], strides = [1, 1]} : vector<24x32xbf16> to vector<24x8xbf16>
    %cst_96 = arith.constant dense<0xFF800000> : vector<8xf32>
    %219 = vector.multi_reduction <maximumf>, %217, %cst_96 [1] : vector<8x24xf32> to vector<8xf32>
    %220 = vector.shape_cast %219 : vector<8xf32> to vector<8x1xf32>
    %221 = vector.broadcast %220 : vector<8x1xf32> to vector<8x24xf32>
    %222 = arith.subf %217, %221 : vector<8x24xf32>
    %223 = math.exp %222 : vector<8x24xf32>
    %cst_97 = arith.constant dense<0.000000e+00> : vector<8xf32>
    %224 = vector.multi_reduction <add>, %223, %cst_97 [1] : vector<8x24xf32> to vector<8xf32>
    %225 = vector.shape_cast %224 : vector<8xf32> to vector<8x1xf32>
    %226 = arith.truncf %223 : vector<8x24xf32> to vector<8x24xbf16>
    %cst_98 = arith.constant dense<0.000000e+00> : vector<8x8xf32>
    %227 = tpu.matmul %226, %218, %cst_98 {dimension_numbers = #tpu.dot_dimension_numbers<[1], [0], [0], [1], [0, 0, 1, 1], [], []>} : vector<8x24xbf16>, vector<24x8xbf16>, vector<8x8xf32> -> vector<8x8xf32>
    %228 = tpu.reciprocal %225 {approx = true} : vector<8x1xf32> -> vector<8x1xf32>
    %229 = vector.broadcast %228 : vector<8x1xf32> to vector<8x8xf32>
    %230 = arith.mulf %227, %229 : vector<8x8xf32>
    %c0_99 = arith.constant 0 : index
    %c0_100 = arith.constant 0 : index
    %231 = vector.load %arg38[%c0_99, %c0_100] : memref<8x32xf32, #tpu.memory_space<vmem>>, vector<8x8xf32>
    tpu.vector_store %arg38[%c0_99, %c0_100], %230 {strides = array<i32>} : memref<8x32xf32, #tpu.memory_space<vmem>>, vector<8x8xf32>,
    %232 = vector.extract_strided_slice %204 {offsets = [0, 8], sizes = [8, 8], strides = [1, 1]} : vector<8x32xbf16> to vector<8x8xbf16>
    %233 = vector.extract_strided_slice %205 {offsets = [0, 8], sizes = [24, 8], strides = [1, 1]} : vector<24x32xbf16> to vector<24x8xbf16>
    %cst_101 = arith.constant dense<0.000000e+00> : vector<8x24xf32>
    %234 = tpu.matmul %232, %233, %cst_101 {dimension_numbers = #tpu.dot_dimension_numbers<[1], [1], [0], [0], [0, 0, 1, 0], [], []>} : vector<8x8xbf16>, vector<24x8xbf16>, vector<8x24xf32> -> vector<8x24xf32>
    %235 = vector.extract_strided_slice %206 {offsets = [0, 8], sizes = [8, 8], strides = [1, 1]} : vector<8x32xbf16> to vector<8x8xbf16>
    %236 = vector.extract_strided_slice %207 {offsets = [0, 8], sizes = [24, 8], strides = [1, 1]} : vector<24x32xbf16> to vector<24x8xbf16>
    %cst_102 = arith.constant dense<0.000000e+00> : vector<8x24xf32>
    %237 = tpu.matmul %235, %236, %cst_102 {dimension_numbers = #tpu.dot_dimension_numbers<[1], [1], [0], [0], [0, 0, 1, 0], [], []>} : vector<8x8xbf16>, vector<24x8xbf16>, vector<8x24xf32> -> vector<8x24xf32>
    %238 = arith.addf %234, %237 : vector<8x24xf32>
    %cst_103 = arith.constant 2.500000e-01 : f32
    %239 = vector.broadcast %cst_103 : f32 to vector<8x24xf32>
    %240 = arith.mulf %238, %239 : vector<8x24xf32>
    %241 = arith.addf %240, %203 : vector<8x24xf32>
    %242 = vector.extract_strided_slice %179 {offsets = [0, 8], sizes = [24, 8], strides = [1, 1]} : vector<24x32xbf16> to vector<24x8xbf16>
    %cst_104 = arith.constant dense<0xFF800000> : vector<8xf32>
    %243 = vector.multi_reduction <maximumf>, %241, %cst_104 [1] : vector<8x24xf32> to vector<8xf32>
    %244 = vector.shape_cast %243 : vector<8xf32> to vector<8x1xf32>
    %245 = vector.broadcast %244 : vector<8x1xf32> to vector<8x24xf32>
    %246 = arith.subf %241, %245 : vector<8x24xf32>
    %247 = math.exp %246 : vector<8x24xf32>
    %cst_105 = arith.constant dense<0.000000e+00> : vector<8xf32>
    %248 = vector.multi_reduction <add>, %247, %cst_105 [1] : vector<8x24xf32> to vector<8xf32>
    %249 = vector.shape_cast %248 : vector<8xf32> to vector<8x1xf32>
    %250 = arith.truncf %247 : vector<8x24xf32> to vector<8x24xbf16>
    %cst_106 = arith.constant dense<0.000000e+00> : vector<8x8xf32>
    %251 = tpu.matmul %250, %242, %cst_106 {dimension_numbers = #tpu.dot_dimension_numbers<[1], [0], [0], [1], [0, 0, 1, 1], [], []>} : vector<8x24xbf16>, vector<24x8xbf16>, vector<8x8xf32> -> vector<8x8xf32>
    %252 = tpu.reciprocal %249 {approx = true} : vector<8x1xf32> -> vector<8x1xf32>
    %253 = vector.broadcast %252 : vector<8x1xf32> to vector<8x8xf32>
    %254 = arith.mulf %251, %253 : vector<8x8xf32>
    %c0_107 = arith.constant 0 : index
    %c8_108 = arith.constant 8 : index
    %255 = vector.load %arg38[%c0_107, %c8_108] : memref<8x32xf32, #tpu.memory_space<vmem>>, vector<8x8xf32>
    tpu.vector_store %arg38[%c0_107, %c8_108], %254 {strides = array<i32>} : memref<8x32xf32, #tpu.memory_space<vmem>>, vector<8x8xf32>,
    %256 = vector.extract_strided_slice %204 {offsets = [0, 16], sizes = [8, 8], strides = [1, 1]} : vector<8x32xbf16> to vector<8x8xbf16>
    %257 = vector.extract_strided_slice %205 {offsets = [0, 16], sizes = [24, 8], strides = [1, 1]} : vector<24x32xbf16> to vector<24x8xbf16>
    %cst_109 = arith.constant dense<0.000000e+00> : vector<8x24xf32>
    %258 = tpu.matmul %256, %257, %cst_109 {dimension_numbers = #tpu.dot_dimension_numbers<[1], [1], [0], [0], [0, 0, 1, 0], [], []>} : vector<8x8xbf16>, vector<24x8xbf16>, vector<8x24xf32> -> vector<8x24xf32>
    %259 = vector.extract_strided_slice %206 {offsets = [0, 16], sizes = [8, 8], strides = [1, 1]} : vector<8x32xbf16> to vector<8x8xbf16>
    %260 = vector.extract_strided_slice %207 {offsets = [0, 16], sizes = [24, 8], strides = [1, 1]} : vector<24x32xbf16> to vector<24x8xbf16>
    %cst_110 = arith.constant dense<0.000000e+00> : vector<8x24xf32>
    %261 = tpu.matmul %259, %260, %cst_110 {dimension_numbers = #tpu.dot_dimension_numbers<[1], [1], [0], [0], [0, 0, 1, 0], [], []>} : vector<8x8xbf16>, vector<24x8xbf16>, vector<8x24xf32> -> vector<8x24xf32>
    %262 = arith.addf %258, %261 : vector<8x24xf32>
    %cst_111 = arith.constant 2.500000e-01 : f32
    %263 = vector.broadcast %cst_111 : f32 to vector<8x24xf32>
    %264 = arith.mulf %262, %263 : vector<8x24xf32>
    %265 = arith.addf %264, %203 : vector<8x24xf32>
    %266 = vector.extract_strided_slice %179 {offsets = [0, 16], sizes = [24, 8], strides = [1, 1]} : vector<24x32xbf16> to vector<24x8xbf16>
    %cst_112 = arith.constant dense<0xFF800000> : vector<8xf32>
    %267 = vector.multi_reduction <maximumf>, %265, %cst_112 [1] : vector<8x24xf32> to vector<8xf32>
    %268 = vector.shape_cast %267 : vector<8xf32> to vector<8x1xf32>
    %269 = vector.broadcast %268 : vector<8x1xf32> to vector<8x24xf32>
    %270 = arith.subf %265, %269 : vector<8x24xf32>
    %271 = math.exp %270 : vector<8x24xf32>
    %cst_113 = arith.constant dense<0.000000e+00> : vector<8xf32>
    %272 = vector.multi_reduction <add>, %271, %cst_113 [1] : vector<8x24xf32> to vector<8xf32>
    %273 = vector.shape_cast %272 : vector<8xf32> to vector<8x1xf32>
    %274 = arith.truncf %271 : vector<8x24xf32> to vector<8x24xbf16>
    %cst_114 = arith.constant dense<0.000000e+00> : vector<8x8xf32>
    %275 = tpu.matmul %274, %266, %cst_114 {dimension_numbers = #tpu.dot_dimension_numbers<[1], [0], [0], [1], [0, 0, 1, 1], [], []>} : vector<8x24xbf16>, vector<24x8xbf16>, vector<8x8xf32> -> vector<8x8xf32>
    %276 = tpu.reciprocal %273 {approx = true} : vector<8x1xf32> -> vector<8x1xf32>
    %277 = vector.broadcast %276 : vector<8x1xf32> to vector<8x8xf32>
    %278 = arith.mulf %275, %277 : vector<8x8xf32>
    %c0_115 = arith.constant 0 : index
    %c16_116 = arith.constant 16 : index
    %279 = vector.load %arg38[%c0_115, %c16_116] : memref<8x32xf32, #tpu.memory_space<vmem>>, vector<8x8xf32>
    tpu.vector_store %arg38[%c0_115, %c16_116], %278 {strides = array<i32>} : memref<8x32xf32, #tpu.memory_space<vmem>>, vector<8x8xf32>,
    %280 = vector.extract_strided_slice %204 {offsets = [0, 24], sizes = [8, 8], strides = [1, 1]} : vector<8x32xbf16> to vector<8x8xbf16>
    %281 = vector.extract_strided_slice %205 {offsets = [0, 24], sizes = [24, 8], strides = [1, 1]} : vector<24x32xbf16> to vector<24x8xbf16>
    %cst_117 = arith.constant dense<0.000000e+00> : vector<8x24xf32>
    %282 = tpu.matmul %280, %281, %cst_117 {dimension_numbers = #tpu.dot_dimension_numbers<[1], [1], [0], [0], [0, 0, 1, 0], [], []>} : vector<8x8xbf16>, vector<24x8xbf16>, vector<8x24xf32> -> vector<8x24xf32>
    %283 = vector.extract_strided_slice %206 {offsets = [0, 24], sizes = [8, 8], strides = [1, 1]} : vector<8x32xbf16> to vector<8x8xbf16>
    %284 = vector.extract_strided_slice %207 {offsets = [0, 24], sizes = [24, 8], strides = [1, 1]} : vector<24x32xbf16> to vector<24x8xbf16>
    %cst_118 = arith.constant dense<0.000000e+00> : vector<8x24xf32>
    %285 = tpu.matmul %283, %284, %cst_118 {dimension_numbers = #tpu.dot_dimension_numbers<[1], [1], [0], [0], [0, 0, 1, 0], [], []>} : vector<8x8xbf16>, vector<24x8xbf16>, vector<8x24xf32> -> vector<8x24xf32>
    %286 = arith.addf %282, %285 : vector<8x24xf32>
    %cst_119 = arith.constant 2.500000e-01 : f32
    %287 = vector.broadcast %cst_119 : f32 to vector<8x24xf32>
    %288 = arith.mulf %286, %287 : vector<8x24xf32>
    %289 = arith.addf %288, %203 : vector<8x24xf32>
    %290 = vector.extract_strided_slice %179 {offsets = [0, 24], sizes = [24, 8], strides = [1, 1]} : vector<24x32xbf16> to vector<24x8xbf16>
    %cst_120 = arith.constant dense<0xFF800000> : vector<8xf32>
    %291 = vector.multi_reduction <maximumf>, %289, %cst_120 [1] : vector<8x24xf32> to vector<8xf32>
    %292 = vector.shape_cast %291 : vector<8xf32> to vector<8x1xf32>
    %293 = vector.broadcast %292 : vector<8x1xf32> to vector<8x24xf32>
    %294 = arith.subf %289, %293 : vector<8x24xf32>
    %295 = math.exp %294 : vector<8x24xf32>
    %cst_121 = arith.constant dense<0.000000e+00> : vector<8xf32>
    %296 = vector.multi_reduction <add>, %295, %cst_121 [1] : vector<8x24xf32> to vector<8xf32>
    %297 = vector.shape_cast %296 : vector<8xf32> to vector<8x1xf32>
    %298 = arith.truncf %295 : vector<8x24xf32> to vector<8x24xbf16>
    %cst_122 = arith.constant dense<0.000000e+00> : vector<8x8xf32>
    %299 = tpu.matmul %298, %290, %cst_122 {dimension_numbers = #tpu.dot_dimension_numbers<[1], [0], [0], [1], [0, 0, 1, 1], [], []>} : vector<8x24xbf16>, vector<24x8xbf16>, vector<8x8xf32> -> vector<8x8xf32>
    %300 = tpu.reciprocal %297 {approx = true} : vector<8x1xf32> -> vector<8x1xf32>
    %301 = vector.broadcast %300 : vector<8x1xf32> to vector<8x8xf32>
    %302 = arith.mulf %299, %301 : vector<8x8xf32>
    %c0_123 = arith.constant 0 : index
    %c24_124 = arith.constant 24 : index
    %303 = vector.load %arg38[%c0_123, %c24_124] : memref<8x32xf32, #tpu.memory_space<vmem>>, vector<8x8xf32>
    tpu.vector_store %arg38[%c0_123, %c24_124], %302 {strides = array<i32>} : memref<8x32xf32, #tpu.memory_space<vmem>>, vector<8x8xf32>,
    %c0_125 = arith.constant 0 : index
    %c0_126 = arith.constant 0 : index
    %304 = vector.load %arg38[%c0_125, %c0_126] : memref<8x32xf32, #tpu.memory_space<vmem>>, vector<8x32xf32>
    %305 = arith.truncf %304 : vector<8x32xf32> to vector<8x32xbf16>
    %c0_127 = arith.constant 0 : index
    %c0_128 = arith.constant 0 : index
    %306 = vector.load %arg26[%c0_127, %c0_128] : memref<32x32xbf16, #tpu.memory_space<vmem>>, vector<32x32xbf16>
    %cst_129 = arith.constant dense<0.000000e+00> : vector<8x32xf32>
    %307 = tpu.matmul %305, %306, %cst_129 {dimension_numbers = #tpu.dot_dimension_numbers<[1], [0], [0], [1], [0, 0, 1, 1], [], []>} : vector<8x32xbf16>, vector<32x32xbf16>, vector<8x32xf32> -> vector<8x32xf32>
    %308 = arith.addf %138, %307 : vector<8x32xf32>
    %c0_130 = arith.constant 0 : index
    %c0_131 = arith.constant 0 : index
    %309 = vector.load %arg27[%c0_130, %c0_131] : memref<1x32xf32, #tpu.memory_space<vmem>>, vector<1x32xf32>
    %310 = vector.broadcast %309 : vector<1x32xf32> to vector<8x32xf32>
    %311 = arith.addf %308, %310 : vector<8x32xf32>
    %c0_132 = arith.constant 0 : index
    %c0_133 = arith.constant 0 : index
    %312 = vector.load %arg28[%c0_132, %c0_133] : memref<1x32xf32, #tpu.memory_space<vmem>>, vector<1x32xf32>
    %c0_134 = arith.constant 0 : index
    %c0_135 = arith.constant 0 : index
    %313 = vector.load %arg29[%c0_134, %c0_135] : memref<1x32xf32, #tpu.memory_space<vmem>>, vector<1x32xf32>
    %cst_136 = arith.constant dense<0.000000e+00> : vector<8xf32>
    %314 = vector.multi_reduction <add>, %311, %cst_136 [1] : vector<8x32xf32> to vector<8xf32>
    %315 = vector.shape_cast %314 : vector<8xf32> to vector<8x1xf32>
    %cst_137 = arith.constant 3.200000e+01 : f32
    %316 = vector.broadcast %cst_137 : f32 to vector<8x1xf32>
    %317 = arith.divf %315, %316 : vector<8x1xf32>
    %318 = vector.broadcast %317 : vector<8x1xf32> to vector<8x32xf32>
    %319 = arith.subf %311, %318 : vector<8x32xf32>
    %320 = vector.broadcast %317 : vector<8x1xf32> to vector<8x32xf32>
    %321 = arith.subf %311, %320 : vector<8x32xf32>
    %322 = arith.mulf %319, %321 : vector<8x32xf32>
    %cst_138 = arith.constant dense<0.000000e+00> : vector<8xf32>
    %323 = vector.multi_reduction <add>, %322, %cst_138 [1] : vector<8x32xf32> to vector<8xf32>
    %324 = vector.shape_cast %323 : vector<8xf32> to vector<8x1xf32>
    %cst_139 = arith.constant 3.200000e+01 : f32
    %325 = vector.broadcast %cst_139 : f32 to vector<8x1xf32>
    %326 = arith.divf %324, %325 : vector<8x1xf32>
    %327 = vector.broadcast %317 : vector<8x1xf32> to vector<8x32xf32>
    %328 = arith.subf %311, %327 : vector<8x32xf32>
    %cst_140 = arith.constant 9.99999974E-6 : f32
    %329 = vector.broadcast %cst_140 : f32 to vector<8x1xf32>
    %330 = arith.addf %326, %329 : vector<8x1xf32>
    %331 = math.rsqrt %330 : vector<8x1xf32>
    %332 = vector.broadcast %331 : vector<8x1xf32> to vector<8x32xf32>
    %333 = arith.mulf %328, %332 : vector<8x32xf32>
    %334 = vector.broadcast %312 : vector<1x32xf32> to vector<8x32xf32>
    %335 = arith.mulf %333, %334 : vector<8x32xf32>
    %336 = vector.broadcast %313 : vector<1x32xf32> to vector<8x32xf32>
    %337 = arith.addf %335, %336 : vector<8x32xf32>
    %338 = arith.truncf %337 : vector<8x32xf32> to vector<8x32xbf16>
    %c0_141 = arith.constant 0 : index
    %c0_142 = arith.constant 0 : index
    %339 = vector.load %arg30[%c0_141, %c0_142] : memref<32x64xbf16, #tpu.memory_space<vmem>>, vector<32x64xbf16>
    %cst_143 = arith.constant dense<0.000000e+00> : vector<8x64xf32>
    %340 = tpu.matmul %338, %339, %cst_143 {dimension_numbers = #tpu.dot_dimension_numbers<[1], [0], [0], [1], [0, 0, 1, 1], [], []>} : vector<8x32xbf16>, vector<32x64xbf16>, vector<8x64xf32> -> vector<8x64xf32>
    %c0_144 = arith.constant 0 : index
    %c0_145 = arith.constant 0 : index
    %341 = vector.load %arg31[%c0_144, %c0_145] : memref<1x64xf32, #tpu.memory_space<vmem>>, vector<1x64xf32>
    %342 = vector.broadcast %341 : vector<1x64xf32> to vector<8x64xf32>
    %343 = arith.addf %340, %342 : vector<8x64xf32>
    %cst_146 = arith.constant 0.000000e+00 : f32
    %344 = vector.broadcast %cst_146 : f32 to vector<8x64xf32>
    %345 = arith.maximumf %343, %344 : vector<8x64xf32>
    %346 = arith.truncf %345 : vector<8x64xf32> to vector<8x64xbf16>
    %c0_147 = arith.constant 0 : index
    %c0_148 = arith.constant 0 : index
    %347 = vector.load %arg32[%c0_147, %c0_148] : memref<64x32xbf16, #tpu.memory_space<vmem>>, vector<64x32xbf16>
    %cst_149 = arith.constant dense<0.000000e+00> : vector<8x32xf32>
    %348 = tpu.matmul %346, %347, %cst_149 {dimension_numbers = #tpu.dot_dimension_numbers<[1], [0], [0], [1], [0, 0, 1, 1], [], []>} : vector<8x64xbf16>, vector<64x32xbf16>, vector<8x32xf32> -> vector<8x32xf32>
    %349 = arith.addf %311, %348 : vector<8x32xf32>
    %c0_150 = arith.constant 0 : index
    %c0_151 = arith.constant 0 : index
    %350 = vector.load %arg33[%c0_150, %c0_151] : memref<1x32xf32, #tpu.memory_space<vmem>>, vector<1x32xf32>
    %351 = vector.broadcast %350 : vector<1x32xf32> to vector<8x32xf32>
    %352 = arith.addf %349, %351 : vector<8x32xf32>
    %c0_152 = arith.constant 0 : index
    %c0_153 = arith.constant 0 : index
    %353 = vector.load %arg36[%c0_152, %c0_153] : memref<8x32xf32, #tpu.memory_space<vmem>>, vector<8x32xf32>
    tpu.vector_store %arg36[%c0_152, %c0_153], %352 {strides = array<i32>} : memref<8x32xf32, #tpu.memory_space<vmem>>, vector<8x32xf32>,
    %c0_154 = arith.constant 0 : index
    %c0_155 = arith.constant 0 : index
    %354 = vector.load %arg34[%c0_154, %c0_155] : memref<1x32xf32, #tpu.memory_space<vmem>>, vector<1x32xf32>
    %c0_156 = arith.constant 0 : index
    %c0_157 = arith.constant 0 : index
    %355 = vector.load %arg35[%c0_156, %c0_157] : memref<1x32xf32, #tpu.memory_space<vmem>>, vector<1x32xf32>
    %cst_158 = arith.constant dense<0.000000e+00> : vector<8xf32>
    %356 = vector.multi_reduction <add>, %352, %cst_158 [1] : vector<8x32xf32> to vector<8xf32>
    %357 = vector.shape_cast %356 : vector<8xf32> to vector<8x1xf32>
    %cst_159 = arith.constant 3.200000e+01 : f32
    %358 = vector.broadcast %cst_159 : f32 to vector<8x1xf32>
    %359 = arith.divf %357, %358 : vector<8x1xf32>
    %360 = vector.broadcast %359 : vector<8x1xf32> to vector<8x32xf32>
    %361 = arith.subf %352, %360 : vector<8x32xf32>
    %362 = vector.broadcast %359 : vector<8x1xf32> to vector<8x32xf32>
    %363 = arith.subf %352, %362 : vector<8x32xf32>
    %364 = arith.mulf %361, %363 : vector<8x32xf32>
    %cst_160 = arith.constant dense<0.000000e+00> : vector<8xf32>
    %365 = vector.multi_reduction <add>, %364, %cst_160 [1] : vector<8x32xf32> to vector<8xf32>
    %366 = vector.shape_cast %365 : vector<8xf32> to vector<8x1xf32>
    %cst_161 = arith.constant 3.200000e+01 : f32
    %367 = vector.broadcast %cst_161 : f32 to vector<8x1xf32>
    %368 = arith.divf %366, %367 : vector<8x1xf32>
    %369 = vector.broadcast %359 : vector<8x1xf32> to vector<8x32xf32>
    %370 = arith.subf %352, %369 : vector<8x32xf32>
    %cst_162 = arith.constant 9.99999974E-6 : f32
    %371 = vector.broadcast %cst_162 : f32 to vector<8x1xf32>
    %372 = arith.addf %368, %371 : vector<8x1xf32>
    %373 = math.rsqrt %372 : vector<8x1xf32>
    %374 = vector.broadcast %373 : vector<8x1xf32> to vector<8x32xf32>
    %375 = arith.mulf %370, %374 : vector<8x32xf32>
    %376 = vector.broadcast %354 : vector<1x32xf32> to vector<8x32xf32>
    %377 = arith.mulf %375, %376 : vector<8x32xf32>
    %378 = vector.broadcast %355 : vector<1x32xf32> to vector<8x32xf32>
    %379 = arith.addf %377, %378 : vector<8x32xf32>
    %c0_163 = arith.constant 0 : index
    %c0_164 = arith.constant 0 : index
    %380 = vector.load %arg37[%c0_163, %c0_164] : memref<8x32xf32, #tpu.memory_space<vmem>>, vector<8x32xf32>
    tpu.vector_store %arg37[%c0_163, %c0_164], %379 {strides = array<i32>} : memref<8x32xf32, #tpu.memory_space<vmem>>, vector<8x32xf32>,
    return
  }
  func.func @transform_0(%arg0: i32, %arg1: memref<2x2xi32, #tpu.memory_space<smem>>) -> (i32, i32) {
    %c0_i32 = arith.constant 0 : i32
    %c0_i32_0 = arith.constant 0 : i32
    return %arg0, %c0_i32 : i32, i32
  }
  func.func @transform_1(%arg0: i32, %arg1: memref<2x2xi32, #tpu.memory_space<smem>>) -> (i32, i32) {
    %c0_i32 = arith.constant 0 : i32
    %c0_i32_0 = arith.constant 0 : i32
    return %arg0, %c0_i32 : i32, i32
  }
  func.func @transform_2(%arg0: i32, %arg1: memref<2x2xi32, #tpu.memory_space<smem>>) -> (i32, i32) {
    %c0_i32 = arith.constant 0 : i32
    %c0_i32_0 = arith.constant 0 : i32
    return %arg0, %c0_i32 : i32, i32
  }
  func.func @transform_3(%arg0: i32, %arg1: memref<2x2xi32, #tpu.memory_space<smem>>) -> (i32, i32) {
    %c0_i32 = arith.constant 0 : i32
    %c0_i32_0 = arith.constant 0 : i32
    %c0_i32_1 = arith.constant 0 : i32
    return %c0_i32, %c0_i32_0 : i32, i32
  }
  func.func @transform_4(%arg0: i32, %arg1: memref<2x2xi32, #tpu.memory_space<smem>>) -> (i32, i32) {
    %c0_i32 = arith.constant 0 : i32
    %c0_i32_0 = arith.constant 0 : i32
    %c0_i32_1 = arith.constant 0 : i32
    return %c0_i32, %c0_i32_0 : i32, i32
  }
  func.func @transform_5(%arg0: i32, %arg1: memref<2x2xi32, #tpu.memory_space<smem>>) -> (i32, i32) {
    %c0_i32 = arith.constant 0 : i32
    %c0_i32_0 = arith.constant 0 : i32
    %c0_i32_1 = arith.constant 0 : i32
    return %c0_i32, %c0_i32_0 : i32, i32
  }
  func.func @transform_6(%arg0: i32, %arg1: memref<2x2xi32, #tpu.memory_space<smem>>) -> (i32, i32) {
    %c0_i32 = arith.constant 0 : i32
    %c0_i32_0 = arith.constant 0 : i32
    %c0_i32_1 = arith.constant 0 : i32
    return %c0_i32, %c0_i32_0 : i32, i32
  }
  func.func @transform_7(%arg0: i32, %arg1: memref<2x2xi32, #tpu.memory_space<smem>>) -> (i32, i32) {
    %c0_i32 = arith.constant 0 : i32
    %c0_i32_0 = arith.constant 0 : i32
    %c0_i32_1 = arith.constant 0 : i32
    return %c0_i32, %c0_i32_0 : i32, i32
  }
  func.func @transform_8(%arg0: i32, %arg1: memref<2x2xi32, #tpu.memory_space<smem>>) -> (i32, i32) {
    %c0_i32 = arith.constant 0 : i32
    %c0_i32_0 = arith.constant 0 : i32
    %c0_i32_1 = arith.constant 0 : i32
    return %c0_i32, %c0_i32_0 : i32, i32
  }
  func.func @transform_9(%arg0: i32, %arg1: memref<2x2xi32, #tpu.memory_space<smem>>) -> (i32, i32) {
    %c0_i32 = arith.constant 0 : i32
    %c0_i32_0 = arith.constant 0 : i32
    %c0_i32_1 = arith.constant 0 : i32
    return %c0_i32, %c0_i32_0 : i32, i32
  }
  func.func @transform_10(%arg0: i32, %arg1: memref<2x2xi32, #tpu.memory_space<smem>>) -> (i32, i32) {
    %c0_i32 = arith.constant 0 : i32
    %c0_i32_0 = arith.constant 0 : i32
    %c0_i32_1 = arith.constant 0 : i32
    return %c0_i32, %c0_i32_0 : i32, i32
  }
  func.func @transform_11(%arg0: i32, %arg1: memref<2x2xi32, #tpu.memory_space<smem>>) -> (i32, i32) {
    %c0_i32 = arith.constant 0 : i32
    %c0_i32_0 = arith.constant 0 : i32
    %c0_i32_1 = arith.constant 0 : i32
    return %c0_i32, %c0_i32_0 : i32, i32
  }
  func.func @transform_12(%arg0: i32, %arg1: memref<2x2xi32, #tpu.memory_space<smem>>) -> (i32, i32) {
    %c0_i32 = arith.constant 0 : i32
    %c0_i32_0 = arith.constant 0 : i32
    %c0_i32_1 = arith.constant 0 : i32
    return %c0_i32, %c0_i32_0 : i32, i32
  }
  func.func @transform_13(%arg0: i32, %arg1: memref<2x2xi32, #tpu.memory_space<smem>>) -> (i32, i32) {
    %c0_i32 = arith.constant 0 : i32
    %c0_i32_0 = arith.constant 0 : i32
    %c0_i32_1 = arith.constant 0 : i32
    return %c0_i32, %c0_i32_0 : i32, i32
  }
  func.func @transform_14(%arg0: i32, %arg1: memref<2x2xi32, #tpu.memory_space<smem>>) -> (i32, i32) {
    %c0_i32 = arith.constant 0 : i32
    %c0_i32_0 = arith.constant 0 : i32
    %c0_i32_1 = arith.constant 0 : i32
    return %c0_i32, %c0_i32_0 : i32, i32
  }
  func.func @transform_15(%arg0: i32, %arg1: memref<2x2xi32, #tpu.memory_space<smem>>) -> (i32, i32) {
    %c0_i32 = arith.constant 0 : i32
    %c0_i32_0 = arith.constant 0 : i32
    %c0_i32_1 = arith.constant 0 : i32
    return %c0_i32, %c0_i32_0 : i32, i32
  }
  func.func @transform_16(%arg0: i32, %arg1: memref<2x2xi32, #tpu.memory_space<smem>>) -> (i32, i32) {
    %c0_i32 = arith.constant 0 : i32
    %c0_i32_0 = arith.constant 0 : i32
    %c0_i32_1 = arith.constant 0 : i32
    return %c0_i32, %c0_i32_0 : i32, i32
  }
  func.func @transform_17(%arg0: i32, %arg1: memref<2x2xi32, #tpu.memory_space<smem>>) -> (i32, i32) {
    %c0_i32 = arith.constant 0 : i32
    %c0_i32_0 = arith.constant 0 : i32
    %c0_i32_1 = arith.constant 0 : i32
    return %c0_i32, %c0_i32_0 : i32, i32
  }
  func.func @transform_18(%arg0: i32, %arg1: memref<2x2xi32, #tpu.memory_space<smem>>) -> (i32, i32) {
    %c0_i32 = arith.constant 0 : i32
    %c0_i32_0 = arith.constant 0 : i32
    %c0_i32_1 = arith.constant 0 : i32
    return %c0_i32, %c0_i32_0 : i32, i32
  }
  func.func @transform_19(%arg0: i32, %arg1: memref<2x2xi32, #tpu.memory_space<smem>>) -> (i32, i32) {
    %c0_i32 = arith.constant 0 : i32
    %c0_i32_0 = arith.constant 0 : i32
    %c0_i32_1 = arith.constant 0 : i32
    return %c0_i32, %c0_i32_0 : i32, i32
  }
  func.func @transform_20(%arg0: i32, %arg1: memref<2x2xi32, #tpu.memory_space<smem>>) -> (i32, i32) {
    %c0_i32 = arith.constant 0 : i32
    %c0_i32_0 = arith.constant 0 : i32
    %c0_i32_1 = arith.constant 0 : i32
    return %c0_i32, %c0_i32_0 : i32, i32
  }
  func.func @transform_21(%arg0: i32, %arg1: memref<2x2xi32, #tpu.memory_space<smem>>) -> (i32, i32) {
    %c0_i32 = arith.constant 0 : i32
    %c0_i32_0 = arith.constant 0 : i32
    %c0_i32_1 = arith.constant 0 : i32
    return %c0_i32, %c0_i32_0 : i32, i32
  }
  func.func @transform_22(%arg0: i32, %arg1: memref<2x2xi32, #tpu.memory_space<smem>>) -> (i32, i32) {
    %c0_i32 = arith.constant 0 : i32
    %c0_i32_0 = arith.constant 0 : i32
    %c0_i32_1 = arith.constant 0 : i32
    return %c0_i32, %c0_i32_0 : i32, i32
  }
  func.func @transform_23(%arg0: i32, %arg1: memref<2x2xi32, #tpu.memory_space<smem>>) -> (i32, i32) {
    %c0_i32 = arith.constant 0 : i32
    %c0_i32_0 = arith.constant 0 : i32
    %c0_i32_1 = arith.constant 0 : i32
    return %c0_i32, %c0_i32_0 : i32, i32
  }
  func.func @transform_24(%arg0: i32, %arg1: memref<2x2xi32, #tpu.memory_space<smem>>) -> (i32, i32) {
    %c0_i32 = arith.constant 0 : i32
    %c0_i32_0 = arith.constant 0 : i32
    %c0_i32_1 = arith.constant 0 : i32
    return %c0_i32, %c0_i32_0 : i32, i32
  }
  func.func @transform_25(%arg0: i32, %arg1: memref<2x2xi32, #tpu.memory_space<smem>>) -> (i32, i32) {
    %c0_i32 = arith.constant 0 : i32
    %c0_i32_0 = arith.constant 0 : i32
    %c0_i32_1 = arith.constant 0 : i32
    return %c0_i32, %c0_i32_0 : i32, i32
  }
  func.func @transform_26(%arg0: i32, %arg1: memref<2x2xi32, #tpu.memory_space<smem>>) -> (i32, i32) {
    %c0_i32 = arith.constant 0 : i32
    %c0_i32_0 = arith.constant 0 : i32
    %c0_i32_1 = arith.constant 0 : i32
    return %c0_i32, %c0_i32_0 : i32, i32
  }
  func.func @transform_27(%arg0: i32, %arg1: memref<2x2xi32, #tpu.memory_space<smem>>) -> (i32, i32) {
    %c0_i32 = arith.constant 0 : i32
    %c0_i32_0 = arith.constant 0 : i32
    %c0_i32_1 = arith.constant 0 : i32
    return %c0_i32, %c0_i32_0 : i32, i32
  }
  func.func @transform_28(%arg0: i32, %arg1: memref<2x2xi32, #tpu.memory_space<smem>>) -> (i32, i32) {
    %c0_i32 = arith.constant 0 : i32
    %c0_i32_0 = arith.constant 0 : i32
    %c0_i32_1 = arith.constant 0 : i32
    return %c0_i32, %c0_i32_0 : i32, i32
  }
  func.func @transform_29(%arg0: i32, %arg1: memref<2x2xi32, #tpu.memory_space<smem>>) -> (i32, i32) {
    %c0_i32 = arith.constant 0 : i32
    %c0_i32_0 = arith.constant 0 : i32
    %c0_i32_1 = arith.constant 0 : i32
    return %c0_i32, %c0_i32_0 : i32, i32
  }
  func.func @transform_30(%arg0: i32, %arg1: memref<2x2xi32, #tpu.memory_space<smem>>) -> (i32, i32) {
    %c0_i32 = arith.constant 0 : i32
    %c0_i32_0 = arith.constant 0 : i32
    %c0_i32_1 = arith.constant 0 : i32
    return %c0_i32, %c0_i32_0 : i32, i32
  }
  func.func @transform_31(%arg0: i32, %arg1: memref<2x2xi32, #tpu.memory_space<smem>>) -> (i32, i32) {
    %c0_i32 = arith.constant 0 : i32
    %c0_i32_0 = arith.constant 0 : i32
    %c0_i32_1 = arith.constant 0 : i32
    return %c0_i32, %c0_i32_0 : i32, i32
  }
  func.func @transform_32(%arg0: i32, %arg1: memref<2x2xi32, #tpu.memory_space<smem>>) -> (i32, i32) {
    %c0_i32 = arith.constant 0 : i32
    %c0_i32_0 = arith.constant 0 : i32
    %c0_i32_1 = arith.constant 0 : i32
    return %c0_i32, %c0_i32_0 : i32, i32
  }
  func.func @transform_33(%arg0: i32, %arg1: memref<2x2xi32, #tpu.memory_space<smem>>) -> (i32, i32) {
    %c0_i32 = arith.constant 0 : i32
    %c0_i32_0 = arith.constant 0 : i32
    %c0_i32_1 = arith.constant 0 : i32
    return %c0_i32, %c0_i32_0 : i32, i32
  }
  func.func @transform_34(%arg0: i32, %arg1: memref<2x2xi32, #tpu.memory_space<smem>>) -> (i32, i32) {
    %c0_i32 = arith.constant 0 : i32
    %c0_i32_0 = arith.constant 0 : i32
    return %arg0, %c0_i32 : i32, i32
  }
  func.func @transform_35(%arg0: i32, %arg1: memref<2x2xi32, #tpu.memory_space<smem>>) -> (i32, i32) {
    %c0_i32 = arith.constant 0 : i32
    %c0_i32_0 = arith.constant 0 : i32
    return %arg0, %c0_i32 : i32, i32
  }
}

</mosaic_0001>

<bundles_post_ra>
// kernel: transformer_decoder_forward.2
= control target key start
LH: loop header
LB: loop body
LE: loop exit
PB: predicated region body
PF: predicated region fallthrough
CT: control target
= control target key end

     0   :  { %s3095_s6 = smov 1   ;;  %s3096_s10 = smov 2   ;;  %s3702_s0 = inlined_call_operand.smem [shape: u32[39], index: -1, kind: input, shape index: {}] }
   0x1   :  { %s3160_s5 = sld [smem:[%s3702_s0]]   ;;  %s3097_s14 = smov 3  }
   0x2   :  { %s3165_s9 = sld [smem:[%s3702_s0 + %s3095_s6]]   ;;  %s3098_s18 = smov 4  }
   0x3   :  { %s3170_s13 = sld [smem:[%s3702_s0 + %s3096_s10]]   ;;  %s3099_s22 = smov 5  }
   0x4   :  { %s3175_s17 = sld [smem:[%s3702_s0 + %s3097_s14]]   ;;  %s3100_s26 = smov 6  }
   0x5   :  { %s3180_s21 = sld [smem:[%s3702_s0 + %s3098_s18]]   ;;  %s3101_s30 = smov 7  }
   0x6   :  { %s3185_s25 = sld [smem:[%s3702_s0 + %s3099_s22]]   ;;  %s3102_s4 = smov 8  }
   0x7   :  { %s3190_s29 = sld [smem:[%s3702_s0 + %s3100_s26]]   ;;  %s3103_s10 = smov 9  }
   0x8   :  { %s3195_s3 = sld [smem:[%s3702_s0 + %s3101_s30]]   ;;  %s3104_s15 = smov 10  }
   0x9   :  { %s3200_s8 = sld [smem:[%s3702_s0 + %s3102_s4]]   ;;  %s3105_s20 = smov 11  }
   0xa   :  { %3729 = sst [smem:[#allocation12_spill]] %s3175_s17  ;;  %s3106_s26 = smov 12  }
   0xb   :  { %s3205_s14 = sld [smem:[%s3702_s0 + %s3103_s10]]   ;;  %s3107_s1 = smov 13  }
   0xc   :  { %3730 = sst [smem:[#allocation13_spill]] %s3185_s25  ;;  %s3108_s7 = smov 14  }
   0xd   :  { %3731 = sst [smem:[#allocation14_spill]] %s3190_s29  ;;  %s3110_s22 = smov 16  }
   0xe   :  { %3732 = sst [smem:[#allocation15_spill]] %s3195_s3  ;;  %s3111_s28 = smov 17  }
   0xf   :  { %s3210_s19 = sld [smem:[%s3702_s0 + %s3104_s15]]   ;;  %s3109_s15 = smov 15  }
  0x10   :  { %s3215_s24 = sld [smem:[%s3702_s0 + %s3105_s20]]   ;;  %s3131_s2 = smov 37  }
  0x11   :  { %s3220_s30 = sld [smem:[%s3702_s0 + %s3106_s26]]   ;;  %s3132_s11 = smov 38  }
  0x12   :  { %s3225_s6 = sld [smem:[%s3702_s0 + %s3107_s1]]  }
  0x13   :  { %s3230_s12 = sld [smem:[%s3702_s0 + %s3108_s7]]   ;;  %s3112_s7 = smov 18  }
  0x14   :  { %s3235_s20 = sld [smem:[%s3702_s0 + %s3109_s15]]   ;;  %s3113_s15 = smov 19  }
  0x15   :  { %s3240_s27 = sld [smem:[%s3702_s0 + %s3110_s22]]   ;;  %s3114_s22 = smov 20  }
  0x16   :  { %s3245_s4 = sld [smem:[%s3702_s0 + %s3111_s28]]   ;;  %s3115_s28 = smov 21  }
  0x17   :  { %s3250_s17 = sld [smem:[%s3702_s0 + %s3112_s7]]   ;;  %s3116_s7 = smov 22  }
  0x1a   :  { %3733 = sst [smem:[#allocation16_spill]] %s3235_s20 }
  0x1b   :  { %3734 = sst [smem:[#allocation17_spill]] %s3240_s27 }
  0x1c   :  { %3735 = sst [smem:[#allocation18_spill]] %s3245_s4 }
  0x1d   :  { %3736 = sst [smem:[#allocation19_spill]] %s3250_s17 }
  0x1e   :  { %s3255_s20 = sld [smem:[%s3702_s0 + %s3113_s15]]   ;;  %s3117_s15 = smov 23  }
  0x1f   :  { %s3260_s27 = sld [smem:[%s3702_s0 + %s3114_s22]]   ;;  %s3118_s22 = smov 24  }
  0x20   :  { %s3265_s4 = sld [smem:[%s3702_s0 + %s3115_s28]]   ;;  %s3119_s28 = smov 25  }
  0x21   :  { %s3270_s17 = sld [smem:[%s3702_s0 + %s3116_s7]]   ;;  %s3120_s7 = smov 26  }
  0x22   :  { %s3275_s29 = sld [smem:[%s3702_s0 + %s3117_s15]]   ;;  %s3121_s15 = smov 27  }
  0x23   :  { %s3285_s25 = sld [smem:[%s3702_s0 + %s3119_s28]]   ;;  %s3123_s28 = smov 29  }
  0x24   :  { %s3305_s10 = sld [smem:[%s3702_s0 + %s3123_s28]]   ;;  %s3127_s28 = smov 33  }
  0x25   :  { %3737 = sst [smem:[#allocation20_spill]] %s3260_s27 }
  0x26   :  { %s3280_s27 = sld [smem:[%s3702_s0 + %s3118_s22]]   ;;  %s3122_s22 = smov 28  }
  0x27   :  { %3738 = sst [smem:[#allocation21_spill]] %s3270_s17 }
  0x28   :  { %3739 = sst [smem:[#allocation22_spill]] %s3275_s29 }
  0x29   :  { %3741 = sst [smem:[#allocation24_spill]] %s3285_s25 }
  0x2a   :  { %s3290_s17 = sld [smem:[%s3702_s0 + %s3120_s7]]   ;;  %s3124_s7 = smov 30  }
  0x2b   :  { %s3295_s29 = sld [smem:[%s3702_s0 + %s3121_s15]]   ;;  %s3125_s15 = smov 31  }
  0x2c   :  { %3740 = sst [smem:[#allocation23_spill]] %s3280_s27 }
  0x2d   :  { %s3300_s27 = sld [smem:[%s3702_s0 + %s3122_s22]]   ;;  %s3126_s22 = smov 32  }
  0x2e   :  { %3745 = sst [smem:[#allocation28_spill]] %s3305_s10 }
  0x2f   :  { %s3310_s16 = sld [smem:[%s3702_s0 + %s3124_s7]]  }
  0x30   :  { %3742 = sst [smem:[#allocation25_spill]] %s3290_s17  ;;  %s3128_s17 = smov 34  }
  0x31   :  { %3743 = sst [smem:[#allocation26_spill]] %s3295_s29 }
  0x32   :  { %s3315_s23 = sld [smem:[%s3702_s0 + %s3125_s15]]   ;;  %s3129_s15 = smov 35  }
  0x33   :  { %3744 = sst [smem:[#allocation27_spill]] %s3300_s27 }
  0x34   :  { %s3320_s1 = sld [smem:[%s3702_s0 + %s3126_s22]]   ;;  %s3130_s22 = smov 36  }
  0x35   :  { %3746 = sst [smem:[#allocation29_spill]] %s3310_s16 }
  0x36   :  { %s3325_s25 = sld [smem:[%s3702_s0 + %s3127_s28]]   ;;  %s84_s28 = sshll.u32 %s3160_s5, 4  ;;  %s85_s28 = int_to_ptr.vmem [resolvable:$true] %s84_s28 }
  0x37   :  { %s3330_s29 = sld [smem:[%s3702_s0 + %s3128_s17]]  }
  0x38   :  { %3747 = sst [smem:[#allocation30_spill]] %s3315_s23 }
  0x39   :  { %s3335_s27 = sld [smem:[%s3702_s0 + %s3129_s15]]   ;;  %s3005_s15 = sshra.s32 %s85_s28, 4  ;;  %s3006_s15 = int_to_ptr.vmem [resolvable:$true] %s3005_s15 }
  0x3a   :  { %3748 = sst [smem:[#allocation31_spill]] %s3320_s1  ;;  %s3007_s18 = scalar_lea.vmem %s3006_s15, 2 }
  0x3b   :  { %s3340_s10 = sld [smem:[%s3702_s0 + %s3130_s22]]   ;;  %p3008_p0 = scmp.ne.s32.totalorder %s3006_s15, %s3007_s18 }
  0x3c   :  { %3749 = sst [smem:[#allocation32_spill]] %s3325_s25  ;;  %s3009_s1 = scalar_lea.vmem %s3160_s5, 2 }
  0x3d   :  { %3750 = sst [smem:[#allocation33_spill]] %s3330_s29  ;;  %p3010_p1 = scmp.lt.s32.totalorder %s3006_s15, %s3160_s5 }
  0x3e   :  { %s3346_s17 = sld [smem:[%s3702_s0 + %s3131_s2]]   ;;  %p3011_p2 = scmp.lt.s32.totalorder %s3009_s1, %s3007_s18 }
  0x3f   :  { %s3351_s16 = sld [smem:[%s3702_s0 + %s3132_s11]]  }
  0x40   :  { %p3012_p3 = por %p3011_p2, %p3010_p1 }
  0x42   :  { %p3013_p4 = pnand %p3012_p3, %p3008_p0 }
  0x44   :  { %3016 = shalt.err (!%p3013_p4)  }
  0x45   :  { %s3133_s25 = smov [#allocation4]  }
  0x46   :  { %87 = dma.vmem_to_smem %s85_s28, 32, %s3133_s25, [#allocation3] }
  0x47   :  { %3081 = dma.done.wait [#allocation3], 32 }
  0x48   :  { %3082 = vsyncadd [#allocation3], 4294967264 }
  0x49   :  { %90 = sfence }
  0x4a   :  { %91 = vsyncpa [#allocation6], 0 }
  0x4b   :  { %92 = vsyncpa [#allocation8], 0  ;;  %s3355_s23 = smov 0  }
  0x4c LB: > { %s1031_s0 = sshll.u32 %s3335_s27, 4  ;;  %s3362_s5 = sadd.s32 4294967295, %s3093_s23   ;;  %s3093_s23 = sphi %s3355_s23, %s98_s23   ;;  %s1032_s0 = int_to_ptr.hbm [resolvable:$true] %s1031_s0 }
  0x4d   : > { %p2682_p5 = scmp.ge.s32.totalorder %s3093_s23, 1  ;;  %p926_p6 = scmp.lt.s32.totalorder %s3093_s23, 3 }
  0x4e   : > { %p2875_p7 = scmp.eq.s32.totalorder %s3362_s5, 0  ;;  %s3134_s22 = smov [#allocation5]  }
  0x4f   : > { %p3367_p8 = pnand %p2682_p5, %p926_p6  ;;  %s1033_s26 = sshll.u32 %s3134_s22, 4  ;;  %s1034_s26 = int_to_ptr.vmem [resolvable:$true] %s1033_s26 }
  0x50   : > { %s1043_s28 = sshll.u32 %s3340_s10, 4  ;;  %s3135_s7 = smov [#allocation7]   ;;  %s1044_s28 = int_to_ptr.hbm [resolvable:$true] %s1043_s28 }
  0x51   : > { %p2868_p9 = pneg %p3367_p8  ;;  %s3380_s11 = sshll.u32 %s3135_s7, 4  ;;  %s1046_s11 = int_to_ptr.vmem [resolvable:$true] %s3380_s11 }
  0x52   : > { %s3017_s15 = sshra.s32 %s1032_s0, 4  ;;  %s3024_s1 = scalar_lea.hbm %s3335_s27, 1  ;;  %s3018_s15 = int_to_ptr.hbm [resolvable:$true] %s3017_s15 }
  0x53   : > { %p3376_p10 = pnand %p2875_p7, %p2868_p9  ;;  %s3019_s18 = scalar_lea.hbm %s3018_s15, 1 }
  0x54   : > { %p3020_p11 = scmp.ne.s32.totalorder %s3018_s15, %s3019_s18  ;;  %p3025_p1 = scmp.lt.s32.totalorder %s3018_s15, %s3335_s27 }
  0x55   : > { %p3021_p12 = pneg %p3376_p10  ;;  %p3026_p2 = scmp.lt.s32.totalorder %s3024_s1, %s3019_s18 }
  0x57   : > { %p3022_p13 = pnand %p3021_p12, %p3020_p11  ;;  %p3027_p3 = por %p3026_p2, %p3025_p1 }
  0x59   : > { %p3023_p0 = pneg %p3022_p13 }
  0x5b   : > { %p3028_p4 = pnand %p3027_p3, %p3023_p0 }
  0x5d   : > { %3031 = shalt.err (!%p3028_p4)
}
  0x5e   : > { %2871 = dma.hbm_to_vmem [thread:$0]  (!%p3376_p10), %s1032_s0, 16, %s1034_s26, [#allocation6]  }
  0x5f   : > { %s3047_s25 = sshra.s32 %s1044_s28, 4  ;;  %s3054_s7 = scalar_lea.hbm %s3340_s10, 1  ;;  %s3048_s25 = int_to_ptr.hbm [resolvable:$true] %s3047_s25 }
  0x60   : > { %s3049_s22 = scalar_lea.hbm %s3048_s25, 1  ;;  %p3055_p11 = scmp.lt.s32.totalorder %s3048_s25, %s3340_s10 }
  0x61   : > { %p3050_p5 = scmp.ne.s32.totalorder %s3048_s25, %s3049_s22  ;;  %p3056_p13 = scmp.lt.s32.totalorder %s3054_s7, %s3049_s22 }
  0x63   : > { %p3052_p6 = pnand %p3050_p5, %p3021_p12  ;;  %p3057_p1 = por %p3056_p13, %p3055_p11 }
  0x65   : > { %p3053_p9 = pneg %p3052_p6 }
  0x67   : > { %p3058_p0 = pnand %p3057_p1, %p3053_p9 }
  0x69   : > { %3061 = shalt.err (!%p3058_p0)
}
  0x6a   : > { %2874 = dma.hbm_to_vmem [thread:$0]  (!%p3376_p10), %s1044_s28, 16, %s1046_s11, [#allocation8]  }
  0x6b   : > { %1079 = sbr.rel (%p3367_p8) target bundleno = 3835 (0xefb), region = 164 }
  0x70   : > { %3084 = dma.done.wait (%p2875_p7), [#allocation6], 16  }
  0x71   : > { %3086 = vsyncadd (%p2875_p7), [#allocation6], 4294967280 }
  0x72   : > { %3088 = dma.done.wait (%p2875_p7), [#allocation8], 16  }
  0x73   : > { %3090 = vsyncadd (%p2875_p7), [#allocation8], 4294967280  ;;  %p1187_p12 = scmp.lt.s32.totalorder %s3362_s5, 1  ;;  %vm1213_vm0 = vcmask 261120   ;;  %v3136_v2 = vmov 32.0   ;;  %v2837_v14 = vld [vmem:[%s3215_s24 + $0x8] sm:$0xff] }
  0x74   : > { %2963 = vrcp.f32 %v3136_v2  ;;  %1317 = vmatpush.bf16.msra.mxu1 %v2837_v14  ;;  %v2836_v15 = vld [vmem:[%s3215_s24] sm:$0xff]  ;;  %v2835_v17 = vld [vmem:[%s3205_s14 + $0x8] sm:$0xff]  ;;  %s3753_s3 = sld [smem:[#allocation15_spill]]  ;;  %s3137_s11 = smov 64   ;;  %vm1373_vm5 = vcmask 1043456   ;;  %vm1333_vm6 = vcmask 64512  }
  0x75   : > { %s3411_s0 = scalar_select %p1187_p12, %s3362_s5, 1  ;;  %1281 = vmatpush.bf16.msra.mxu0 %v2835_v17  ;;  %v2834_v18 = vld [vmem:[%s3205_s14] sm:$0xff]  ;;  %vm1455_vm7 = vcmask 130112   ;;  %vm1519_vm8 = vcmask 195712   ;;  %vm1583_vm9 = vcmask 261312  }
  0x76   : > { %v2945_v31 = vld [vmem:[%s3200_s8] ss:$0 sm:$0xff]  ;;  %s3724_s15 = smov 120   ;;  %s3726_s18 = smov 96  }
  0x77   : > { %s3414_s29 = sshll.u32 %s3411_s0, 3  ;;  %s2690_s28 = sshll.u32 %s3411_s0, 2  ;;  %v2946_v37 = vld [vmem:[%s3220_s30] ss:$0 sm:$0xff] }
  0x78   : > { %s1190_s26 = scalar_lea.vmem %s3165_s9, %s3414_s29  ;;  %s1194_s2 = scalar_lea.vmem %s3170_s13, %s2690_s28  ;;  %1318 = vmatpush.bf16.msra.mxu1 %v2836_v15  ;;  %v2947_v38 = vld [vmem:[%s3210_s19] ss:$0 sm:$0xff] }
  0x79   : > { %v3418_v0 = vld [vmem:[%s1190_s26] sm:$0xff]  ;;  %1282 = vmatpush.bf16.msra.mxu0 %v2834_v18  ;;  %s3722_s1 = smov 88   ;;  %s3720_s25 = smov 104  }
  0x7a   : > { %v1214_v1 = vsel %vm1213_vm0, %v3418_v0, 0.0  ;;  %v2964_v3 = vpop.eup %2963  ;;  %v3433_v16 = vld [vmem:[%s1194_s2] sm:$0xf]  ;;  %s3716_s22 = smov 80   ;;  %s3711_s7 = smov 72  }
  0x7b   : > { %1215 = vadd.xlane.f32.xlu0 %v1214_v1  ;;  %v1218_v4 = vmul.f32 32.0, %v2964_v3  ;;  %vm1222_vm1 = vweird.f32 %v2964_v3  ;;  %2711 = vmatmul.msk.bf16.vlgmr.msra.gmra.mxu1 %vm1213_vm0, %v3433_v16  ;;  %v2944_v28 = vld [vmem:[%s3753_s3] ss:$0 sm:$0xff]  ;;  %s3718_s26 = smov 112   ;;  %s3145_s2 = smov 40  }
  0x7c   : > { %v1327_v61 = vld [vmem:[%s3180_s21] sm:$0xff]  ;;  %s3762_s0 = sld [smem:[#allocation17_spill]] }
  0x7d   : > { %v1219_v5 = vsub.f32 1.0, %v1218_v4  ;;  %s3771_s3 = sld [smem:[#allocation25_spill]] }
  0x7f   : > { %v1220_v6 = vmul.f32 %v2964_v3, %v1219_v5 }
  0x81   : > { %v1221_v7 = vadd.f32 %v2964_v3, %v1220_v6 }
  0x83   : > { %v3422_v8 = vsel %vm1222_vm1, %v2964_v3, %v1221_v7  ;;  %vm1963_vm1 = vcmask 195584  }
  0xee   : > { %v1216_v9 = vpop.xlane.xlu0 %1215 }
  0xef   : > { %v1224_v10 = vmul.f32 %v3422_v8, %v1216_v9 }
  0xf1   : > { %v1225_v11 = vsub.f32 %v3418_v0, %v1224_v10 }
  0xf3   : > { %v1226_v12 = vmul.f32 %v1225_v11, %v1225_v11 }
  0xf5   : > { %v1227_v13 = vsel %vm1213_vm0, %v1226_v12, 0.0 }
  0xf6   : > { %1228 = vadd.xlane.f32.xlu0 %v1227_v13 }
  0xf8   : > { %v1320_v35 = vpop.f32.mrf.mxu1 }
  0xf9   : > { %v1321_v39 = vadd.f32 %v2946_v37, %v1320_v35 }
 0x100   : > { %v1322_v36 = vpop.f32.mrf.mxu1 }
 0x169   : > { %v1229_v19 = vpop.xlane.xlu0 %1228 }
 0x16a   : > { %v1230_v20 = vmul.f32 %v1229_v19, %v3422_v8 }
 0x16c   : > { %v1231_v21 = vadd.f32 1e-05, %v1230_v20 }
 0x16e   : > { %2965 = vrsqrt.f32 %v1231_v21  ;;  %vm1238_vm3 = vweird.f32 %v1231_v21 }
 0x174   : > { %v2966_v22 = vpop.eup %2965 }
 0x175   : > { %v1233_v23 = vmul.f32 %v2966_v22, %v1231_v21  ;;  %vm1239_vm2 = vweird.f32 %v2966_v22 }
 0x176   : > { %vm1240_vm4 = vmor %vm1238_vm3, %vm1239_vm2 }
 0x177   : > { %v1234_v24 = vmul.f32 %v2966_v22, %v1233_v23 }
 0x179   : > { %v1235_v25 = vmul.f32 0.5, %v1234_v24 }
 0x17b   : > { %v1236_v26 = vsub.f32 1.5, %v1235_v25 }
 0x17d   : > { %v1237_v27 = vmul.f32 %v2966_v22, %v1236_v26 }
 0x17f   : > { %v1241_v29 = vsel %vm1240_vm4, %v2966_v22, %v1237_v27 }
 0x180   : > { %v1242_v30 = vmul.f32 %v1241_v29, %v1225_v11 }
 0x182   : > { %v1246_v32 = vmul.f32 %v2944_v28, %v1242_v30 }
 0x184   : > { %v1250_v33 = vadd.f32 %v2945_v31, %v1246_v32 }
 0x186   : > { %v1251_v34 = vpack.c.bf16 %v1250_v33, %v1250_v33 }
 0x188   : > { %2702 = vmatmul.msk.bf16.vlgmr.msra.gmra.mxu0 %vm1213_vm0, %v1251_v34 }
 0x205   : > { %v1284_v40 = vpop.f32.mrf.mxu0 }
 0x206   : > { %v1285_v41 = vadd.f32 %v2947_v38, %v1284_v40 }
 0x208   : > { %v1324_v42 = vadd.f32 %v1321_v39, %v1285_v41  ;;  %v1326_v43 = vpack.c.bf16 %v1285_v41, %v1285_v41 }
 0x20a   : > { %v1325_v44 = vpack.c.bf16 %v1324_v42, %v1324_v42  ;;  %v1366_v45 = vunpack.c.l.b16 %v1326_v43 }
 0x20c   : > { %v1329_v46 = vunpack.c.l.b16 %v1325_v44  ;;  %v3445_v47 = vpack.c.b16 %v1366_v45, %v1366_v45 }
 0x20d   : > { %v1286_v48 = vpop.f32.mrf.mxu0 }
 0x20e   : > { %v1330_v49 = vpack.c.b16 %v1329_v46, %v1329_v46  ;;  %1368 = vrot.lane.b32.xlu2 %v3445_v47, %s3137_s11  ;;  %s3146_s11 = smov 56  }
 0x210   : > { %1393 = vrot.lane.b32.xlu0 %v1330_v49, %s3724_s15  ;;  %1331 = vrot.lane.b32.xlu1 %v1330_v49, %s3726_s18  ;;  %s3760_s15 = sld [smem:[#allocation20_spill]] }
 0x211   : > { %s3761_s18 = sld [smem:[#allocation16_spill]] }
 0x216   : > { %1395 = vrot.lane.b32.xlu2 %v1330_v49, %s3722_s1 }
 0x218   : > { %1521 = vrot.lane.b32.xlu0 %v1330_v49, %s3720_s25  ;;  %s3759_s25 = sld [smem:[#allocation24_spill]] }
 0x21e   : > { %1459 = vrot.lane.b32.xlu2 %v1330_v49, %s3716_s22  ;;  %s3757_s22 = sld [smem:[#allocation12_spill]] }
 0x224   : > { %s1198_s1 = scalar_lea.vmem %s3757_s22, %s2690_s28  ;;  %s3763_s28 = sld [smem:[#allocation21_spill]] }
 0x225   : > { %s3767_s22 = sld [smem:[#allocation23_spill]] }
 0x226   : > { %1523 = vrot.lane.b32.xlu2 %v1330_v49, %s3711_s7  ;;  %s3713_s7 = smov 24  }
 0x22e   : > { %1457 = vrot.lane.b32.xlu2 %v1330_v49, %s3718_s26  ;;  %s3758_s26 = sld [smem:[#allocation18_spill]] }
 0x268   : > { %v1369_v50 = vpop.permute.xlu2 %1368 }
 0x269   : > { %v1375_v51 = vsel %vm1373_vm5, %v1369_v50, 0 }
 0x26a   : > { %1384 = vmatpush.bf16.msra.mxu3 %v1375_v51 }
 0x270   : > { %v1396_v52 = vpop.permute.xlu2 %1395 }
 0x271   : > { %v1401_v53 = vsel %vm1333_vm6, %v1396_v52, 0 }
 0x272   : > { %1410 = vmatpush.bf16.xpose.msrb.mxu3 %v1401_v53 }
 0x278   : > { %v1460_v54 = vpop.permute.xlu2 %1459 }
 0x279   : > { %v1465_v55 = vsel %vm1333_vm6, %v1460_v54, 0 }
 0x27a   : > { %1474 = vmatpush.bf16.xpose.msrb.mxu1 %v1465_v55 }
 0x280   : > { %v1524_v56 = vpop.permute.xlu2 %1523 }
 0x281   : > { %v1529_v22 = vsel %vm1333_vm6, %v1524_v56, 0 }
 0x282   : > { %v1332_v57 = vpop.permute.xlu1 %1331  ;;  %v1394_v9 = vpop.permute.xlu0 %1393 }
 0x283   : > { %v1338_v58 = vsel %vm1333_vm6, %v1332_v57, 0 }
 0x284   : > { %1347 = vmatpush.bf16.xpose.msra.mxu2 %v1338_v58 }
 0x288   : > { %v1458_v59 = vpop.permute.xlu2 %1457 }
 0x289   : > { %2716 = vmatmul.msk.bf16.vlgmr.msrb.gmra.mxu1 %vm1333_vm6, %v1458_v59 }
 0x28a   : > { %v1522_v10 = vpop.permute.xlu0 %1521 }
 0x28b   : > { %2712 = vmatmul.msk.bf16.vlgmr.msra.gmra.mxu2 %vm1333_vm6, %v1325_v44 }
 0x306   : > { %v1476_v60 = vpop.f32.mrf.mxu1 }
 0x307   : > { %v1480_v62 = vmul.f32 0.35355338, %v1476_v60 }
 0x309   : > { %v1481_v63 = vadd.f32 %v1480_v62, %v1327_v61 }
 0x30b   : > { %v1482_v1 = vsel %vm1333_vm6, %v1481_v63, -inf }
 0x30c   : > { %1483 = vmax.xlane.f32.xlu0 %v1482_v1 }
 0x30e   : > { %v1349_v2 = vpop.f32.mrf.mxu2  ;;  %v1478_v3 = vpop.f32.mrf.mxu1 }
 0x30f   : > { %v1353_v4 = vmul.f32 0.35355338, %v1349_v2 }
 0x311   : > { %v1354_v5 = vadd.f32 %v1353_v4, %v1327_v61 }
 0x313   : > { %v1355_v6 = vsel %vm1333_vm6, %v1354_v5, -inf }
 0x314   : > { %1356 = vmax.xlane.f32.xlu1 %v1355_v6 }
 0x316   : > { %v1351_v7 = vpop.f32.mrf.mxu2 }
 0x320   : > { %1556 = vrot.lane.b32.xlu0 %v3445_v47, %s3145_s2  ;;  %s3147_s2 = smov 48  }
 0x32d   : > { %1428 = vrot.lane.b32.xlu1 %v3445_v47, %s3146_s11  ;;  %s3715_s11 = smov 8  }
 0x37f   : > { %v1484_v11 = vpop.xlane.xlu0 %1483 }
 0x380   : > { %v1485_v12 = vsub.f32 %v1481_v63, %v1484_v11  ;;  %v2839_v11 = vld [vmem:[%s3225_s6 + $0x8] sm:$0xff] }
 0x381   : > { %1612 = vmatpush.bf16.msra.mxu1 %v2839_v11  ;;  %v2951_v11 = vld [vmem:[%s3763_s28] ss:$0 sm:$0xff]  ;;  %s3769_s28 = sld [smem:[#allocation19_spill]] }
 0x382   : > { %v1486_v13 = vmul.f32 1.442695, %v1485_v12  ;;  %v2838_v12 = vld [vmem:[%s3225_s6] sm:$0xff] }
 0x384   : > { %2967 = vpow2.f32 %v1486_v13 }
 0x385   : > { %1613 = vmatpush.bf16.msra.mxu1 %v2838_v12 }
 0x387   : > { %v1357_v14 = vpop.xlane.xlu1 %1356 }
 0x388   : > { %v1358_v15 = vsub.f32 %v1354_v5, %v1357_v14 }
 0x38a   : > { %v2968_v17 = vpop.eup %2967  ;;  %v1359_v18 = vmul.f32 1.442695, %v1358_v15 }
 0x38b   : > { %v1488_v19 = vsel %vm1333_vm6, %v2968_v17, 0.0  ;;  %v1491_v45 = vpack.c.bf16 %v2968_v17, %v2968_v17 }
 0x38c   : > { %2969 = vpow2.f32 %v1359_v18  ;;  %1489 = vadd.xlane.f32.xlu0 %v1488_v19  ;;  %v2948_v19 = vld [vmem:[%s3230_s12] ss:$0 sm:$0xff] }
 0x392   : > { %v2970_v20 = vpop.eup %2969  ;;  %v1557_v23 = vpop.permute.xlu0 %1556 }
 0x393   : > { %v1364_v21 = vpack.c.bf16 %v2970_v20, %v2970_v20  ;;  %v1562_v26 = vsel %vm1373_vm5, %v1557_v23, 0  ;;  %v1361_v54 = vsel %vm1333_vm6, %v2970_v20, 0.0 }
 0x395   : > { %2713 = vmatmul.msk.bf16.vlgmr.msra.gmra.mxu3 %vm1333_vm6, %v1364_v21 }
 0x396   : > { %1538 = vmatpush.bf16.xpose.msra.mxu3 %v1529_v22 }
 0x39f   : > { %v1429_v24 = vpop.permute.xlu1 %1428 }
 0x3a0   : > { %v1434_v25 = vsel %vm1373_vm5, %v1429_v24, 0 }
 0x3a1   : > { %1443 = vmatpush.bf16.msrb.mxu0 %v1434_v25  ;;  %v2844_v25 = vld [vmem:[%s3255_s20 + $0x8] sm:$0xff] }
 0x3a5   : > { %1571 = vmatpush.bf16.msra.mxu0 %v1562_v26  ;;  %2714 = vmatmul.msk.bf16.vlgmr.msrb.gmra.mxu3 %vm1333_vm6, %v1394_v9  ;;  %v2847_v26 = vld [vmem:[%s3265_s4 + $0x8] sm:$0xff] }
 0x3a6   : > { %1737 = vmatpush.bf16.msrb.mxu3 %v2844_v25 }
 0x3b5   : > { %2718 = vmatmul.msk.bf16.vlgmr.msra.gmra.mxu3 %vm1333_vm6, %v1522_v10 }
 0x3ff   : > { %v1490_v56 = vpop.xlane.xlu0 %1489 }
 0x418   : > { %v3473_v27 = vpop.f32.mrf.mxu3 }
 0x420   : > { %v1388_v28 = vpop.f32.mrf.mxu3 }
 0x421   : > { %v2846_v28 = vld [vmem:[%s3265_s4] sm:$0xff] }
 0x428   : > { %v1412_v29 = vpop.f32.mrf.mxu3 }
 0x429   : > { %v1416_v30 = vmul.f32 0.35355338, %v1412_v29 }
 0x42b   : > { %v1417_v31 = vadd.f32 %v1416_v30, %v1327_v61 }
 0x42d   : > { %v1418_v32 = vsel %vm1333_vm6, %v1417_v31, -inf }
 0x42e   : > { %1419 = vmax.xlane.f32.xlu2 %v1418_v32 }
 0x430   : > { %v1414_v33 = vpop.f32.mrf.mxu3 }
 0x438   : > { %v1540_v34 = vpop.f32.mrf.mxu3 }
 0x439   : > { %v1544_v35 = vmul.f32 0.35355338, %v1540_v34 }
 0x43b   : > { %v1545_v36 = vadd.f32 %v1544_v35, %v1327_v61 }
 0x43d   : > { %v1546_v37 = vsel %vm1333_vm6, %v1545_v36, -inf }
 0x43e   : > { %1547 = vmax.xlane.f32.xlu1 %v1546_v37 }
 0x440   : > { %v1542_v38 = vpop.f32.mrf.mxu3 }
 0x446   : > { %1492 = vrot.lane.b32.xlu2 %v3445_v47, %s3147_s2  ;;  %s3714_s2 = smov 16  }
 0x4a1   : > { %v1420_v39 = vpop.xlane.xlu2 %1419 }
 0x4a2   : > { %v1421_v40 = vsub.f32 %v1417_v31, %v1420_v39 }
 0x4a4   : > { %v1422_v41 = vmul.f32 1.442695, %v1421_v40 }
 0x4a6   : > { %2971 = vpow2.f32 %v1422_v41 }
 0x4a9   : > { %v1493_v42 = vpop.permute.xlu2 %1492 }
 0x4aa   : > { %v1498_v43 = vsel %vm1373_vm5, %v1493_v42, 0 }
 0x4ab   : > { %1507 = vmatpush.bf16.msrb.mxu2 %v1498_v43  ;;  %v2842_v43 = vld [vmem:[%s3758_s26 + $0x8] sm:$0xff] }
 0x4ac   : > { %v2972_v44 = vpop.eup %2971 }
 0x4ad   : > { %v1424_v46 = vsel %vm1333_vm6, %v2972_v44, 0.0  ;;  %v1427_v48 = vpack.c.bf16 %v2972_v44, %v2972_v44  ;;  %v1210_v44 = vld [vmem:[%s1198_s1] sm:$0xf]  ;;  %s3766_s1 = smov 88  }
 0x4ae   : > { %1425 = vadd.xlane.f32.xlu2 %v1424_v46  ;;  %2717 = vmatmul.msk.bf16.vlgmr.msrb.gmra.mxu2 %vm1333_vm6, %v1491_v45  ;;  %v2841_v45 = vld [vmem:[%s3758_s26] sm:$0xff]  ;;  %v2851_v46 = vld [vmem:[%s3759_s25 + $0x8] sm:$0xff] }
 0x4af   : > { %2715 = vmatmul.msk.bf16.vlgmr.msrb.gmra.mxu0 %vm1333_vm6, %v1427_v48  ;;  %1690 = vmatpush.bf16.msra.mxu2 %v2842_v43 }
 0x4b0   : > { %1795 = vmatpush.bf16.msrb.mxu0 %v2847_v26 }
 0x4b1   : > { %v1548_v49 = vpop.xlane.xlu1 %1547 }
 0x4b2   : > { %v1549_v47 = vsub.f32 %v1545_v36, %v1548_v49 }
 0x4b3   : > { %1691 = vmatpush.bf16.msra.mxu2 %v2841_v45 }
 0x4b4   : > { %v1550_v50 = vmul.f32 1.442695, %v1549_v47  ;;  %1796 = vmatpush.bf16.msrb.mxu0 %v2846_v28  ;;  %v2850_v47 = vld [vmem:[%s3759_s25] sm:$0xff] }
 0x4b6   : > { %2973 = vpow2.f32 %v1550_v50 }
 0x4b7   : > { %1865 = vmatpush.bf16.msrb.mxu2 %v2851_v46 }
 0x4bb   : > { %1866 = vmatpush.bf16.msrb.mxu2 %v2850_v47 }
 0x4bc   : > { %v2974_v51 = vpop.eup %2973 }
 0x4bd   : > { %v1555_v52 = vpack.c.bf16 %v2974_v51, %v2974_v51  ;;  %v1552_v53 = vsel %vm1333_vm6, %v2974_v51, 0.0 }
 0x4be   : > { %1553 = vadd.xlane.f32.xlu1 %v1552_v53 }
 0x4bf   : > { %2719 = vmatmul.msk.bf16.vlgmr.msra.gmra.mxu0 %vm1333_vm6, %v1555_v52 }
 0x4c6   : > { %1362 = vadd.xlane.f32.xlu1 %v1361_v54 }
 0x521   : > { %v1426_v55 = vpop.xlane.xlu2 %1425 }
 0x522   : > { %2975 = vrcp.f32 %v1426_v55 }
 0x523   : > { %2977 = vrcp.f32 %v1490_v56 }
 0x528   : > { %v2976_v57 = vpop.eup %2975 }
 0x529   : > { %v2978_v60 = vpop.eup %2977 }
 0x52c   : > { %v1445_v58 = vpop.f32.mrf.mxu0 }
 0x52d   : > { %v1450_v59 = vmul.f32 %v2976_v57, %v1445_v58  ;;  %v2952_v57 = vld [vmem:[%s3760_s15] ss:$0 sm:$0xff]  ;;  %s3764_s15 = smov 96  }
 0x52f   : > { %1452 = vrot.lane.b32.xlu1 %v1450_v59, %s3715_s11  ;;  %s3756_s11 = sld [smem:[#allocation22_spill]] }
 0x531   : > { %v1554_v61 = vpop.xlane.xlu1 %1553  ;;  %v1509_v62 = vpop.f32.mrf.mxu2 }
 0x532   : > { %v1514_v63 = vmul.f32 %v2978_v60, %v1509_v62  ;;  %2979 = vrcp.f32 %v1554_v61  ;;  %v2949_v61 = vld [vmem:[%s3761_s18] ss:$0 sm:$0xff]  ;;  %s3765_s18 = smov 120  }
 0x534   : > { %v1447_v1 = vpop.f32.mrf.mxu0  ;;  %1516 = vrot.lane.b32.xlu2 %v1514_v63, %s3714_s2  ;;  %s3755_s2 = sld [smem:[#allocation14_spill]] }
 0x535   : > { %v2849_v41 = vld [vmem:[%s3756_s11 + $0x8] sm:$0xff]  ;;  %v2848_v42 = vld [vmem:[%s3756_s11] sm:$0xff] }
 0x536   : > { %1836 = vmatpush.bf16.msrb.mxu1 %v2849_v41 }
 0x538   : > { %v2980_v4 = vpop.eup %2979 }
 0x539   : > { %v1363_v2 = vpop.xlane.xlu1 %1362  ;;  %v1511_v3 = vpop.f32.mrf.mxu2 }
 0x53a   : > { %2981 = vrcp.f32 %v1363_v2  ;;  %v2845_v30 = vld [vmem:[%s3755_s2] sm:$0xff]  ;;  %v1754_v31 = vld [vmem:[%s3755_s2 + $0x8] sm:$0xf]  ;;  %1837 = vmatpush.bf16.msrb.mxu1 %v2848_v42  ;;  %s3770_s2 = smov 112  }
 0x53b   : > { %2764 = vmatmul.msk.bf16.vlgmr.msrb.gmra.mxu0 %vm1213_vm0, %v2845_v30  ;;  %v1768_v33 = vunpack.c.l.b16 %v1754_v31  ;;  %v2950_v2 = vld [vmem:[%s3762_s0] ss:$0 sm:$0xff]  ;;  %s3768_s0 = smov 104  }
 0x53c   : > { %v1573_v5 = vpop.f32.mrf.mxu0 }
 0x53d   : > { %v1578_v6 = vmul.f32 %v2980_v4, %v1573_v5  ;;  %v1770_v35 = vpack.c.b16 %v1768_v33, %v1768_v33 }
 0x53f   : > { %1580 = vrot.lane.b32.xlu0 %v1578_v6, %s3713_s7  ;;  %s3754_s7 = sld [smem:[#allocation13_spill]] }
 0x540   : > { %v2982_v7 = vpop.eup %2981 }
 0x541   : > { %v1391_v9 = vmul.f32 %v2982_v7, %v3473_v27  ;;  %v2843_v27 = vld [vmem:[%s3255_s20] sm:$0xff] }
 0x542   : > { %1738 = vmatpush.bf16.msrb.mxu3 %v2843_v27 }
 0x543   : > { %1392 = vst.msk [vmem:[#allocation2] sm:$0xff] %vm1333_vm6, %v1391_v9 }
 0x544   : > { %v1575_v10 = vpop.f32.mrf.mxu0 }
 0x545   : > { %v2840_v29 = vld [vmem:[%s3754_s7] sm:$0xff] }
 0x546   : > { %2750 = vmatmul.msk.bf16.vlgmr.msrb.gmra.mxu3 %vm1213_vm0, %v2840_v29 }
 0x54b   : > { %2765 = vmatmul.msk.bf16.gmra.mxu0 %vm1213_vm0, %v1770_v35 }
 0x58e   : > { %v1517_v14 = vpop.permute.xlu2 %1516 }
 0x5a1   : > { %v1453_v13 = vpop.permute.xlu1 %1452 }
 0x5a2   : > { %1456 = vst.msk [vmem:[#allocation2] sm:$0xff] %vm1455_vm7, %v1453_v13 }
 0x5a3   : > { %1520 = vst.msk [vmem:[#allocation2] sm:$0xff] %vm1519_vm8, %v1517_v14 }
 0x5b1   : > { %v1581_v15 = vpop.permute.xlu0 %1580 }
 0x5b2   : > { %1584 = vst.msk [vmem:[#allocation2] sm:$0xff] %vm1583_vm9, %v1581_v15 }
 0x5b8   : > { %v1798_v54 = vpop.f32.mrf.mxu0 }
 0x5b9   : > { %v1585_v17 = vld [vmem:[#allocation2] sm:$0xff]  ;;  %v1799_v14 = vadd.f32 %v2951_v11, %v1798_v54 }
 0x5ba   : > { %v1586_v18 = vpack.c.bf16 %v1585_v17, %v1585_v17 }
 0x5bb   : > { %v1898_v27 = vpack.c.bf16 %v1799_v14, %v1799_v14 }
 0x5bc   : > { %2728 = vmatmul.msk.bf16.vlgmr.msra.gmra.mxu1 %vm1213_vm0, %v1586_v18 }
 0x5c0   : > { %v1800_v3 = vpop.f32.mrf.mxu0 }
 0x5c1   : > { %v1801_v15 = vadd.f32 %v2951_v11, %v1800_v3 }
 0x5c3   : > { %v1899_v29 = vpack.c.bf16 %v1801_v15, %v1801_v15 }
 0x5c9   : > { %v1740_v55 = vpop.f32.mrf.mxu3 }
 0x5ca   : > { %v1741_v59 = vadd.f32 %v2952_v57, %v1740_v55  ;;  %v2954_v55 = vld [vmem:[%s3769_s28] ss:$0 sm:$0xff]  ;;  %s3776_s28 = smov 16  }
 0x5cc   : > { %2774 = vmatmul.msk.bf16.vlgmr.msrb.gmra.mxu1 %vm1213_vm0, %v1210_v44  ;;  %v1749_v63 = vpack.c.bf16 %v1741_v59, %v1741_v59  ;;  %v1878_v18 = vadd.f32 %v1799_v14, %v1741_v59  ;;  %v2955_v59 = vld [vmem:[%s3771_s3] ss:$0 sm:$0xff]  ;;  %s2784_s3 = sshll.u32 %s3362_s5, 7  ;;  %s3772_s5 = smov 80  }
 0x5ce   : > { %v1977_v7 = vunpack.c.l.b16 %v1749_v63  ;;  %v1894_v28 = vpack.c.bf16 %v1878_v18, %v1878_v18 }
 0x5d0   : > { %v1934_v35 = vunpack.c.l.b16 %v1894_v28 }
 0x5d1   : > { %v1742_v4 = vpop.f32.mrf.mxu3 }
 0x5d2   : > { %v1743_v5 = vadd.f32 %v2952_v57, %v1742_v4 }
 0x5d4   : > { %v1750_v9 = vpack.c.bf16 %v1743_v5, %v1743_v5 }
 0x5d6   : > { %v1978_v12 = vunpack.c.l.b16 %v1750_v9 }
 0x5d8   : > { %v3532_v17 = vpack.c.b16 %v1978_v12, %v1977_v7 }
 0x639   : > { %v1615_v20 = vpop.f32.mrf.mxu1 }
 0x63a   : > { %v1619_v21 = vadd.f32 %v1615_v20, %v3418_v0  ;;  %v1659_v0 = vld [vmem:[%s3754_s7 + $0x8] sm:$0xf] }
 0x63b   : > { %v1710_v32 = vunpack.c.l.b16 %v1659_v0 }
 0x63c   : > { %v3498_v22 = vadd.f32 %v2948_v19, %v1619_v21  ;;  %v1803_v19 = vpop.f32.mrf.mxu0  ;;  %v1879_v21 = vadd.f32 %v1801_v15, %v1743_v5 }
 0x63d   : > { %v1712_v34 = vpack.c.b16 %v1710_v32, %v1710_v32 }
 0x63e   : > { %v1627_v23 = vsel %vm1213_vm0, %v3498_v22, 0.0  ;;  %v1895_v30 = vpack.c.bf16 %v1879_v21, %v1879_v21 }
 0x63f   : > { %1628 = vadd.xlane.f32.xlu1 %v1627_v23  ;;  %2751 = vmatmul.msk.bf16.gmra.mxu3 %vm1213_vm0, %v1712_v34  ;;  %v1804_v23 = vadd.f32 %v2951_v11, %v1803_v19  ;;  %v1904_v34 = vunpack.c.l.b16 %v1898_v27 }
 0x641   : > { %v1617_v24 = vpop.f32.mrf.mxu1  ;;  %v1900_v25 = vpack.c.bf16 %v1804_v23, %v1804_v23 }
 0x643   : > { %v1906_v0 = vunpack.c.l.b16 %v1900_v25 }
 0x645   : > { %v3540_v32 = vpack.c.b16 %v1906_v0, %v1906_v0 }
 0x647   : > { %2016 = vrot.lane.b32.xlu2 %v3540_v32, %s3765_s18  ;;  %v1916_v41 = vsel %vm1333_vm6, %v3540_v32, 0 }
 0x648   : > { %1924 = vmatpush.bf16.xpose.msra.mxu1 %v1916_v41 }
 0x6b2   : > { %v1629_v36 = vpop.xlane.xlu1 %1628 }
 0x6b3   : > { %v1630_v37 = vmul.f32 %v1629_v36, %v3422_v8  ;;  %v1805_v36 = vpop.f32.mrf.mxu0 }
 0x6b5   : > { %v1631_v38 = vsub.f32 %v3498_v22, %v1630_v37 }
 0x6b7   : > { %v1632_v39 = vmul.f32 %v1631_v38, %v1631_v38 }
 0x6b9   : > { %v1633_v40 = vsel %vm1213_vm0, %v1632_v39, 0.0  ;;  %v1935_v39 = vunpack.c.l.b16 %v1895_v30 }
 0x6ba   : > { %1634 = vadd.xlane.f32.xlu0 %v1633_v40 }
 0x6bb   : > { %v3554_v44 = vpack.c.b16 %v1935_v39, %v1934_v35 }
 0x6bd   : > { %v1943_v46 = vsel %vm1333_vm6, %v3554_v44, 0 }
 0x6c2   : > { %v1745_v20 = vpop.f32.mrf.mxu3 }
 0x6c3   : > { %v3535_v24 = vadd.f32 %v2952_v57, %v1745_v20 }
 0x6c5   : > { %v1880_v26 = vadd.f32 %v1804_v23, %v3535_v24  ;;  %v1751_v5 = vpack.c.bf16 %v3535_v24, %v3535_v24 }
 0x6c7   : > { %v1896_v31 = vpack.c.bf16 %v1880_v26, %v1880_v26 }
 0x6c9   : > { %v1936_v33 = vunpack.c.l.b16 %v1896_v31  ;;  %v1885_v31 = vlaneseq }
 0x6ca   : > { %v1747_v37 = vpop.f32.mrf.mxu3 }
 0x6cb   : > { %v3542_v40 = vpack.c.b16 %v1936_v33, %v1936_v33 }
 0x6cd   : > { %v1946_v42 = vsel %vm1333_vm6, %v3542_v40, 0  ;;  %2047 = vrot.lane.b32.xlu2 %v3542_v40, %s3765_s18 }
 0x6ce   : > { %1982 = vrot.lane.b32.xlu0 %v3532_v17, %s3764_s15 }
 0x6d6   : > { %2083 = vrot.lane.b32.xlu0 %v3532_v17, %s3766_s1 }
 0x6de   : > { %2217 = vrot.lane.b32.xlu0 %v3540_v32, %s3768_s0 }
 0x6e6   : > { %2146 = vrot.lane.b32.xlu0 %v3542_v40, %s3770_s2 }
 0x72d   : > { %v1635_v48 = vpop.xlane.xlu0 %1634 }
 0x72e   : > { %v1636_v49 = vmul.f32 %v1635_v48, %v3422_v8  ;;  %v1839_v48 = vpop.f32.mrf.mxu1 }
 0x730   : > { %v1637_v50 = vadd.f32 1e-05, %v1636_v49 }
 0x732   : > { %2983 = vrsqrt.f32 %v1637_v50  ;;  %vm1644_vm11 = vweird.f32 %v1637_v50 }
 0x738   : > { %v2984_v51 = vpop.eup %2983 }
 0x739   : > { %v1639_v52 = vmul.f32 %v2984_v51, %v1637_v50  ;;  %vm1645_vm10 = vweird.f32 %v2984_v51 }
 0x73a   : > { %vm1646_vm12 = vmor %vm1644_vm11, %vm1645_vm10 }
 0x73b   : > { %v1640_v53 = vmul.f32 %v2984_v51, %v1639_v52  ;;  %v1841_v52 = vpop.f32.mrf.mxu1 }
 0x73d   : > { %v1641_v56 = vmul.f32 0.5, %v1640_v53 }
 0x73f   : > { %v1642_v58 = vsub.f32 1.5, %v1641_v56  ;;  %v2017_v56 = vpop.permute.xlu2 %2016 }
 0x740   : > { %v2025_v57 = vsel %vm1333_vm6, %v2017_v56, 0  ;;  %v1983_v14 = vpop.permute.xlu0 %1982 }
 0x741   : > { %v1643_v60 = vmul.f32 %v2984_v51, %v1642_v58  ;;  %2033 = vmatpush.bf16.xpose.msra.mxu0 %v2025_v57 }
 0x743   : > { %v1647_v62 = vsel %vm1646_vm12, %v2984_v51, %v1643_v60 }
 0x744   : > { %v1648_v1 = vmul.f32 %v1647_v62, %v1631_v38  ;;  %v1905_v38 = vunpack.c.l.b16 %v1899_v29 }
 0x746   : > { %v1652_v6 = vmul.f32 %v2949_v61, %v1648_v1  ;;  %v3552_v43 = vpack.c.b16 %v1905_v38, %v1904_v34 }
 0x747   : > { %v2048_v63 = vpop.permute.xlu2 %2047 }
 0x748   : > { %v1656_v10 = vadd.f32 %v2950_v2, %v1652_v6  ;;  %v1913_v45 = vsel %vm1333_vm6, %v3552_v43, 0  ;;  %2014 = vrot.lane.b32.xlu2 %v3552_v43, %s3765_s18  ;;  %v2056_v1 = vsel %vm1333_vm6, %v2048_v63, 0  ;;  %v2084_v15 = vpop.permute.xlu0 %2083 }
 0x749   : > { %1925 = vmatpush.bf16.xpose.msra.mxu1 %v1913_v45 }
 0x74a   : > { %v1660_v13 = vpack.c.bf16 %v1656_v10, %v1656_v10  ;;  %v1979_v10 = vunpack.c.l.b16 %v1751_v5 }
 0x74c   : > { %2737 = vmatmul.msk.bf16.vlgmr.msra.gmra.mxu2 %vm1213_vm0, %v1660_v13  ;;  %v3590_v11 = vpack.c.b16 %v1979_v10, %v1979_v10 }
 0x74d   : > { %1954 = vmatpush.bf16.xpose.msra.mxu2 %v1946_v42 }
 0x750   : > { %2045 = vrot.lane.b32.xlu2 %v3554_v44, %s3765_s18  ;;  %v2218_v18 = vpop.permute.xlu0 %2217 }
 0x751   : > { %2064 = vmatpush.bf16.xpose.msrb.mxu1 %v2056_v1  ;;  %v2226_v33 = vsel %vm1333_vm6, %v2218_v18, 0 }
 0x755   : > { %1955 = vmatpush.bf16.xpose.msra.mxu2 %v1943_v46 }
 0x758   : > { %v2147_v19 = vpop.permute.xlu0 %2146 }
 0x759   : > { %v2155_v20 = vsel %vm1333_vm6, %v2147_v19, 0 }
 0x75c   : > { %2783 = vmatmul.msk.bf16.vlgmr.msrb.gmra.mxu2 %vm1213_vm0, %v3433_v16  ;;  %v2953_v16 = vld [vmem:[%s3767_s22] ss:$0 sm:$0xff]  ;;  %s3774_s22 = smov 8  }
 0x75d   : > { %v1840_v49 = vadd.f32 %v2953_v16, %v1839_v48 }
 0x75f   : > { %v1897_v47 = vpack.c.bf16 %v1840_v49, %v1840_v49 }
 0x761   : > { %v2010_v50 = vunpack.c.l.b16 %v1897_v47  ;;  %2785 = vmatmul.msk.bf16.vlgmr.msra.gmra.mxu1 %vm1333_vm6, %v1897_v47 }
 0x763   : > { %v3574_v51 = vpack.c.b16 %v2010_v50, %v2010_v50 }
 0x765   : > { %2012 = vrot.lane.b32.xlu1 %v3574_v51, %s3765_s18 }
 0x7a2   : > { %v2015_v7 = vpop.permute.xlu2 %2014 }
 0x7a3   : > { %v2022_v9 = vsel %vm1333_vm6, %v2015_v7, 0 }
 0x7a4   : > { %2034 = vmatpush.bf16.xpose.msra.mxu0 %v2022_v9 }
 0x7aa   : > { %v2046_v12 = vpop.permute.xlu2 %2045 }
 0x7ab   : > { %v2053_v13 = vsel %vm1333_vm6, %v2046_v12, 0 }
 0x7ac   : > { %2065 = vmatpush.bf16.xpose.msrb.mxu1 %v2053_v13  ;;  %2163 = vmatpush.bf16.xpose.msrb.mxu0 %v2155_v20 }
 0x7cf   : > { %v1693_v53 = vpop.f32.mrf.mxu2 }
 0x7d0   : > { %v1694_v58 = vadd.f32 %v2954_v55, %v1693_v53 }
 0x7d7   : > { %v1695_v54 = vpop.f32.mrf.mxu2  ;;  %v2013_v21 = vpop.permute.xlu1 %2012 }
 0x7d8   : > { %2788 = vmatmul.msk.bf16.vlgmr.msra.gmra.mxu0 %vm1333_vm6, %v2013_v21 }
 0x7de   : > { %v1927_v23 = vpop.f32.mrf.mxu1 }
 0x7df   : > { %v1868_v60 = vpop.f32.mrf.mxu2 }
 0x7e0   : > { %v1872_v61 = vadd.f32 %v1868_v60, %v1694_v58 }
 0x7e2   : > { %v1877_v62 = vadd.f32 %v2955_v59, %v1872_v61 }
 0x7e4   : > { %v1893_v2 = vpack.c.bf16 %v1877_v62, %v1877_v62 }
 0x7e6   : > { %2786 = vmatmul.msk.bf16.vlgmr.msra.gmra.mxu2 %vm1333_vm6, %v1893_v2  ;;  %v2041_v3 = vunpack.c.l.b16 %v1893_v2  ;;  %v1929_v24 = vpop.f32.mrf.mxu1 }
 0x7e7   : > { %v1870_v4 = vpop.f32.mrf.mxu2 }
 0x7e8   : > { %v3585_v6 = vpack.c.b16 %v2041_v3, %v2041_v3 }
 0x7ea   : > { %2043 = vrot.lane.b32.xlu2 %v3585_v6, %s3765_s18  ;;  %s1882_s18 = sld [smem:[#allocation4 + %s2784_s3]] }
 0x7f0   : > { %v1887_v34 = vstv %s1882_s18  ;;  %s3779_s18 = sld [smem:[#allocation30_spill]] }
 0x7f2   : > { %1984 = vrot.lane.b32.xlu2 %v3590_v11, %s3764_s15  ;;  %s1883_s15 = sadd.s32 1, %s2784_s3  ;;  %s3777_s3 = sld [smem:[#allocation27_spill]] }
 0x7fa   : > { %2118 = vrot.lane.b32.xlu2 %v3540_v32, %s3770_s2  ;;  %v1886_v32 = vand.u32 127, %v1885_v31 }
 0x7fc   : > { %vm1888_vm13 = vcmp.ge.s32.totalorder %v1886_v32, %v1887_v34 }
 0x802   : > { %2085 = vrot.lane.b32.xlu2 %v3590_v11, %s3766_s1  ;;  %s1884_s1 = sld [smem:[#allocation4 + %s1883_s15]]  ;;  %s3778_s15 = smov 24  }
 0x808   : > { %v1889_v35 = vstv %s1884_s1  ;;  %s3780_s1 = sld [smem:[#allocation32_spill]] }
 0x809   : > { %vm1890_vm14 = vcmp.lt.s32.totalorder %v1886_v32, %v1889_v35 }
 0x80a   : > { %2116 = vrot.lane.b32.xlu2 %v3552_v43, %s3770_s2  ;;  %vm1891_vm15 = vmand %vm1888_vm13, %vm1890_vm14 }
 0x812   : > { %2114 = vrot.lane.b32.xlu2 %v3574_v51, %s3770_s2 }
 0x81a   : > { %2245 = vrot.lane.b32.xlu2 %v3542_v40, %s3768_s0  ;;  %v3151_v40 = vmov -1e+30  }
 0x81b   : > { %v3620_v41 = vsel %vm1891_vm15, 0.0, %v3151_v40 }
 0x822   : > { %2215 = vrot.lane.b32.xlu2 %v3552_v43, %s3768_s0 }
 0x82a   : > { %2144 = vrot.lane.b32.xlu2 %v3554_v44, %s3770_s2 }
 0x832   : > { %2142 = vrot.lane.b32.xlu2 %v3585_v6, %s3770_s2  ;;  %s3773_s2 = smov 72  }
 0x844   : > { %v2044_v25 = vpop.permute.xlu2 %2043 }
 0x845   : > { %2789 = vmatmul.msk.bf16.vlgmr.msrb.gmra.mxu1 %vm1333_vm6, %v2044_v25 }
 0x84c   : > { %v1985_v26 = vpop.permute.xlu2 %1984 }
 0x84d   : > { %v1991_v27 = vsel %vm1373_vm5, %v1985_v26, 0 }
 0x84e   : > { %1999 = vmatpush.bf16.msra.mxu3 %v1991_v27 }
 0x852   : > { %2000 = vmatpush.bf16.msra.mxu3 %v1983_v14 }
 0x854   : > { %v2119_v28 = vpop.permute.xlu2 %2118 }
 0x855   : > { %v2127_v29 = vsel %vm1333_vm6, %v2119_v28, 0  ;;  %v2036_v54 = vpop.f32.mrf.mxu0 }
 0x856   : > { %2135 = vmatpush.bf16.xpose.msrb.mxu3 %v2127_v29 }
 0x85c   : > { %v2086_v30 = vpop.permute.xlu2 %2085 }
 0x85d   : > { %v2092_v0 = vsel %vm1373_vm5, %v2086_v30, 0  ;;  %v2038_v55 = vpop.f32.mrf.mxu0 }
 0x85e   : > { %2100 = vmatpush.bf16.msrb.mxu2 %v2092_v0 }
 0x862   : > { %2101 = vmatpush.bf16.msrb.mxu2 %v2084_v15 }
 0x864   : > { %v2117_v36 = vpop.permute.xlu2 %2116 }
 0x865   : > { %v2124_v37 = vsel %vm1333_vm6, %v2117_v36, 0 }
 0x866   : > { %2234 = vmatpush.bf16.xpose.msra.mxu2 %v2226_v33  ;;  %2136 = vmatpush.bf16.xpose.msrb.mxu3 %v2124_v37 }
 0x869   : > { %v1957_v38 = vpop.f32.mrf.mxu2 }
 0x86a   : > { %v1958_v39 = vadd.f32 %v1957_v38, %v1927_v23 }
 0x86c   : > { %v1961_v42 = vmul.f32 0.25, %v1958_v39  ;;  %v2115_v43 = vpop.permute.xlu2 %2114 }
 0x86e   : > { %v1962_v45 = vadd.f32 %v1961_v42, %v3620_v41 }
 0x870   : > { %v1964_v46 = vsel %vm1963_vm1, %v1962_v45, -inf }
 0x871   : > { %v1959_v16 = vpop.f32.mrf.mxu2  ;;  %1965 = vmax.xlane.f32.xlu0 %v1964_v46 }
 0x874   : > { %v2246_v48 = vpop.permute.xlu2 %2245 }
 0x875   : > { %v2254_v3 = vsel %vm1333_vm6, %v2246_v48, 0 }
 0x87c   : > { %v2216_v49 = vpop.permute.xlu2 %2215 }
 0x87d   : > { %v2223_v47 = vsel %vm1333_vm6, %v2216_v49, 0 }
 0x87e   : > { %2235 = vmatpush.bf16.xpose.msra.mxu2 %v2223_v47 }
 0x884   : > { %v2145_v50 = vpop.permute.xlu2 %2144 }
 0x885   : > { %v2152_v52 = vsel %vm1333_vm6, %v2145_v50, 0  ;;  %2243 = vrot.lane.b32.xlu0 %v3554_v44, %s3768_s0 }
 0x886   : > { %2164 = vmatpush.bf16.xpose.msrb.mxu0 %v2152_v52 }
 0x88c   : > { %v2143_v53 = vpop.permute.xlu2 %2142 }
 0x88d   : > { %2792 = vmatmul.msk.bf16.vlgmr.msrb.gmra.mxu0 %vm1333_vm6, %v2143_v53  ;;  %2241 = vrot.lane.b32.xlu0 %v3585_v6, %s3768_s0 }
 0x8c2   : > { %v2067_v56 = vpop.f32.mrf.mxu1 }
 0x8c3   : > { %v2068_v57 = vadd.f32 %v2067_v56, %v2036_v54 }
 0x8c5   : > { %v2071_v58 = vmul.f32 0.25, %v2068_v57 }
 0x8c7   : > { %v2072_v59 = vadd.f32 %v2071_v58, %v3620_v41 }
 0x8c9   : > { %v2073_v60 = vsel %vm1963_vm1, %v2072_v59, -inf }
 0x8ca   : > { %v2069_v61 = vpop.f32.mrf.mxu1  ;;  %2074 = vmax.xlane.f32.xlu1 %v2073_v60 }
 0x8e3   : > { %2213 = vrot.lane.b32.xlu1 %v3574_v51, %s3768_s0  ;;  %s3775_s0 = sld [smem:[#allocation26_spill]] }
 0x8e4   : > { %v1966_v44 = vpop.xlane.xlu0 %1965 }
 0x8e5   : > { %v1967_v62 = vsub.f32 %v1962_v45, %v1966_v44 }
 0x8e7   : > { %v1968_v63 = vmul.f32 1.442695, %v1967_v62 }
 0x8e9   : > { %2985 = vpow2.f32 %v1968_v63 }
 0x8eb   : > { %2184 = vrot.lane.b32.xlu1 %v3590_v11, %s3772_s5 }
 0x8ef   : > { %v2986_v1 = vpop.eup %2985 }
 0x8f0   : > { %v1973_v2 = vpack.c.bf16 %v2986_v1, %v2986_v1  ;;  %v1970_v32 = vsel %vm1963_vm1, %v2986_v1, 0.0 }
 0x8f2   : > { %2787 = vmatmul.msk.bf16.vlgmr.msra.gmra.mxu3 %vm1963_vm1, %v1973_v2 }
 0x8f3   : > { %2262 = vmatpush.bf16.xpose.msra.mxu3 %v2254_v3  ;;  %2283 = vrot.lane.b32.xlu1 %v3590_v11, %s3773_s2 }
 0x8f7   : > { %v2244_v4 = vpop.permute.xlu0 %2243 }
 0x8f8   : > { %v2251_v51 = vsel %vm1333_vm6, %v2244_v4, 0  ;;  %v2853_v4 = vld [vmem:[%s3775_s0 + $0x8] sm:$0xff] }
 0x8fb   : > { %2263 = vmatpush.bf16.xpose.msra.mxu3 %v2251_v51  ;;  %2182 = vrot.lane.b32.xlu1 %v3532_v17, %s3772_s5  ;;  %s3781_s5 = sld [smem:[#allocation28_spill]] }
 0x8ff   : > { %v2242_v6 = vpop.permute.xlu0 %2241 }
 0x902   : > { %2791 = vmatmul.msk.bf16.vlgmr.msrb.gmra.mxu3 %vm1333_vm6, %v2115_v43 }
 0x903   : > { %2281 = vrot.lane.b32.xlu1 %v3532_v17, %s3773_s2  ;;  %s3782_s2 = sld [smem:[#allocation29_spill]] }
 0x90a   : > { %v2166_v5 = vpop.f32.mrf.mxu0 }
 0x912   : > { %v2168_v7 = vpop.f32.mrf.mxu0  ;;  %2795 = vmatmul.msk.bf16.vlgmr.msra.gmra.mxu3 %vm1333_vm6, %v2242_v6 }
 0x93d   : > { %v2075_v9 = vpop.xlane.xlu1 %2074 }
 0x93e   : > { %v2076_v10 = vsub.f32 %v2072_v59, %v2075_v9 }
 0x940   : > { %v2077_v11 = vmul.f32 1.442695, %v2076_v10  ;;  %v2852_v10 = vld [vmem:[%s3775_s0] sm:$0xff] }
 0x942   : > { %2987 = vpow2.f32 %v2077_v11 }
 0x948   : > { %v2988_v12 = vpop.eup %2987 }
 0x949   : > { %v2082_v13 = vpack.c.bf16 %v2988_v12, %v2988_v12  ;;  %v2079_v0 = vsel %vm1963_vm1, %v2988_v12, 0.0 }
 0x94b   : > { %2790 = vmatmul.msk.bf16.vlgmr.msrb.gmra.mxu2 %vm1963_vm1, %v2082_v13 }
 0x955   : > { %v2214_v14 = vpop.permute.xlu1 %2213 }
 0x95b   : > { %2794 = vmatmul.msk.bf16.vlgmr.msra.gmra.mxu2 %vm1333_vm6, %v2214_v14  ;;  %v2956_v14 = vld [vmem:[%s3777_s3] ss:$0 sm:$0xff]  ;;  %s1202_s3 = scalar_lea.vmem %s3346_s17, %s3414_s29 }
 0x95d   : > { %v2185_v15 = vpop.permute.xlu1 %2184 }
 0x95e   : > { %v2191_v18 = vsel %vm1373_vm5, %v2185_v15, 0 }
 0x95f   : > { %2199 = vmatpush.bf16.msra.mxu1 %v2191_v18 }
 0x965   : > { %v2284_v17 = vpop.permute.xlu1 %2283 }
 0x966   : > { %v2290_v19 = vsel %vm1373_vm5, %v2284_v17, 0  ;;  %vm2455_vm5 = vcmask 523264  }
 0x967   : > { %2298 = vmatpush.bf16.msra.mxu0 %v2290_v19 }
 0x96d   : > { %v2183_v20 = vpop.permute.xlu1 %2182 }
 0x96e   : > { %2200 = vmatpush.bf16.msra.mxu1 %v2183_v20 }
 0x972   : > { %2339 = vmatpush.bf16.msrb.mxu1 %v2853_v4 }
 0x975   : > { %v2282_v21 = vpop.permute.xlu1 %2281  ;;  %v2002_v23 = vpop.f32.mrf.mxu3 }
 0x976   : > { %2299 = vmatpush.bf16.msra.mxu0 %v2282_v21  ;;  %2340 = vmatpush.bf16.msrb.mxu1 %v2852_v10  ;;  %v2961_v10 = vld [vmem:[#allocation5] ss:$0 sm:$0xff] }
 0x97d   : > { %v2004_v24 = vpop.f32.mrf.mxu3 }
 0x985   : > { %v2138_v25 = vpop.f32.mrf.mxu3 }
 0x986   : > { %v2167_v26 = vadd.f32 %v2166_v5, %v2138_v25 }
 0x988   : > { %v2170_v27 = vmul.f32 0.25, %v2167_v26 }
 0x98a   : > { %v2171_v28 = vadd.f32 %v2170_v27, %v3620_v41  ;;  %v2855_v27 = vld [vmem:[%s3779_s18 + $0x8] sm:$0xff] }
 0x98b   : > { %2414 = vmatpush.bf16.msrb.mxu2 %v2855_v27 }
 0x98c   : > { %v2172_v29 = vsel %vm1963_vm1, %v2171_v28, -inf }
 0x98d   : > { %2173 = vmax.xlane.f32.xlu0 %v2172_v29  ;;  %v2140_v30 = vpop.f32.mrf.mxu3 }
 0x995   : > { %2080 = vadd.xlane.f32.xlu0 %v2079_v0  ;;  %v2265_v31 = vpop.f32.mrf.mxu3  ;;  %v2858_v0 = vld [vmem:[%s3780_s1 + $0x10] sm:$0xff] }
 0x99d   : > { %1971 = vadd.xlane.f32.xlu0 %v1970_v32  ;;  %v2267_v33 = vpop.f32.mrf.mxu3  ;;  %v2857_v32 = vld [vmem:[%s3780_s1 + $0x8] sm:$0xff] }
 0x9ce   : > { %v2103_v34 = vpop.f32.mrf.mxu2 }
 0x9d6   : > { %v2105_v35 = vpop.f32.mrf.mxu2 }
 0x9de   : > { %v2237_v36 = vpop.f32.mrf.mxu2 }
 0x9df   : > { %v2266_v37 = vadd.f32 %v2265_v31, %v2237_v36 }
 0x9e1   : > { %v2269_v38 = vmul.f32 0.25, %v2266_v37 }
 0x9e3   : > { %v2270_v39 = vadd.f32 %v2269_v38, %v3620_v41 }
 0x9e5   : > { %v2271_v40 = vsel %vm1963_vm1, %v2270_v39, -inf }
 0x9e6   : > { %v2239_v42 = vpop.f32.mrf.mxu2  ;;  %2272 = vmax.xlane.f32.xlu2 %v2271_v40 }
 0xa00   : > { %v2174_v43 = vpop.xlane.xlu0 %2173 }
 0xa01   : > { %v2175_v45 = vsub.f32 %v2171_v28, %v2174_v43  ;;  %v2854_v28 = vld [vmem:[%s3779_s18] sm:$0xff] }
 0xa02   : > { %2415 = vmatpush.bf16.msrb.mxu2 %v2854_v28  ;;  %v2958_v43 = vld [vmem:[%s3782_s2] ss:$0 sm:$0xff] }
 0xa03   : > { %v2176_v46 = vmul.f32 1.442695, %v2175_v45 }
 0xa05   : > { %2989 = vpow2.f32 %v2176_v46 }
 0xa08   : > { %v2081_v16 = vpop.xlane.xlu0 %2080 }
 0xa0b   : > { %v2990_v48 = vpop.eup %2989 }
 0xa0c   : > { %v2181_v49 = vpack.c.bf16 %v2990_v48, %v2990_v48  ;;  %v2178_v47 = vsel %vm1963_vm1, %v2990_v48, 0.0  ;;  %v2856_v48 = vld [vmem:[%s3780_s1] sm:$0xff] }
 0xa0d   : > { %2179 = vadd.xlane.f32.xlu2 %v2178_v47 }
 0xa0e   : > { %2793 = vmatmul.msk.bf16.vlgmr.msra.gmra.mxu1 %vm1963_vm1, %v2181_v49 }
 0xa10   : > { %v1972_v50 = vpop.xlane.xlu0 %1971 }
 0xa11   : > { %2991 = vrcp.f32 %v1972_v50 }
 0xa12   : > { %2993 = vrcp.f32 %v2081_v16 }
 0xa17   : > { %v2992_v52 = vpop.eup %2991 }
 0xa18   : > { %v2007_v41 = vmul.f32 %v2992_v52, %v2002_v23  ;;  %v2994_v53 = vpop.eup %2993 }
 0xa19   : > { %v2108_v54 = vmul.f32 %v2994_v53, %v2103_v34 }
 0xa1a   : > { %2008 = vst.msk [vmem:[#allocation2] sm:$0xff] %vm1333_vm6, %v2007_v41 }
 0xa25   : > { %2110 = vrot.lane.b32.xlu2 %v2108_v54, %s3774_s22  ;;  %s3783_s22 = sld [smem:[#allocation31_spill]] }
 0xa2b   : > { %v2959_v49 = vld [vmem:[%s3783_s22] ss:$0 sm:$0xff] }
 0xa59   : > { %v2273_v55 = vpop.xlane.xlu2 %2272 }
 0xa5a   : > { %v2274_v56 = vsub.f32 %v2270_v39, %v2273_v55  ;;  %v2957_v39 = vld [vmem:[%s3781_s5] ss:$0 sm:$0xff] }
 0xa5c   : > { %v2275_v57 = vmul.f32 1.442695, %v2274_v56 }
 0xa5e   : > { %2995 = vpow2.f32 %v2275_v57 }
 0xa64   : > { %v2996_v58 = vpop.eup %2995 }
 0xa65   : > { %v2280_v59 = vpack.c.bf16 %v2996_v58, %v2996_v58  ;;  %v2277_v60 = vsel %vm1963_vm1, %v2996_v58, 0.0 }
 0xa66   : > { %2278 = vadd.xlane.f32.xlu1 %v2277_v60 }
 0xa67   : > { %2796 = vmatmul.msk.bf16.vlgmr.msra.gmra.mxu0 %vm1963_vm1, %v2280_v59 }
 0xa80   : > { %v2180_v61 = vpop.xlane.xlu2 %2179 }
 0xa81   : > { %2997 = vrcp.f32 %v2180_v61 }
 0xa87   : > { %v2998_v62 = vpop.eup %2997 }
 0xa88   : > { %v2111_v44 = vpop.permute.xlu2 %2110 }
 0xa89   : > { %2113 = vst.msk [vmem:[#allocation2] sm:$0xff] %vm1455_vm7, %v2111_v44 }
 0xa8b   : > { %v2202_v63 = vpop.f32.mrf.mxu1 }
 0xa8c   : > { %v2207_v1 = vmul.f32 %v2998_v62, %v2202_v63 }
 0xa8e   : > { %2209 = vrot.lane.b32.xlu0 %v2207_v1, %s3776_s28  ;;  %s3784_s28 = sld [smem:[#allocation33_spill]] }
 0xa93   : > { %v2204_v2 = vpop.f32.mrf.mxu1 }
 0xa94   : > { %v2960_v54 = vld [vmem:[%s3784_s28] ss:$0 sm:$0xff] }
 0xad9   : > { %v2279_v3 = vpop.xlane.xlu1 %2278 }
 0xada   : > { %2999 = vrcp.f32 %v2279_v3 }
 0xae0   : > { %v3000_v51 = vpop.eup %2999 }
 0xae4   : > { %v2301_v5 = vpop.f32.mrf.mxu0 }
 0xae5   : > { %v2306_v6 = vmul.f32 %v3000_v51, %v2301_v5 }
 0xae7   : > { %2308 = vrot.lane.b32.xlu2 %v2306_v6, %s3778_s15  ;;  %s1206_s15 = scalar_lea.vmem %s3351_s16, %s3414_s29 }
 0xaec   : > { %v2303_v7 = vpop.f32.mrf.mxu0 }
 0xb00   : > { %v2210_v9 = vpop.permute.xlu0 %2209 }
 0xb01   : > { %2212 = vst.msk [vmem:[#allocation2] sm:$0xff] %vm1519_vm8, %v2210_v9 }
 0xb41   : > { %v2309_v11 = vpop.permute.xlu2 %2308 }
 0xb42   : > { %2311 = vst.msk [vmem:[#allocation2] sm:$0xff] %vm1583_vm9, %v2309_v11 }
 0xb49   : > { %v2312_v12 = vld [vmem:[#allocation2] sm:$0xff] }
 0xb4a   : > { %v2313_v13 = vpack.c.bf16 %v2312_v12, %v2312_v12  ;;  %v2962_v12 = vld [vmem:[#allocation7] ss:$0 sm:$0xff] }
 0xb4c   : > { %2805 = vmatmul.msk.bf16.vlgmr.msrb.gmra.mxu1 %vm1213_vm0, %v2313_v13 }
 0xbc9   : > { %v2342_v15 = vpop.f32.mrf.mxu1 }
 0xbca   : > { %v2346_v18 = vadd.f32 %v2342_v15, %v3498_v22  ;;  %v2859_v22 = vld [vmem:[%s3780_s1 + $0x18] sm:$0xff] }
 0xbcb   : > { %2463 = vmatpush.bf16.msrb.mxu3 %v2859_v22 }
 0xbcc   : > { %v2351_v17 = vadd.f32 %v2956_v14, %v2346_v18 }
 0xbce   : > { %v2354_v19 = vsel %vm1213_vm0, %v2351_v17, 0.0 }
 0xbcf   : > { %2355 = vadd.xlane.f32.xlu0 %v2354_v19  ;;  %2464 = vmatpush.bf16.msrb.mxu3 %v2858_v0 }
 0xbd1   : > { %v2344_v20 = vpop.f32.mrf.mxu1 }
 0xbd3   : > { %2465 = vmatpush.bf16.msrb.mxu3 %v2857_v32 }
 0xbd7   : > { %2466 = vmatpush.bf16.msrb.mxu3 %v2856_v48 }
 0xc42   : > { %v2356_v21 = vpop.xlane.xlu0 %2355 }
 0xc43   : > { %v2357_v23 = vmul.f32 %v2356_v21, %v3422_v8 }
 0xc45   : > { %v2358_v24 = vsub.f32 %v2351_v17, %v2357_v23 }
 0xc47   : > { %v2359_v25 = vmul.f32 %v2358_v24, %v2358_v24 }
 0xc49   : > { %v2360_v26 = vsel %vm1213_vm0, %v2359_v25, 0.0 }
 0xc4a   : > { %2361 = vadd.xlane.f32.xlu2 %v2360_v26 }
 0xcbd   : > { %v2362_v29 = vpop.xlane.xlu2 %2361 }
 0xcbe   : > { %v2363_v30 = vmul.f32 %v2362_v29, %v3422_v8 }
 0xcc0   : > { %v2364_v31 = vadd.f32 1e-05, %v2363_v30 }
 0xcc2   : > { %3001 = vrsqrt.f32 %v2364_v31  ;;  %vm2371_vm3 = vweird.f32 %v2364_v31 }
 0xcc8   : > { %v3002_v33 = vpop.eup %3001 }
 0xcc9   : > { %v2366_v34 = vmul.f32 %v3002_v33, %v2364_v31  ;;  %vm2372_vm2 = vweird.f32 %v3002_v33 }
 0xcca   : > { %vm2373_vm4 = vmor %vm2371_vm3, %vm2372_vm2 }
 0xccb   : > { %v2367_v35 = vmul.f32 %v3002_v33, %v2366_v34 }
 0xccd   : > { %v2368_v36 = vmul.f32 0.5, %v2367_v35 }
 0xccf   : > { %v2369_v37 = vsub.f32 1.5, %v2368_v36 }
 0xcd1   : > { %v2370_v38 = vmul.f32 %v3002_v33, %v2369_v37 }
 0xcd3   : > { %v2374_v40 = vsel %vm2373_vm4, %v3002_v33, %v2370_v38 }
 0xcd4   : > { %v2375_v42 = vmul.f32 %v2374_v40, %v2358_v24 }
 0xcd6   : > { %v2379_v45 = vmul.f32 %v2957_v39, %v2375_v42 }
 0xcd8   : > { %v2383_v46 = vadd.f32 %v2958_v43, %v2379_v45 }
 0xcda   : > { %v2384_v16 = vpack.c.bf16 %v2383_v46, %v2383_v46 }
 0xcdc   : > { %2814 = vmatmul.msk.bf16.vlgmr.msrb.gmra.mxu2 %vm1213_vm0, %v2384_v16 }
 0xd5f   : > { %v2417_v47 = vpop.f32.mrf.mxu2 }
 0xd60   : > { %v2418_v50 = vadd.f32 %v2959_v49, %v2417_v47 }
 0xd62   : > { %v2421_v52 = vmax.f32 %v2418_v50, 0.0 }
 0xd64   : > { %v2422_v41 = vpack.c.bf16 %v2421_v52, %v2421_v52 }
 0xd66   : > { %2831 = vmatmul.msk.bf16.vlgmr.msrb.gmra.mxu3 %vm2455_vm5, %v2422_v41 }
 0xd67   : > { %v2419_v53 = vpop.f32.mrf.mxu2 }
 0xde9   : > { %v2468_v55 = vpop.f32.mrf.mxu3 }
 0xdea   : > { %v2472_v56 = vadd.f32 %v2468_v55, %v2351_v17 }
 0xdec   : > { %v2477_v57 = vadd.f32 %v2960_v54, %v2472_v56 }
 0xdee   : > { %2478 = vst.msk [vmem:[%s1202_s3] sm:$0xff] %vm1213_vm0, %v2477_v57  ;;  %v2481_v58 = vsel %vm1213_vm0, %v2477_v57, 0.0 }
 0xdef   : > { %2482 = vadd.xlane.f32.xlu1 %v2481_v58 }
 0xdf1   : > { %v2470_v59 = vpop.f32.mrf.mxu3 }
 0xe62   : > { %v2483_v60 = vpop.xlane.xlu1 %2482 }
 0xe63   : > { %v2484_v61 = vmul.f32 %v2483_v60, %v3422_v8 }
 0xe65   : > { %v2485_v44 = vsub.f32 %v2477_v57, %v2484_v61 }
 0xe67   : > { %v2486_v62 = vmul.f32 %v2485_v44, %v2485_v44 }
 0xe69   : > { %v2487_v63 = vsel %vm1213_vm0, %v2486_v62, 0.0 }
 0xe6a   : > { %2488 = vadd.xlane.f32.xlu1 %v2487_v63 }
 0xedd   : > { %v2489_v1 = vpop.xlane.xlu1 %2488 }
 0xede   : > { %v2490_v2 = vmul.f32 %v2489_v1, %v3422_v8 }
 0xee0   : > { %v2491_v3 = vadd.f32 1e-05, %v2490_v2 }
 0xee2   : > { %3003 = vrsqrt.f32 %v2491_v3  ;;  %vm2498_vm7 = vweird.f32 %v2491_v3 }
 0xee8   : > { %v3004_v4 = vpop.eup %3003 }
 0xee9   : > { %v2493_v51 = vmul.f32 %v3004_v4, %v2491_v3  ;;  %vm2499_vm6 = vweird.f32 %v3004_v4 }
 0xeea   : > { %vm2500_vm8 = vmor %vm2498_vm7, %vm2499_vm6 }
 0xeeb   : > { %v2494_v5 = vmul.f32 %v3004_v4, %v2493_v51 }
 0xeed   : > { %v2495_v6 = vmul.f32 0.5, %v2494_v5 }
 0xeef   : > { %v2496_v7 = vsub.f32 1.5, %v2495_v6 }
 0xef1   : > { %v2497_v9 = vmul.f32 %v3004_v4, %v2496_v7 }
 0xef3   : > { %v2501_v11 = vsel %vm2500_vm8, %v3004_v4, %v2497_v9 }
 0xef4   : > { %v2502_v13 = vmul.f32 %v2501_v11, %v2485_v44 }
 0xef6   : > { %v2506_v14 = vmul.f32 %v2961_v10, %v2502_v13 }
 0xef8   : > { %v2510_v8 = vadd.f32 %v2962_v12, %v2506_v14 }
 0xefa   : > { %2511 = vst.msk [vmem:[%s1206_s15] sm:$0xff] %vm1213_vm0, %v2510_v8 }
 0xefb PF: > { %s98_s23 = sadd.s32 1, %s3093_s23  }
 0xefc   : > { %p95_p7 = scmp.ge.s32.totalorder %s98_s23, 4  }
 0xefe   :  { %97 = sbr.rel (!%p95_p7) target bundleno = 76 (0x4c), region = 259 }
 0xf03   :  { %2545 = vsyncpa [#allocation6], 1 }
 0xf04   :  { %2547 = vsyncpa [#allocation6 + $0x1], 1 }
 0xf05   :  { %2548 = vsyncpa [#allocation8], 1 }

// kernel: transformer_decoder_forward.3
= control target key start
LH: loop header
LB: loop body
LE: loop exit
PB: predicated region body
PF: predicated region fallthrough
CT: control target
= control target key end

     0   :  { %s2939_s6 = smov 1   ;;  %s2940_s10 = smov 2   ;;  %s3535_s0 = inlined_call_operand.smem [shape: u32[37], index: -1, kind: input, shape index: {}] }
   0x1   :  { %s3000_s5 = sld [smem:[%s3535_s0]]   ;;  %s2941_s14 = smov 3  }
   0x2   :  { %s3005_s9 = sld [smem:[%s3535_s0 + %s2939_s6]]   ;;  %s2942_s18 = smov 4  }
   0x3   :  { %s3010_s13 = sld [smem:[%s3535_s0 + %s2940_s10]]   ;;  %s2943_s22 = smov 5  }
   0x4   :  { %s3015_s17 = sld [smem:[%s3535_s0 + %s2941_s14]]   ;;  %s2944_s26 = smov 6  }
   0x5   :  { %s3020_s21 = sld [smem:[%s3535_s0 + %s2942_s18]]   ;;  %s2945_s30 = smov 7  }
   0x6   :  { %s3025_s25 = sld [smem:[%s3535_s0 + %s2943_s22]]   ;;  %s2946_s4 = smov 8  }
   0x7   :  { %s3030_s29 = sld [smem:[%s3535_s0 + %s2944_s26]]   ;;  %s2947_s10 = smov 9  }
   0x8   :  { %3570 = sst [smem:[#allocation9_spill]] %s3005_s9  ;;  %s2948_s15 = smov 10  }
   0x9   :  { %3571 = sst [smem:[#allocation10_spill]] %s3010_s13  ;;  %s2949_s20 = smov 11  }
   0xa   :  { %3572 = sst [smem:[#allocation11_spill]] %s3015_s17  ;;  %s2950_s26 = smov 12  }
   0xb   :  { %s3035_s3 = sld [smem:[%s3535_s0 + %s2945_s30]]   ;;  %s2951_s1 = smov 13  }
   0xc   :  { %3573 = sst [smem:[#allocation12_spill]] %s3025_s25  ;;  %s2952_s7 = smov 14  }
   0xd   :  { %3574 = sst [smem:[#allocation13_spill]] %s3030_s29  ;;  %s2954_s22 = smov 16  }
   0xe   :  { %s3040_s8 = sld [smem:[%s3535_s0 + %s2946_s4]]   ;;  %s2955_s28 = smov 17  }
   0xf   :  { %s3045_s14 = sld [smem:[%s3535_s0 + %s2947_s10]]   ;;  %s2973_s18 = smov 35  }
  0x10   :  { %s3050_s19 = sld [smem:[%s3535_s0 + %s2948_s15]]   ;;  %s2953_s15 = smov 15  }
  0x11   :  { %3575 = sst [smem:[#allocation14_spill]] %s3035_s3 }
  0x12   :  { %s3055_s24 = sld [smem:[%s3535_s0 + %s2949_s20]]  }
  0x13   :  { %s3060_s30 = sld [smem:[%s3535_s0 + %s2950_s26]]   ;;  %s2974_s26 = smov 36  }
  0x14   :  { %3576 = sst [smem:[#allocation15_spill]] %s3040_s8 }
  0x15   :  { %3577 = sst [smem:[#allocation16_spill]] %s3045_s14 }
  0x16   :  { %s3065_s6 = sld [smem:[%s3535_s0 + %s2951_s1]]  }
  0x17   :  { %s3070_s12 = sld [smem:[%s3535_s0 + %s2952_s7]]   ;;  %s2956_s7 = smov 18  }
  0x18   :  { %s3075_s20 = sld [smem:[%s3535_s0 + %s2953_s15]]   ;;  %s2957_s15 = smov 19  }
  0x19   :  { %s3080_s27 = sld [smem:[%s3535_s0 + %s2954_s22]]   ;;  %s2958_s22 = smov 20  }
  0x1a   :  { %s3085_s4 = sld [smem:[%s3535_s0 + %s2955_s28]]   ;;  %s2959_s28 = smov 21  }
  0x1b   :  { %s3090_s25 = sld [smem:[%s3535_s0 + %s2956_s7]]   ;;  %s2960_s7 = smov 22  }
  0x1c   :  { %3578 = sst [smem:[#allocation17_spill]] %s3065_s6 }
  0x1d   :  { %3579 = sst [smem:[#allocation18_spill]] %s3070_s12 }
  0x1e   :  { %3580 = sst [smem:[#allocation19_spill]] %s3075_s20 }
  0x1f   :  { %3581 = sst [smem:[#allocation20_spill]] %s3080_s27 }
  0x20   :  { %3582 = sst [smem:[#allocation21_spill]] %s3085_s4 }
  0x21   :  { %3583 = sst [smem:[#allocation22_spill]] %s3090_s25 }
  0x22   :  { %s3095_s20 = sld [smem:[%s3535_s0 + %s2957_s15]]   ;;  %s2961_s15 = smov 23  }
  0x23   :  { %s3100_s27 = sld [smem:[%s3535_s0 + %s2958_s22]]   ;;  %s2962_s22 = smov 24  }
  0x24   :  { %s3105_s4 = sld [smem:[%s3535_s0 + %s2959_s28]]   ;;  %s2963_s28 = smov 25  }
  0x25   :  { %s3110_s25 = sld [smem:[%s3535_s0 + %s2960_s7]]   ;;  %s2964_s7 = smov 26  }
  0x26   :  { %s3115_s29 = sld [smem:[%s3535_s0 + %s2961_s15]]   ;;  %s2965_s15 = smov 27  }
  0x27   :  { %s3125_s17 = sld [smem:[%s3535_s0 + %s2963_s28]]   ;;  %s2967_s28 = smov 29  }
  0x28   :  { %s3135_s23 = sld [smem:[%s3535_s0 + %s2965_s15]]   ;;  %s2969_s15 = smov 31  }
  0x29   :  { %3584 = sst [smem:[#allocation23_spill]] %s3100_s27 }
  0x2a   :  { %3585 = sst [smem:[#allocation24_spill]] %s3105_s4 }
  0x2b   :  { %3586 = sst [smem:[#allocation25_spill]] %s3110_s25 }
  0x2c   :  { %3587 = sst [smem:[#allocation26_spill]] %s3115_s29 }
  0x2d   :  { %s3120_s27 = sld [smem:[%s3535_s0 + %s2962_s22]]   ;;  %s2966_s22 = smov 28  }
  0x2e   :  { %3589 = sst [smem:[#allocation28_spill]] %s3125_s17 }
  0x2f   :  { %s3130_s25 = sld [smem:[%s3535_s0 + %s2964_s7]]   ;;  %s2968_s7 = smov 30  }
  0x30   :  { %3591 = sst [smem:[#allocation30_spill]] %s3135_s23 }
  0x31   :  { %s3140_s1 = sld [smem:[%s3535_s0 + %s2966_s22]]  }
  0x32   :  { %s3145_s10 = sld [smem:[%s3535_s0 + %s2967_s28]]   ;;  %s2971_s28 = smov 33  }
  0x33   :  { %3588 = sst [smem:[#allocation27_spill]] %s3120_s27  ;;  %s2970_s27 = smov 32  }
  0x34   :  { %s3150_s16 = sld [smem:[%s3535_s0 + %s2968_s7]]   ;;  %s2972_s7 = smov 34  }
  0x35   :  { %3590 = sst [smem:[#allocation29_spill]] %s3130_s25 }
  0x36   :  { %s3155_s29 = sld [smem:[%s3535_s0 + %s2969_s15]]   ;;  %s80_s15 = sshll.u32 %s3000_s5, 4  ;;  %s81_s15 = int_to_ptr.vmem [resolvable:$true] %s80_s15 }
  0x37   :  { %3592 = sst [smem:[#allocation31_spill]] %s3140_s1 }
  0x38   :  { %3593 = sst [smem:[#allocation32_spill]] %s3145_s10 }
  0x39   :  { %s3160_s17 = sld [smem:[%s3535_s0 + %s2970_s27]]  }
  0x3a   :  { %3594 = sst [smem:[#allocation33_spill]] %s3150_s16  ;;  %s2865_s16 = scalar_lea.vmem %s3000_s5, 2 }
  0x3b   :  { %s3165_s25 = sld [smem:[%s3535_s0 + %s2971_s28]]   ;;  %s2861_s28 = sshra.s32 %s81_s15, 4  ;;  %s2862_s28 = int_to_ptr.vmem [resolvable:$true] %s2861_s28 }
  0x3c   :  { %3595 = sst [smem:[#allocation34_spill]] %s3155_s29  ;;  %s2863_s2 = scalar_lea.vmem %s2862_s28, 2 }
  0x3d   :  { %s3170_s23 = sld [smem:[%s3535_s0 + %s2972_s7]]   ;;  %p2864_p0 = scmp.ne.s32.totalorder %s2862_s28, %s2863_s2 }
  0x3e   :  { %s3176_s27 = sld [smem:[%s3535_s0 + %s2973_s18]]   ;;  %p2866_p1 = scmp.lt.s32.totalorder %s2862_s28, %s3000_s5 }
  0x3f   :  { %3596 = sst [smem:[#allocation35_spill]] %s3160_s17  ;;  %p2867_p2 = scmp.lt.s32.totalorder %s2865_s16, %s2863_s2 }
  0x40   :  { %s3181_s1 = sld [smem:[%s3535_s0 + %s2974_s26]]  }
  0x41   :  { %p2868_p3 = por %p2867_p2, %p2866_p1 }
  0x43   :  { %p2869_p4 = pnand %p2868_p3, %p2864_p0 }
  0x45   :  { %2872 = shalt.err (!%p2869_p4)  }
  0x46   :  { %s2975_s29 = smov [#allocation4]  }
  0x47   :  { %83 = dma.vmem_to_smem %s81_s15, 32, %s2975_s29, [#allocation3] }
  0x48   :  { %2917 = dma.done.wait [#allocation3], 32 }
  0x49   :  { %2918 = vsyncadd [#allocation3], 4294967264 }
  0x4a   :  { %86 = sfence }
  0x4b   :  { %87 = vsyncpa [#allocation6], 0 }
  0x4c   :  { %89 = vsyncpa [#allocation6 + $0x1], 0  ;;  %s3185_s10 = smov 0   ;;  %s3187_s0 = smov 0  }
  0x4d   :  { %s3189_s17 = smov 0   ;;  %s3191_s7 = smov 0  }
  0x4e LB: > { %s3597_s14 = sld [smem:[#allocation16_spill]]  ;;  %s3206_s5 = sadd.s32 4294967295, %s2937_s7   ;;  %s2933_s17 = sphi %s3189_s17, %s3640_s17   ;;  %s2929_s0 = sphi %s3187_s0, %s3639_s0   ;;  %s2925_s10 = sphi %s3185_s10, %s3638_s10   ;;  %s2937_s7 = sphi %s3191_s7, %s3641_s7  }
  0x4f   : > { %s3598_s6 = sld [smem:[#allocation17_spill]]  ;;  %s2543_s11 = sadd.s32 4294967294, %s2937_s7  }
  0x50   : > { %s3599_s4 = sld [smem:[#allocation24_spill]]  ;;  %s3210_s15 = sadd.s32 1, %s2937_s7  }
  0x51   : > { %s831_s18 = sadd.s32 1, %s2933_s17  ;;  %s828_s22 = ssub.s32 %s2937_s7, %s3210_s15 }
  0x52   : > { %p841_p5 = scmp.ne.s32.totalorder %s2933_s17, %s2929_s0  ;;  %p829_p6 = scmp.eq.s32.totalorder %s828_s22, 0 }
  0x53   : > { %p842_p7 = scmp.eq.s32.totalorder %s3206_s5, 1  ;;  %p847_p8 = scmp.ne.s32.totalorder %s2929_s0, %s2925_s10 }
  0x54   : > { %p848_p9 = scmp.eq.s32.totalorder %s2543_s11, 1  ;;  %p2546_p12 = scmp.ge.s32.totalorder %s2937_s7, 1 }
  0x55   : > { %s3221_s26 = scalar_select %p829_p6, %s2933_s17, %s831_s18  }
  0x56   : > { %p3223_p10 = por %p842_p7, %p841_p5  ;;  %p3227_p11 = por %p848_p9, %p847_p8 }
  0x57   : > { %p1006_p13 = scmp.lt.s32.totalorder %s2937_s7, 3 }
  0x59   : > { %p1007_p0 = pnand %p2546_p12, %p1006_p13 }
  0x5a   : > { %s3602_s9 = sld [smem:[#allocation9_spill]] (!%p1007_p0)  ;;  %p1105_p1 = scmp.lt.s32.totalorder (!%p1007_p0), %s3206_s5, 1 }
  0x5b   : > { %1010 = sbr.rel (%p1007_p0) target bundleno = 3791 (0xecf), region = 156  ;;  %s3603_s13 = sld [smem:[#allocation10_spill]] (!%p1007_p0) }
  0x5c   : > { %s3604_s3 = sld [smem:[#allocation14_spill]] (!%p1007_p0) }
  0x5d   : > { %s3605_s8 = sld [smem:[#allocation15_spill]] (!%p1007_p0) }
  0x5e   : > { %s3606_s12 = sld [smem:[#allocation18_spill]] (!%p1007_p0) }
  0x60   : > { %s3235_s16 = scalar_select %p1105_p1, %s3206_s5, 1  ;;  %vm1127_vm0 = vcmask 261120   ;;  %v2976_v2 = vmov 32.0   ;;  %v2688_v14 = vld [vmem:[%s3055_s24 + $0x8] sm:$0xff]  ;;  %v2687_v15 = vld [vmem:[%s3055_s24] sm:$0xff]  ;;  %vm1287_vm5 = vcmask 1043456  }
  0x61   : > { %2819 = vrcp.f32 %v2976_v2  ;;  %1231 = vmatpush.bf16.msra.mxu1 %v2688_v14  ;;  %v2686_v17 = vld [vmem:[%s3597_s14 + $0x8] sm:$0xff]  ;;  %v2685_v18 = vld [vmem:[%s3597_s14] sm:$0xff]  ;;  %vm1247_vm6 = vcmask 64512   ;;  %vm1369_vm7 = vcmask 130112   ;;  %vm1433_vm8 = vcmask 195712  }
  0x62   : > { %s3543_s29 = sshll.u32 %s3235_s16, 3  ;;  %s3544_s18 = sshll.u32 %s3235_s16, 2  ;;  %1195 = vmatpush.bf16.msra.mxu0 %v2686_v17  ;;  %v2801_v28 = vld [vmem:[%s3604_s3] ss:$0 sm:$0xff]  ;;  %vm1497_vm9 = vcmask 261312  }
  0x63   : > { %s1108_s11 = scalar_lea.vmem %s3602_s9, %s3543_s29  ;;  %s1112_s22 = scalar_lea.vmem %s3603_s13, %s3544_s18  ;;  %v2802_v31 = vld [vmem:[%s3605_s8] ss:$0 sm:$0xff] }
  0x64   : > { %v3241_v0 = vld [vmem:[%s1108_s11] sm:$0xff]  ;;  %s2977_s11 = smov 64   ;;  %s3558_s29 = smov 96  }
  0x65   : > { %v1128_v1 = vsel %vm1127_vm0, %v3241_v0, 0.0  ;;  %1232 = vmatpush.bf16.msra.mxu1 %v2687_v15  ;;  %v1123_v16 = vld [vmem:[%s1112_s22] sm:$0xf]  ;;  %s3560_s22 = smov 120   ;;  %s3554_s18 = smov 88  }
  0x66   : > { %1129 = vadd.xlane.f32.xlu0 %v1128_v1  ;;  %1196 = vmatpush.bf16.msra.mxu0 %v2685_v18  ;;  %v2803_v37 = vld [vmem:[%s3060_s30] ss:$0 sm:$0xff]  ;;  %s3552_s3 = smov 104   ;;  %s3545_s8 = smov 80  }
  0x67   : > { %v2820_v3 = vpop.eup %2819  ;;  %v2804_v38 = vld [vmem:[%s3050_s19] ss:$0 sm:$0xff]  ;;  %s3547_s9 = smov 72   ;;  %s3556_s13 = smov 112  }
  0x68   : > { %v1132_v4 = vmul.f32 32.0, %v2820_v3  ;;  %vm1136_vm1 = vweird.f32 %v2820_v3  ;;  %2569 = vmatmul.msk.bf16.vlgmr.msra.gmra.mxu1 %vm1127_vm0, %v1123_v16  ;;  %v1241_v61 = vld [vmem:[%s3020_s21] sm:$0xff] }
  0x6a   : > { %v1133_v5 = vsub.f32 1.0, %v1132_v4 }
  0x6c   : > { %v1134_v6 = vmul.f32 %v2820_v3, %v1133_v5 }
  0x6e   : > { %v1135_v7 = vadd.f32 %v2820_v3, %v1134_v6 }
  0x70   : > { %v3245_v8 = vsel %vm1136_vm1, %v2820_v3, %v1135_v7  ;;  %vm1836_vm1 = vcmask 195584  }
  0xd9   : > { %v1130_v9 = vpop.xlane.xlu0 %1129 }
  0xda   : > { %v1138_v10 = vmul.f32 %v3245_v8, %v1130_v9 }
  0xdc   : > { %v1139_v11 = vsub.f32 %v3241_v0, %v1138_v10 }
  0xde   : > { %v1140_v12 = vmul.f32 %v1139_v11, %v1139_v11 }
  0xe0   : > { %v1141_v13 = vsel %vm1127_vm0, %v1140_v12, 0.0 }
  0xe1   : > { %1142 = vadd.xlane.f32.xlu0 %v1141_v13 }
  0xe5   : > { %v1234_v35 = vpop.f32.mrf.mxu1 }
  0xe6   : > { %v1235_v39 = vadd.f32 %v2803_v37, %v1234_v35 }
  0xed   : > { %v1236_v36 = vpop.f32.mrf.mxu1 }
 0x154   : > { %v1143_v19 = vpop.xlane.xlu0 %1142 }
 0x155   : > { %v1144_v20 = vmul.f32 %v1143_v19, %v3245_v8 }
 0x157   : > { %v1145_v21 = vadd.f32 1e-05, %v1144_v20 }
 0x159   : > { %2821 = vrsqrt.f32 %v1145_v21  ;;  %vm1152_vm3 = vweird.f32 %v1145_v21 }
 0x15f   : > { %v2822_v22 = vpop.eup %2821 }
 0x160   : > { %v1147_v23 = vmul.f32 %v2822_v22, %v1145_v21  ;;  %vm1153_vm2 = vweird.f32 %v2822_v22 }
 0x161   : > { %vm1154_vm4 = vmor %vm1152_vm3, %vm1153_vm2 }
 0x162   : > { %v1148_v24 = vmul.f32 %v2822_v22, %v1147_v23 }
 0x164   : > { %v1149_v25 = vmul.f32 0.5, %v1148_v24 }
 0x166   : > { %v1150_v26 = vsub.f32 1.5, %v1149_v25 }
 0x168   : > { %v1151_v27 = vmul.f32 %v2822_v22, %v1150_v26 }
 0x16a   : > { %v1155_v29 = vsel %vm1154_vm4, %v2822_v22, %v1151_v27 }
 0x16b   : > { %v1156_v30 = vmul.f32 %v1155_v29, %v1139_v11 }
 0x16d   : > { %v1160_v32 = vmul.f32 %v2801_v28, %v1156_v30 }
 0x16f   : > { %v1164_v33 = vadd.f32 %v2802_v31, %v1160_v32 }
 0x171   : > { %v1165_v34 = vpack.c.bf16 %v1164_v33, %v1164_v33 }
 0x173   : > { %2560 = vmatmul.msk.bf16.vlgmr.msra.gmra.mxu0 %vm1127_vm0, %v1165_v34 }
 0x1f0   : > { %v1198_v40 = vpop.f32.mrf.mxu0 }
 0x1f1   : > { %v1199_v41 = vadd.f32 %v2804_v38, %v1198_v40 }
 0x1f3   : > { %v1238_v42 = vadd.f32 %v1235_v39, %v1199_v41  ;;  %v1240_v43 = vpack.c.bf16 %v1199_v41, %v1199_v41 }
 0x1f5   : > { %v1239_v44 = vpack.c.bf16 %v1238_v42, %v1238_v42  ;;  %v1280_v45 = vunpack.c.l.b16 %v1240_v43 }
 0x1f7   : > { %v1243_v46 = vunpack.c.l.b16 %v1239_v44  ;;  %v3265_v47 = vpack.c.b16 %v1280_v45, %v1280_v45 }
 0x1f8   : > { %v1200_v48 = vpop.f32.mrf.mxu0 }
 0x1f9   : > { %v1244_v49 = vpack.c.b16 %v1243_v46, %v1243_v46  ;;  %1282 = vrot.lane.b32.xlu2 %v3265_v47, %s2977_s11  ;;  %s2985_s11 = smov 40  }
 0x1fb   : > { %1307 = vrot.lane.b32.xlu0 %v1244_v49, %s3560_s22  ;;  %1245 = vrot.lane.b32.xlu1 %v1244_v49, %s3558_s29  ;;  %s3612_s29 = sld [smem:[#allocation21_spill]] }
 0x1fc   : > { %s3613_s22 = sld [smem:[#allocation23_spill]] }
 0x201   : > { %1309 = vrot.lane.b32.xlu2 %v1244_v49, %s3554_s18  ;;  %s3611_s18 = sshll.u32 %s3235_s16, 2 }
 0x203   : > { %1435 = vrot.lane.b32.xlu0 %v1244_v49, %s3552_s3  ;;  %s3610_s3 = sld [smem:[#allocation12_spill]] }
 0x209   : > { %1373 = vrot.lane.b32.xlu2 %v1244_v49, %s3545_s8  ;;  %s2986_s8 = smov 56  }
 0x211   : > { %1437 = vrot.lane.b32.xlu2 %v1244_v49, %s3547_s9  ;;  %s3549_s9 = smov 24  }
 0x219   : > { %1371 = vrot.lane.b32.xlu2 %v1244_v49, %s3556_s13 }
 0x253   : > { %v1283_v50 = vpop.permute.xlu2 %1282 }
 0x254   : > { %v1289_v51 = vsel %vm1287_vm5, %v1283_v50, 0 }
 0x255   : > { %1298 = vmatpush.bf16.msra.mxu3 %v1289_v51 }
 0x25b   : > { %v1310_v52 = vpop.permute.xlu2 %1309 }
 0x25c   : > { %v1315_v53 = vsel %vm1247_vm6, %v1310_v52, 0 }
 0x25d   : > { %1324 = vmatpush.bf16.xpose.msrb.mxu3 %v1315_v53 }
 0x263   : > { %v1374_v54 = vpop.permute.xlu2 %1373 }
 0x264   : > { %v1379_v55 = vsel %vm1247_vm6, %v1374_v54, 0 }
 0x265   : > { %1388 = vmatpush.bf16.xpose.msrb.mxu1 %v1379_v55 }
 0x26b   : > { %v1438_v56 = vpop.permute.xlu2 %1437 }
 0x26c   : > { %v1443_v21 = vsel %vm1247_vm6, %v1438_v56, 0 }
 0x26d   : > { %v1246_v57 = vpop.permute.xlu1 %1245  ;;  %v1308_v9 = vpop.permute.xlu0 %1307 }
 0x26e   : > { %v1252_v58 = vsel %vm1247_vm6, %v1246_v57, 0 }
 0x26f   : > { %1261 = vmatpush.bf16.xpose.msra.mxu2 %v1252_v58 }
 0x273   : > { %v1372_v59 = vpop.permute.xlu2 %1371 }
 0x274   : > { %2574 = vmatmul.msk.bf16.vlgmr.msrb.gmra.mxu1 %vm1247_vm6, %v1372_v59 }
 0x275   : > { %v1436_v10 = vpop.permute.xlu0 %1435 }
 0x276   : > { %2570 = vmatmul.msk.bf16.vlgmr.msra.gmra.mxu2 %vm1247_vm6, %v1239_v44 }
 0x2f1   : > { %v1390_v60 = vpop.f32.mrf.mxu1 }
 0x2f2   : > { %v1394_v62 = vmul.f32 0.35355338, %v1390_v60 }
 0x2f4   : > { %v1395_v63 = vadd.f32 %v1394_v62, %v1241_v61 }
 0x2f6   : > { %v1396_v1 = vsel %vm1247_vm6, %v1395_v63, -inf }
 0x2f7   : > { %1397 = vmax.xlane.f32.xlu0 %v1396_v1 }
 0x2f9   : > { %v1263_v2 = vpop.f32.mrf.mxu2  ;;  %v1392_v3 = vpop.f32.mrf.mxu1 }
 0x2fa   : > { %v1267_v4 = vmul.f32 0.35355338, %v1263_v2 }
 0x2fc   : > { %v1268_v5 = vadd.f32 %v1267_v4, %v1241_v61 }
 0x2fe   : > { %v1269_v6 = vsel %vm1247_vm6, %v1268_v5, -inf }
 0x2ff   : > { %1270 = vmax.xlane.f32.xlu1 %v1269_v6 }
 0x301   : > { %v1265_v7 = vpop.f32.mrf.mxu2 }
 0x30b   : > { %1470 = vrot.lane.b32.xlu0 %v3265_v47, %s2985_s11  ;;  %s3551_s11 = smov 8  }
 0x318   : > { %1342 = vrot.lane.b32.xlu1 %v3265_v47, %s2986_s8  ;;  %s2987_s8 = smov 48  }
 0x36a   : > { %v1398_v11 = vpop.xlane.xlu0 %1397 }
 0x36b   : > { %v1399_v12 = vsub.f32 %v1395_v63, %v1398_v11  ;;  %v2689_v11 = vld [vmem:[%s3598_s6] sm:$0xff] }
 0x36d   : > { %v1400_v13 = vmul.f32 1.442695, %v1399_v12 }
 0x36f   : > { %2823 = vpow2.f32 %v1400_v13 }
 0x372   : > { %v1271_v14 = vpop.xlane.xlu1 %1270 }
 0x373   : > { %v1272_v15 = vsub.f32 %v1268_v5, %v1271_v14 }
 0x375   : > { %v2824_v16 = vpop.eup %2823  ;;  %v1273_v17 = vmul.f32 1.442695, %v1272_v15 }
 0x376   : > { %v1402_v18 = vsel %vm1247_vm6, %v2824_v16, 0.0  ;;  %v1405_v44 = vpack.c.bf16 %v2824_v16, %v2824_v16 }
 0x377   : > { %2825 = vpow2.f32 %v1273_v17  ;;  %1403 = vadd.xlane.f32.xlu0 %v1402_v18  ;;  %v2805_v17 = vld [vmem:[%s3606_s12] ss:$0 sm:$0xff] }
 0x37d   : > { %v2826_v19 = vpop.eup %2825  ;;  %v1471_v22 = vpop.permute.xlu0 %1470 }
 0x37e   : > { %v1278_v20 = vpack.c.bf16 %v2826_v19, %v2826_v19  ;;  %v1476_v25 = vsel %vm1287_vm5, %v1471_v22, 0  ;;  %v1275_v53 = vsel %vm1247_vm6, %v2826_v19, 0.0 }
 0x380   : > { %2571 = vmatmul.msk.bf16.vlgmr.msra.gmra.mxu3 %vm1247_vm6, %v1278_v20 }
 0x381   : > { %1452 = vmatpush.bf16.xpose.msra.mxu3 %v1443_v21 }
 0x38a   : > { %v1343_v23 = vpop.permute.xlu1 %1342 }
 0x38b   : > { %v1348_v24 = vsel %vm1287_vm5, %v1343_v23, 0  ;;  %v2698_v23 = vld [vmem:[%s3599_s4 + $0x8] sm:$0xff] }
 0x38c   : > { %1357 = vmatpush.bf16.msrb.mxu0 %v1348_v24  ;;  %v2695_v24 = vld [vmem:[%s3095_s20 + $0x8] sm:$0xff] }
 0x390   : > { %1485 = vmatpush.bf16.msra.mxu0 %v1476_v25  ;;  %2572 = vmatmul.msk.bf16.vlgmr.msrb.gmra.mxu3 %vm1247_vm6, %v1308_v9  ;;  %v2697_v25 = vld [vmem:[%s3599_s4] sm:$0xff] }
 0x391   : > { %1651 = vmatpush.bf16.msrb.mxu3 %v2695_v24 }
 0x3a0   : > { %2576 = vmatmul.msk.bf16.vlgmr.msra.gmra.mxu3 %vm1247_vm6, %v1436_v10  ;;  %v2690_v10 = vld [vmem:[%s3598_s6 + $0x8] sm:$0xff] }
 0x3a1   : > { %1526 = vmatpush.bf16.msra.mxu1 %v2690_v10 }
 0x3a5   : > { %1527 = vmatpush.bf16.msra.mxu1 %v2689_v11 }
 0x3ea   : > { %v1404_v55 = vpop.xlane.xlu0 %1403 }
 0x403   : > { %v3293_v26 = vpop.f32.mrf.mxu3 }
 0x40b   : > { %v1302_v27 = vpop.f32.mrf.mxu3 }
 0x413   : > { %v1326_v28 = vpop.f32.mrf.mxu3 }
 0x414   : > { %v1330_v29 = vmul.f32 0.35355338, %v1326_v28 }
 0x416   : > { %v1331_v30 = vadd.f32 %v1330_v29, %v1241_v61  ;;  %v2691_v29 = vld [vmem:[%s3610_s3] sm:$0xff] }
 0x418   : > { %v1332_v31 = vsel %vm1247_vm6, %v1331_v30, -inf }
 0x419   : > { %1333 = vmax.xlane.f32.xlu2 %v1332_v31 }
 0x41b   : > { %v1328_v32 = vpop.f32.mrf.mxu3 }
 0x41c   : > { %v1573_v32 = vld [vmem:[%s3610_s3 + $0x8] sm:$0xf]  ;;  %s3620_s3 = smov 112  }
 0x423   : > { %v1454_v33 = vpop.f32.mrf.mxu3 }
 0x424   : > { %v1458_v34 = vmul.f32 0.35355338, %v1454_v33 }
 0x426   : > { %v1459_v35 = vadd.f32 %v1458_v34, %v1241_v61  ;;  %v1624_v34 = vunpack.c.l.b16 %v1573_v32 }
 0x428   : > { %v1460_v36 = vsel %vm1247_vm6, %v1459_v35, -inf }
 0x429   : > { %1461 = vmax.xlane.f32.xlu1 %v1460_v36  ;;  %v1626_v36 = vpack.c.b16 %v1624_v34, %v1624_v34 }
 0x42b   : > { %v1456_v37 = vpop.f32.mrf.mxu3 }
 0x431   : > { %1406 = vrot.lane.b32.xlu2 %v3265_v47, %s2987_s8  ;;  %s3550_s8 = smov 16  }
 0x48c   : > { %v1334_v38 = vpop.xlane.xlu2 %1333 }
 0x48d   : > { %v1335_v39 = vsub.f32 %v1331_v30, %v1334_v38 }
 0x48f   : > { %v1336_v40 = vmul.f32 1.442695, %v1335_v39 }
 0x491   : > { %2827 = vpow2.f32 %v1336_v40 }
 0x494   : > { %v1407_v41 = vpop.permute.xlu2 %1406 }
 0x495   : > { %v1412_v42 = vsel %vm1287_vm5, %v1407_v41, 0 }
 0x496   : > { %1421 = vmatpush.bf16.msrb.mxu2 %v1412_v42  ;;  %v2693_v42 = vld [vmem:[%s3612_s29 + $0x8] sm:$0xff] }
 0x497   : > { %v2828_v43 = vpop.eup %2827 }
 0x498   : > { %v1338_v45 = vsel %vm1247_vm6, %v2828_v43, 0.0  ;;  %v1341_v46 = vpack.c.bf16 %v2828_v43, %v2828_v43  ;;  %v2692_v43 = vld [vmem:[%s3612_s29] sm:$0xff] }
 0x499   : > { %1339 = vadd.xlane.f32.xlu2 %v1338_v45  ;;  %2575 = vmatmul.msk.bf16.vlgmr.msrb.gmra.mxu2 %vm1247_vm6, %v1405_v44  ;;  %v2809_v45 = vld [vmem:[%s3613_s22] ss:$0 sm:$0xff]  ;;  %s3616_s22 = smov 120  }
 0x49a   : > { %2573 = vmatmul.msk.bf16.vlgmr.msrb.gmra.mxu0 %vm1247_vm6, %v1341_v46  ;;  %1604 = vmatpush.bf16.msra.mxu2 %v2693_v42 }
 0x49b   : > { %1709 = vmatpush.bf16.msrb.mxu0 %v2698_v23 }
 0x49c   : > { %v1462_v48 = vpop.xlane.xlu1 %1461 }
 0x49d   : > { %v1463_v47 = vsub.f32 %v1459_v35, %v1462_v48 }
 0x49e   : > { %1605 = vmatpush.bf16.msra.mxu2 %v2692_v43 }
 0x49f   : > { %v1464_v49 = vmul.f32 1.442695, %v1463_v47  ;;  %1710 = vmatpush.bf16.msrb.mxu0 %v2697_v25 }
 0x4a1   : > { %2829 = vpow2.f32 %v1464_v49 }
 0x4a7   : > { %v2830_v50 = vpop.eup %2829 }
 0x4a8   : > { %v1469_v51 = vpack.c.bf16 %v2830_v50, %v2830_v50  ;;  %v1466_v52 = vsel %vm1247_vm6, %v2830_v50, 0.0 }
 0x4a9   : > { %1467 = vadd.xlane.f32.xlu1 %v1466_v52 }
 0x4aa   : > { %2577 = vmatmul.msk.bf16.vlgmr.msra.gmra.mxu0 %vm1247_vm6, %v1469_v51 }
 0x4b1   : > { %1276 = vadd.xlane.f32.xlu1 %v1275_v53 }
 0x50c   : > { %v1340_v54 = vpop.xlane.xlu2 %1339 }
 0x50d   : > { %2831 = vrcp.f32 %v1340_v54 }
 0x50e   : > { %2833 = vrcp.f32 %v1404_v55 }
 0x513   : > { %v2832_v56 = vpop.eup %2831 }
 0x514   : > { %v2834_v59 = vpop.eup %2833 }
 0x517   : > { %v1359_v57 = vpop.f32.mrf.mxu0 }
 0x518   : > { %v1364_v58 = vmul.f32 %v2832_v56, %v1359_v57 }
 0x51a   : > { %1366 = vrot.lane.b32.xlu1 %v1364_v58, %s3551_s11  ;;  %s3609_s11 = sld [smem:[#allocation13_spill]] }
 0x51c   : > { %v1468_v60 = vpop.xlane.xlu1 %1467  ;;  %v1423_v61 = vpop.f32.mrf.mxu2 }
 0x51d   : > { %v1428_v62 = vmul.f32 %v2834_v59, %v1423_v61  ;;  %2835 = vrcp.f32 %v1468_v60 }
 0x51f   : > { %v1361_v63 = vpop.f32.mrf.mxu0  ;;  %1430 = vrot.lane.b32.xlu2 %v1428_v62, %s3550_s8  ;;  %s3608_s8 = sld [smem:[#allocation11_spill]] }
 0x520   : > { %v1668_v31 = vld [vmem:[%s3609_s11 + $0x8] sm:$0xf] }
 0x521   : > { %v1682_v33 = vunpack.c.l.b16 %v1668_v31 }
 0x523   : > { %v2836_v3 = vpop.eup %2835  ;;  %v1684_v35 = vpack.c.b16 %v1682_v33, %v1682_v33 }
 0x524   : > { %v1277_v1 = vpop.xlane.xlu1 %1276  ;;  %v1425_v2 = vpop.f32.mrf.mxu2 }
 0x525   : > { %2837 = vrcp.f32 %v1277_v1  ;;  %s1116_s13 = scalar_lea.vmem %s3608_s8, %s3611_s18  ;;  %s3614_s18 = sld [smem:[#allocation27_spill]] }
 0x526   : > { %v1124_v30 = vld [vmem:[%s1116_s13] sm:$0xf]  ;;  %s3615_s13 = sld [smem:[#allocation25_spill]] }
 0x527   : > { %v1487_v4 = vpop.f32.mrf.mxu0  ;;  %s3617_s8 = sld [smem:[#allocation19_spill]] }
 0x528   : > { %v1492_v5 = vmul.f32 %v2836_v3, %v1487_v4 }
 0x52a   : > { %1494 = vrot.lane.b32.xlu0 %v1492_v5, %s3549_s9  ;;  %s3607_s9 = sld [smem:[#allocation26_spill]] }
 0x52b   : > { %v2838_v6 = vpop.eup %2837  ;;  %v2810_v48 = vld [vmem:[%s3614_s18] ss:$0 sm:$0xff]  ;;  %s3618_s18 = smov 96  }
 0x52c   : > { %v1305_v7 = vmul.f32 %v2838_v6, %v3293_v26  ;;  %v2694_v26 = vld [vmem:[%s3095_s20] sm:$0xff] }
 0x52d   : > { %1652 = vmatpush.bf16.msrb.mxu3 %v2694_v26  ;;  %v2808_v2 = vld [vmem:[%s3615_s13] ss:$0 sm:$0xff]  ;;  %s3619_s13 = sld [smem:[#allocation20_spill]] }
 0x52e   : > { %1306 = vst.msk [vmem:[#allocation2] sm:$0xff] %vm1247_vm6, %v1305_v7  ;;  %v2806_v24 = vld [vmem:[%s3617_s8] ss:$0 sm:$0xff]  ;;  %s3621_s8 = sld [smem:[#allocation22_spill]] }
 0x52f   : > { %v1489_v9 = vpop.f32.mrf.mxu0 }
 0x530   : > { %v2700_v27 = vld [vmem:[%s3607_s9 + $0x8] sm:$0xff]  ;;  %v2699_v28 = vld [vmem:[%s3607_s9] sm:$0xff]  ;;  %2608 = vmatmul.msk.bf16.vlgmr.msrb.gmra.mxu3 %vm1127_vm0, %v2691_v29 }
 0x531   : > { %1750 = vmatpush.bf16.msrb.mxu1 %v2700_v27 }
 0x534   : > { %v2811_v43 = vld [vmem:[%s3621_s8] ss:$0 sm:$0xff] }
 0x535   : > { %1751 = vmatpush.bf16.msrb.mxu1 %v2699_v28 }
 0x540   : > { %2609 = vmatmul.msk.bf16.gmra.mxu3 %vm1127_vm0, %v1626_v36 }
 0x579   : > { %v1431_v13 = vpop.permute.xlu2 %1430 }
 0x58c   : > { %v1367_v12 = vpop.permute.xlu1 %1366 }
 0x58d   : > { %1370 = vst.msk [vmem:[#allocation2] sm:$0xff] %vm1369_vm7, %v1367_v12 }
 0x58e   : > { %1434 = vst.msk [vmem:[#allocation2] sm:$0xff] %vm1433_vm8, %v1431_v13 }
 0x59c   : > { %v1495_v14 = vpop.permute.xlu0 %1494 }
 0x59d   : > { %1498 = vst.msk [vmem:[#allocation2] sm:$0xff] %vm1497_vm9, %v1495_v14 }
 0x5a4   : > { %v1499_v15 = vld [vmem:[#allocation2] sm:$0xff] }
 0x5a5   : > { %v1500_v16 = vpack.c.bf16 %v1499_v15, %v1499_v15 }
 0x5a7   : > { %2586 = vmatmul.msk.bf16.vlgmr.msra.gmra.mxu1 %vm1127_vm0, %v1500_v16 }
 0x5b3   : > { %v1654_v46 = vpop.f32.mrf.mxu3 }
 0x5b4   : > { %v1655_v52 = vadd.f32 %v2809_v45, %v1654_v46 }
 0x5b6   : > { %v1663_v55 = vpack.c.bf16 %v1655_v52, %v1655_v52 }
 0x5b7   : > { %2632 = vmatmul.msk.bf16.vlgmr.msrb.gmra.mxu1 %vm1127_vm0, %v1124_v30  ;;  %v2807_v30 = vld [vmem:[%s3619_s13] ss:$0 sm:$0xff]  ;;  %s3622_s13 = smov 88  }
 0x5b8   : > { %v1807_v62 = vunpack.c.l.b16 %v1663_v55 }
 0x5bb   : > { %v1656_v58 = vpop.f32.mrf.mxu3 }
 0x5bc   : > { %v1657_v59 = vadd.f32 %v2809_v45, %v1656_v58 }
 0x5be   : > { %v1664_v63 = vpack.c.bf16 %v1657_v59, %v1657_v59 }
 0x5c0   : > { %v1808_v4 = vunpack.c.l.b16 %v1664_v63 }
 0x5c2   : > { %v3356_v9 = vpack.c.b16 %v1808_v4, %v1807_v62 }
 0x5c3   : > { %v1659_v11 = vpop.f32.mrf.mxu3 }
 0x5c4   : > { %v1660_v14 = vadd.f32 %v2809_v45, %v1659_v11 }
 0x5cb   : > { %v1661_v32 = vpop.f32.mrf.mxu3 }
 0x624   : > { %v1529_v18 = vpop.f32.mrf.mxu1 }
 0x625   : > { %v1533_v19 = vadd.f32 %v1529_v18, %v3241_v0  ;;  %v2696_v0 = vld [vmem:[%s3609_s11] sm:$0xff] }
 0x626   : > { %2622 = vmatmul.msk.bf16.vlgmr.msrb.gmra.mxu0 %vm1127_vm0, %v2696_v0 }
 0x627   : > { %v3318_v20 = vadd.f32 %v2805_v17, %v1533_v19  ;;  %v1665_v19 = vpack.c.bf16 %v1660_v14, %v1660_v14 }
 0x629   : > { %v1541_v21 = vsel %vm1127_vm0, %v3318_v20, 0.0  ;;  %v1809_v23 = vunpack.c.l.b16 %v1665_v19 }
 0x62a   : > { %1542 = vadd.xlane.f32.xlu1 %v1541_v21 }
 0x62b   : > { %v3363_v0 = vpack.c.b16 %v1809_v23, %v1809_v23 }
 0x62c   : > { %v1531_v22 = vpop.f32.mrf.mxu1 }
 0x62d   : > { %v1819_v34 = vsel %vm1247_vm6, %v3363_v0, 0 }
 0x62e   : > { %1827 = vmatpush.bf16.xpose.msra.mxu1 %v1819_v34 }
 0x634   : > { %v1753_v49 = vpop.f32.mrf.mxu1 }
 0x635   : > { %v1754_v51 = vadd.f32 %v2810_v48, %v1753_v49 }
 0x636   : > { %2623 = vmatmul.msk.bf16.gmra.mxu0 %vm1127_vm0, %v1684_v35 }
 0x637   : > { %v3348_v54 = vpack.c.bf16 %v1754_v51, %v1754_v51 }
 0x639   : > { %v1875_v56 = vunpack.c.l.b16 %v3348_v54 }
 0x63b   : > { %v3351_v60 = vpack.c.b16 %v1875_v56, %v1875_v56 }
 0x63c   : > { %v1755_v61 = vpop.f32.mrf.mxu1 }
 0x643   : > { %1877 = vrot.lane.b32.xlu1 %v3351_v60, %s3616_s22 }
 0x69d   : > { %v1543_v37 = vpop.xlane.xlu1 %1542 }
 0x69e   : > { %v1544_v38 = vmul.f32 %v1543_v37, %v3245_v8 }
 0x6a0   : > { %v1545_v39 = vsub.f32 %v3318_v20, %v1544_v38 }
 0x6a2   : > { %v1546_v40 = vmul.f32 %v1545_v39, %v1545_v39 }
 0x6a3   : > { %v1712_v44 = vpop.f32.mrf.mxu0 }
 0x6a4   : > { %v1547_v41 = vsel %vm1127_vm0, %v1546_v40, 0.0  ;;  %v1713_v5 = vadd.f32 %v2808_v2, %v1712_v44  ;;  %v1816_v40 = vsel %vm1247_vm6, %v3356_v9, 0 }
 0x6a5   : > { %1548 = vadd.xlane.f32.xlu0 %v1547_v41  ;;  %1828 = vmatpush.bf16.xpose.msra.mxu1 %v1816_v40 }
 0x6a6   : > { %v1771_v15 = vpack.c.bf16 %v1713_v5, %v1713_v5 }
 0x6a8   : > { %v1777_v25 = vunpack.c.l.b16 %v1771_v15  ;;  %v2991_v15 = vmov -1e+30  }
 0x6ab   : > { %v1714_v57 = vpop.f32.mrf.mxu0 }
 0x6ac   : > { %v1715_v6 = vadd.f32 %v2808_v2, %v1714_v57 }
 0x6ae   : > { %v1772_v16 = vpack.c.bf16 %v1715_v6, %v1715_v6 }
 0x6b0   : > { %v1778_v27 = vunpack.c.l.b16 %v1772_v16 }
 0x6b2   : > { %v1780_v36 = vpack.c.b16 %v1778_v27, %v1777_v25 }
 0x6b3   : > { %v1717_v10 = vpop.f32.mrf.mxu0 }
 0x6b4   : > { %v1718_v13 = vadd.f32 %v2808_v2, %v1717_v10 }
 0x6b5   : > { %v1878_v56 = vpop.permute.xlu1 %1877 }
 0x6b6   : > { %v1773_v18 = vpack.c.bf16 %v1718_v13, %v1718_v13 }
 0x6b8   : > { %v1779_v22 = vunpack.c.l.b16 %v1773_v18 }
 0x6b9   : > { %1847 = vrot.lane.b32.xlu0 %v3356_v9, %s3618_s18 }
 0x6ba   : > { %v3361_v28 = vpack.c.b16 %v1779_v22, %v1779_v22 }
 0x6bb   : > { %v1719_v31 = vpop.f32.mrf.mxu0 }
 0x6bc   : > { %1881 = vrot.lane.b32.xlu2 %v3361_v28, %s3616_s22  ;;  %v1789_v33 = vsel %vm1247_vm6, %v3361_v28, 0 }
 0x6bd   : > { %1797 = vmatpush.bf16.xpose.msrb.mxu2 %v1789_v33 }
 0x6c1   : > { %1979 = vrot.lane.b32.xlu0 %v3351_v60, %s3620_s3 }
 0x6c4   : > { %1912 = vrot.lane.b32.xlu2 %v3363_v0, %s3616_s22 }
 0x6c9   : > { %1948 = vrot.lane.b32.xlu0 %v3356_v9, %s3622_s13 }
 0x6cc   : > { %1879 = vrot.lane.b32.xlu2 %v1780_v36, %s3616_s22 }
 0x6d4   : > { %1910 = vrot.lane.b32.xlu2 %v3356_v9, %s3616_s22 }
 0x716   : > { %v1882_v41 = vpop.permute.xlu2 %1881 }
 0x717   : > { %v1890_v42 = vsel %vm1247_vm6, %v1882_v41, 0 }
 0x718   : > { %v1549_v47 = vpop.xlane.xlu0 %1548  ;;  %1898 = vmatpush.bf16.xpose.msra.mxu3 %v1890_v42 }
 0x719   : > { %v1550_v50 = vmul.f32 %v1549_v47, %v3245_v8 }
 0x71b   : > { %v1551_v53 = vadd.f32 1e-05, %v1550_v50 }
 0x71d   : > { %2839 = vrsqrt.f32 %v1551_v53  ;;  %vm1558_vm11 = vweird.f32 %v1551_v53 }
 0x71e   : > { %v1913_v46 = vpop.permute.xlu2 %1912 }
 0x71f   : > { %v1921_v48 = vsel %vm1247_vm6, %v1913_v46, 0 }
 0x720   : > { %1929 = vmatpush.bf16.xpose.msra.mxu0 %v1921_v48 }
 0x723   : > { %v2840_v1 = vpop.eup %2839 }
 0x724   : > { %v1553_v3 = vmul.f32 %v2840_v1, %v1551_v53  ;;  %vm1559_vm10 = vweird.f32 %v2840_v1 }
 0x725   : > { %vm1560_vm12 = vmor %vm1558_vm11, %vm1559_vm10 }
 0x726   : > { %v1554_v7 = vmul.f32 %v2840_v1, %v1553_v3  ;;  %v1880_v52 = vpop.permute.xlu2 %1879  ;;  %v1761_v3 = vlaneseq }
 0x727   : > { %v1887_v53 = vsel %vm1247_vm6, %v1880_v52, 0 }
 0x728   : > { %v1555_v12 = vmul.f32 0.5, %v1554_v7  ;;  %1899 = vmatpush.bf16.xpose.msra.mxu3 %v1887_v53  ;;  %v1762_v4 = vand.u32 127, %v1761_v3 }
 0x72a   : > { %v1556_v17 = vsub.f32 1.5, %v1555_v12 }
 0x72b   : > { %v1848_v63 = vpop.permute.xlu0 %1847 }
 0x72c   : > { %v1557_v21 = vmul.f32 %v2840_v1, %v1556_v17 }
 0x72e   : > { %v1561_v26 = vsel %vm1560_vm12, %v2840_v1, %v1557_v21 }
 0x72f   : > { %v1562_v29 = vmul.f32 %v1561_v26, %v1545_v39  ;;  %v1786_v39 = vsel %vm1247_vm6, %v1780_v36, 0  ;;  %2637 = vmatmul.msk.bf16.vlgmr.msra.gmra.mxu3 %vm1247_vm6, %v1878_v56 }
 0x730   : > { %1798 = vmatpush.bf16.xpose.msrb.mxu2 %v1786_v39 }
 0x731   : > { %v1566_v35 = vmul.f32 %v2806_v24, %v1562_v29 }
 0x733   : > { %v1570_v37 = vadd.f32 %v2807_v30, %v1566_v35  ;;  %v1980_v10 = vpop.permute.xlu0 %1979 }
 0x735   : > { %v1574_v38 = vpack.c.bf16 %v1570_v37, %v1570_v37 }
 0x737   : > { %2595 = vmatmul.msk.bf16.vlgmr.msra.gmra.mxu2 %vm1127_vm0, %v1574_v38 }
 0x73b   : > { %v1949_v19 = vpop.permute.xlu0 %1948 }
 0x747   : > { %2634 = vmatmul.msk.bf16.vlgmr.msrb.gmra.mxu2 %vm1247_vm6, %v3348_v54  ;;  %v1911_v54 = vpop.permute.xlu2 %1910 }
 0x748   : > { %v1918_v55 = vsel %vm1247_vm6, %v1911_v54, 0 }
 0x749   : > { %1930 = vmatpush.bf16.xpose.msra.mxu0 %v1918_v55 }
 0x7b2   : > { %v1901_v26 = vpop.f32.mrf.mxu3 }
 0x7ba   : > { %v1607_v44 = vpop.f32.mrf.mxu2  ;;  %v1903_v27 = vpop.f32.mrf.mxu3 }
 0x7bb   : > { %v1608_v45 = vadd.f32 %v2811_v43, %v1607_v44 }
 0x7bd   : > { %v1769_v47 = vpack.c.bf16 %v1608_v45, %v1608_v45 }
 0x7bf   : > { %v1906_v49 = vunpack.c.l.b16 %v1769_v47  ;;  %2635 = vmatmul.msk.bf16.vlgmr.msra.gmra.mxu1 %vm1247_vm6, %v1769_v47 }
 0x7c1   : > { %v3391_v50 = vpack.c.b16 %v1906_v49, %v1906_v49 }
 0x7c2   : > { %v1609_v51 = vpop.f32.mrf.mxu2 }
 0x7c3   : > { %1908 = vrot.lane.b32.xlu2 %v3391_v50, %s3616_s22  ;;  %s3623_s22 = smov 104  }
 0x7ca   : > { %v1800_v57 = vpop.f32.mrf.mxu2 }
 0x7cb   : > { %1849 = vrot.lane.b32.xlu2 %v3363_v0, %s3618_s18  ;;  %s2633_s18 = sshll.u32 %s3206_s5, 7 }
 0x7cc   : > { %s1759_s8 = sadd.s32 1, %s2633_s18 }
 0x7cd   : > { %s1760_s4 = sld [smem:[#allocation4 + %s1759_s8]]  ;;  %s3628_s8 = smov 16  }
 0x7d2   : > { %v1802_v58 = vpop.f32.mrf.mxu2 }
 0x7d3   : > { %1983 = vrot.lane.b32.xlu2 %v3361_v28, %s3620_s3  ;;  %v1765_v6 = vstv %s1760_s4  ;;  %s3625_s4 = smov 80  }
 0x7d4   : > { %vm1766_vm14 = vcmp.lt.s32.totalorder %v1762_v4, %v1765_v6 }
 0x7db   : > { %1981 = vrot.lane.b32.xlu2 %v1780_v36, %s3620_s3 }
 0x7e3   : > { %1950 = vrot.lane.b32.xlu2 %v3363_v0, %s3622_s13  ;;  %s1758_s13 = sld [smem:[#allocation4 + %s2633_s18]] }
 0x7e4   : > { %s3627_s18 = sld [smem:[#allocation28_spill]] }
 0x7e9   : > { %v1763_v5 = vstv %s1758_s13  ;;  %s3629_s13 = sld [smem:[#allocation29_spill]] }
 0x7ea   : > { %vm1764_vm13 = vcmp.ge.s32.totalorder %v1762_v4, %v1763_v5 }
 0x7eb   : > { %2110 = vrot.lane.b32.xlu2 %v3363_v0, %s3623_s22  ;;  %vm1767_vm15 = vmand %vm1764_vm13, %vm1766_vm14 }
 0x7ec   : > { %v3420_v16 = vsel %vm1767_vm15, 0.0, %v2991_v15 }
 0x7f3   : > { %2011 = vrot.lane.b32.xlu2 %v3363_v0, %s3620_s3 }
 0x7fb   : > { %2108 = vrot.lane.b32.xlu2 %v3356_v9, %s3623_s22 }
 0x803   : > { %2080 = vrot.lane.b32.xlu2 %v1780_v36, %s3623_s22 }
 0x80b   : > { %2078 = vrot.lane.b32.xlu2 %v3351_v60, %s3623_s22 }
 0x81d   : > { %v1909_v59 = vpop.permute.xlu2 %1908 }
 0x81e   : > { %2638 = vmatmul.msk.bf16.vlgmr.msra.gmra.mxu0 %vm1247_vm6, %v1909_v59 }
 0x825   : > { %v1850_v61 = vpop.permute.xlu2 %1849 }
 0x826   : > { %v1856_v62 = vsel %vm1287_vm5, %v1850_v61, 0 }
 0x827   : > { %1864 = vmatpush.bf16.msra.mxu2 %v1856_v62 }
 0x82b   : > { %1865 = vmatpush.bf16.msra.mxu2 %v1848_v63 }
 0x82d   : > { %v1984_v1 = vpop.permute.xlu2 %1983 }
 0x82e   : > { %v1992_v2 = vsel %vm1247_vm6, %v1984_v1, 0 }
 0x82f   : > { %2000 = vmatpush.bf16.xpose.msrb.mxu2 %v1992_v2 }
 0x835   : > { %v1982_v60 = vpop.permute.xlu2 %1981 }
 0x836   : > { %v1989_v7 = vsel %vm1247_vm6, %v1982_v60, 0 }
 0x837   : > { %2001 = vmatpush.bf16.xpose.msrb.mxu2 %v1989_v7 }
 0x83c   : > { %v1830_v11 = vpop.f32.mrf.mxu1 }
 0x83d   : > { %v1831_v12 = vadd.f32 %v1830_v11, %v1800_v57  ;;  %v1951_v13 = vpop.permute.xlu2 %1950 }
 0x83e   : > { %v1957_v14 = vsel %vm1287_vm5, %v1951_v13, 0 }
 0x83f   : > { %v1834_v17 = vmul.f32 0.25, %v1831_v12  ;;  %1965 = vmatpush.bf16.msrb.mxu1 %v1957_v14 }
 0x841   : > { %v1835_v18 = vadd.f32 %v1834_v17, %v3420_v16 }
 0x843   : > { %1966 = vmatpush.bf16.msrb.mxu1 %v1949_v19  ;;  %v1837_v21 = vsel %vm1836_vm1, %v1835_v18, -inf }
 0x844   : > { %v1832_v22 = vpop.f32.mrf.mxu1  ;;  %1838 = vmax.xlane.f32.xlu0 %v1837_v21 }
 0x845   : > { %v2111_v23 = vpop.permute.xlu2 %2110 }
 0x846   : > { %v2119_v39 = vsel %vm1247_vm6, %v2111_v23, 0 }
 0x84d   : > { %v2012_v24 = vpop.permute.xlu2 %2011 }
 0x84e   : > { %v2020_v25 = vsel %vm1247_vm6, %v2012_v24, 0 }
 0x84f   : > { %2028 = vmatpush.bf16.xpose.msrb.mxu3 %v2020_v25 }
 0x855   : > { %v2109_v40 = vpop.permute.xlu2 %2108 }
 0x856   : > { %v2116_v43 = vsel %vm1247_vm6, %v2109_v40, 0 }
 0x858   : > { %2082 = vrot.lane.b32.xlu0 %v3361_v28, %s3623_s22 }
 0x85d   : > { %v2081_v44 = vpop.permute.xlu2 %2080 }
 0x85e   : > { %v2088_v48 = vsel %vm1247_vm6, %v2081_v44, 0 }
 0x860   : > { %2009 = vrot.lane.b32.xlu0 %v3356_v9, %s3620_s3 }
 0x865   : > { %v2079_v54 = vpop.permute.xlu2 %2078 }
 0x868   : > { %2007 = vrot.lane.b32.xlu0 %v3391_v50, %s3620_s3  ;;  %s3624_s3 = smov 72  }
 0x89b   : > { %v1932_v29 = vpop.f32.mrf.mxu0 }
 0x89c   : > { %v1933_v30 = vadd.f32 %v1932_v29, %v1901_v26 }
 0x89e   : > { %v1936_v31 = vmul.f32 0.25, %v1933_v30 }
 0x8a0   : > { %v1937_v32 = vadd.f32 %v1936_v31, %v3420_v16 }
 0x8a2   : > { %v1938_v33 = vsel %vm1836_vm1, %v1937_v32, -inf }
 0x8a3   : > { %v1934_v34 = vpop.f32.mrf.mxu0  ;;  %1939 = vmax.xlane.f32.xlu1 %v1938_v33 }
 0x8b7   : > { %v1839_v35 = vpop.xlane.xlu0 %1838 }
 0x8b8   : > { %v1840_v36 = vsub.f32 %v1835_v18, %v1839_v35 }
 0x8ba   : > { %v1841_v28 = vmul.f32 1.442695, %v1840_v36 }
 0x8bc   : > { %2841 = vpow2.f32 %v1841_v28  ;;  %2106 = vrot.lane.b32.xlu1 %v3391_v50, %s3623_s22  ;;  %s3626_s22 = smov 8  }
 0x8c2   : > { %v3435_v37 = vpop.eup %2841 }
 0x8c3   : > { %v1846_v38 = vpack.c.bf16 %v3435_v37, %v3435_v37  ;;  %v1843_v22 = vsel %vm1836_vm1, %v3435_v37, 0.0 }
 0x8c4   : > { %2148 = vrot.lane.b32.xlu1 %v3363_v0, %s3624_s3 }
 0x8c5   : > { %2636 = vmatmul.msk.bf16.vlgmr.msra.gmra.mxu2 %vm1836_vm1, %v1846_v38 }
 0x8c6   : > { %2127 = vmatpush.bf16.xpose.msra.mxu2 %v2119_v39 }
 0x8ca   : > { %v2083_v41 = vpop.permute.xlu0 %2082 }
 0x8cb   : > { %v2091_v42 = vsel %vm1247_vm6, %v2083_v41, 0 }
 0x8cc   : > { %2049 = vrot.lane.b32.xlu1 %v3363_v0, %s3625_s4  ;;  %2099 = vmatpush.bf16.xpose.msra.mxu1 %v2091_v42 }
 0x8ce   : > { %2128 = vmatpush.bf16.xpose.msra.mxu2 %v2116_v43 }
 0x8d2   : > { %v2010_v45 = vpop.permute.xlu0 %2009 }
 0x8d3   : > { %v2017_v46 = vsel %vm1247_vm6, %v2010_v45, 0 }
 0x8d4   : > { %2146 = vrot.lane.b32.xlu1 %v3356_v9, %s3624_s3  ;;  %2029 = vmatpush.bf16.xpose.msrb.mxu3 %v2017_v46  ;;  %s3630_s3 = smov 24  }
 0x8d5   : > { %2100 = vmatpush.bf16.xpose.msra.mxu1 %v2088_v48  ;;  %2640 = vmatmul.msk.bf16.vlgmr.msrb.gmra.mxu2 %vm1247_vm6, %v1980_v10  ;;  %v2702_v48 = vld [vmem:[%s3627_s18 + $0x8] sm:$0xff] }
 0x8da   : > { %v2008_v47 = vpop.permute.xlu0 %2007 }
 0x8db   : > { %2641 = vmatmul.msk.bf16.vlgmr.msrb.gmra.mxu3 %vm1247_vm6, %v2008_v47 }
 0x8dc   : > { %2047 = vrot.lane.b32.xlu1 %v3356_v9, %s3625_s4  ;;  %s3631_s4 = sld [smem:[#allocation32_spill]] }
 0x916   : > { %v1940_v0 = vpop.xlane.xlu1 %1939 }
 0x917   : > { %v1941_v49 = vsub.f32 %v1937_v32, %v1940_v0 }
 0x919   : > { %v1942_v50 = vmul.f32 1.442695, %v1941_v49 }
 0x91b   : > { %2843 = vpow2.f32 %v1942_v50 }
 0x921   : > { %v2844_v51 = vpop.eup %2843 }
 0x922   : > { %v1947_v52 = vpack.c.bf16 %v2844_v51, %v2844_v51  ;;  %v1944_v21 = vsel %vm1836_vm1, %v2844_v51, 0.0 }
 0x924   : > { %2639 = vmatmul.msk.bf16.vlgmr.msrb.gmra.mxu1 %vm1836_vm1, %v1947_v52  ;;  %v2701_v52 = vld [vmem:[%s3627_s18] sm:$0xff]  ;;  %s2893_s18 = scalar_lea.hbm %s3176_s27, 16 }
 0x92e   : > { %v2107_v53 = vpop.permute.xlu1 %2106 }
 0x92f   : > { %2644 = vmatmul.msk.bf16.vlgmr.msra.gmra.mxu2 %vm1247_vm6, %v2107_v53 }
 0x934   : > { %2643 = vmatmul.msk.bf16.vlgmr.msra.gmra.mxu1 %vm1247_vm6, %v2079_v54 }
 0x936   : > { %v2149_v55 = vpop.permute.xlu1 %2148 }
 0x937   : > { %v2155_v56 = vsel %vm1287_vm5, %v2149_v55, 0 }
 0x938   : > { %2163 = vmatpush.bf16.msra.mxu3 %v2155_v56  ;;  %v2812_v56 = vld [vmem:[%s3629_s13] ss:$0 sm:$0xff]  ;;  %s3634_s13 = sld [smem:[#allocation31_spill]] }
 0x93e   : > { %v2050_v57 = vpop.permute.xlu1 %2049 }
 0x93f   : > { %v2056_v9 = vsel %vm1287_vm5, %v2050_v57, 0  ;;  %vm2320_vm5 = vcmask 523264  }
 0x940   : > { %2064 = vmatpush.bf16.msrb.mxu0 %v2056_v9 }
 0x946   : > { %v2147_v58 = vpop.permute.xlu1 %2146 }
 0x947   : > { %2164 = vmatpush.bf16.msra.mxu3 %v2147_v58 }
 0x948   : > { %v1867_v59 = vpop.f32.mrf.mxu2 }
 0x94e   : > { %v2048_v61 = vpop.permute.xlu1 %2047 }
 0x94f   : > { %2065 = vmatpush.bf16.msrb.mxu0 %v2048_v61 }
 0x950   : > { %v1869_v62 = vpop.f32.mrf.mxu2 }
 0x953   : > { %2204 = vmatpush.bf16.msra.mxu0 %v2702_v48 }
 0x957   : > { %2205 = vmatpush.bf16.msra.mxu0 %v2701_v52 }
 0x958   : > { %v2003_v63 = vpop.f32.mrf.mxu2 }
 0x95e   : > { %v2031_v1 = vpop.f32.mrf.mxu3 }
 0x95f   : > { %v2032_v2 = vadd.f32 %v2031_v1, %v2003_v63 }
 0x960   : > { %v2005_v3 = vpop.f32.mrf.mxu2 }
 0x961   : > { %v2035_v4 = vmul.f32 0.25, %v2032_v2 }
 0x963   : > { %v2036_v60 = vadd.f32 %v2035_v4, %v3420_v16  ;;  %v2704_v4 = vld [vmem:[%s3631_s4 + $0x8] sm:$0xff] }
 0x964   : > { %2279 = vmatpush.bf16.msrb.mxu1 %v2704_v4 }
 0x965   : > { %v2037_v5 = vsel %vm1836_vm1, %v2036_v60, -inf }
 0x966   : > { %v2033_v6 = vpop.f32.mrf.mxu3  ;;  %2038 = vmax.xlane.f32.xlu2 %v2037_v5 }
 0x9a1   : > { %v1968_v7 = vpop.f32.mrf.mxu1 }
 0x9a9   : > { %v1970_v10 = vpop.f32.mrf.mxu1 }
 0x9b1   : > { %v2102_v11 = vpop.f32.mrf.mxu1 }
 0x9b2   : > { %v2130_v12 = vpop.f32.mrf.mxu2 }
 0x9b3   : > { %v2131_v13 = vadd.f32 %v2130_v12, %v2102_v11 }
 0x9b5   : > { %v2134_v14 = vmul.f32 0.25, %v2131_v13 }
 0x9b7   : > { %v2135_v15 = vadd.f32 %v2134_v14, %v3420_v16 }
 0x9b9   : > { %v2104_v17 = vpop.f32.mrf.mxu1  ;;  %v2136_v18 = vsel %vm1836_vm1, %v2135_v15, -inf }
 0x9ba   : > { %v2132_v19 = vpop.f32.mrf.mxu2  ;;  %2137 = vmax.xlane.f32.xlu0 %v2136_v18 }
 0x9c2   : > { %1945 = vadd.xlane.f32.xlu0 %v1944_v21 }
 0x9ca   : > { %1844 = vadd.xlane.f32.xlu0 %v1843_v22 }
 0x9d9   : > { %v2039_v23 = vpop.xlane.xlu2 %2038 }
 0x9da   : > { %v2040_v24 = vsub.f32 %v2036_v60, %v2039_v23  ;;  %v2703_v60 = vld [vmem:[%s3631_s4] sm:$0xff]  ;;  %s3636_s4 = sld [smem:[#allocation35_spill]] }
 0x9db   : > { %2280 = vmatpush.bf16.msrb.mxu1 %v2703_v60  ;;  %v2814_v23 = vld [vmem:[%s3634_s13] ss:$0 sm:$0xff] }
 0x9dc   : > { %v2041_v25 = vmul.f32 1.442695, %v2040_v24 }
 0x9de   : > { %2845 = vpow2.f32 %v2041_v25 }
 0x9e4   : > { %v2846_v26 = vpop.eup %2845 }
 0x9e5   : > { %v2046_v27 = vpack.c.bf16 %v2846_v26, %v2846_v26  ;;  %v2043_v16 = vsel %vm1836_vm1, %v2846_v26, 0.0 }
 0x9e6   : > { %2044 = vadd.xlane.f32.xlu2 %v2043_v16 }
 0x9e7   : > { %2642 = vmatmul.msk.bf16.vlgmr.msrb.gmra.mxu0 %vm1836_vm1, %v2046_v27 }
 0xa2d   : > { %v2138_v29 = vpop.xlane.xlu0 %2137 }
 0xa2e   : > { %v2139_v30 = vsub.f32 %v2135_v15, %v2138_v29 }
 0xa30   : > { %v2140_v31 = vmul.f32 1.442695, %v2139_v30 }
 0xa32   : > { %2847 = vpow2.f32 %v2140_v31 }
 0xa35   : > { %v1946_v32 = vpop.xlane.xlu0 %1945 }
 0xa36   : > { %2849 = vrcp.f32 %v1946_v32 }
 0xa38   : > { %v2848_v33 = vpop.eup %2847 }
 0xa39   : > { %v2145_v34 = vpack.c.bf16 %v2848_v33, %v2848_v33  ;;  %v2142_v35 = vsel %vm1836_vm1, %v2848_v33, 0.0 }
 0xa3a   : > { %2143 = vadd.xlane.f32.xlu1 %v2142_v35 }
 0xa3b   : > { %2645 = vmatmul.msk.bf16.vlgmr.msra.gmra.mxu3 %vm1836_vm1, %v2145_v34  ;;  %v2816_v34 = vld [vmem:[%s3636_s4] ss:$0 sm:$0xff]  ;;  %s2682_s4 = sshll.u32 %s3206_s5, 3 }
 0xa3c   : > { %v2850_v36 = vpop.eup %2849 }
 0xa3d   : > { %v1845_v28 = vpop.xlane.xlu0 %1844  ;;  %v1973_v37 = vmul.f32 %v2850_v36, %v1968_v7 }
 0xa3e   : > { %2851 = vrcp.f32 %v1845_v28 }
 0xa3f   : > { %1975 = vrot.lane.b32.xlu2 %v1973_v37, %s3626_s22  ;;  %s3632_s22 = sld [smem:[#allocation34_spill]] }
 0xa44   : > { %v2852_v38 = vpop.eup %2851 }
 0xa45   : > { %v1872_v39 = vmul.f32 %v2852_v38, %v1867_v59  ;;  %v2707_v7 = vld [vmem:[%s3632_s22 + $0x10] sm:$0xff]  ;;  %v2706_v11 = vld [vmem:[%s3632_s22 + $0x8] sm:$0xff]  ;;  %v2705_v27 = vld [vmem:[%s3632_s22] sm:$0xff] }
 0xa47   : > { %1873 = vst.msk [vmem:[#allocation2] sm:$0xff] %vm1247_vm6, %v1872_v39 }
 0xa59   : > { %v2045_v40 = vpop.xlane.xlu2 %2044 }
 0xa5a   : > { %2853 = vrcp.f32 %v2045_v40 }
 0xa60   : > { %v2854_v41 = vpop.eup %2853 }
 0xa64   : > { %v2067_v42 = vpop.f32.mrf.mxu0 }
 0xa65   : > { %v2072_v43 = vmul.f32 %v2854_v41, %v2067_v42 }
 0xa67   : > { %2074 = vrot.lane.b32.xlu0 %v2072_v43, %s3628_s8  ;;  %s3633_s8 = sld [smem:[#allocation30_spill]] }
 0xa6c   : > { %v2069_v44 = vpop.f32.mrf.mxu0 }
 0xa6d   : > { %v2813_v19 = vld [vmem:[%s3633_s8] ss:$0 sm:$0xff]  ;;  %s1096_s8 = sand.u32 1, %s2929_s0  }
 0xa6e   : > { %s2547_s13 = sshll.u32 %s1096_s8, 3 }
 0xa6f   : > { %s1098_s6 = scalar_lea.vmem [#allocation5], %s2547_s13  ;;  %s2378_s13 = scalar_lea.sflag [#allocation6], %s1096_s8 }
 0xa70   : > { %s2394_s9 = sshll.u32 %s1098_s6, 4  ;;  %s2395_s9 = int_to_ptr.vmem [resolvable:$true] %s2394_s9 }
 0xa99   : > { %v1976_v45 = vpop.permute.xlu2 %1975 }
 0xa9a   : > { %1978 = vst.msk [vmem:[#allocation2] sm:$0xff] %vm1369_vm7, %v1976_v45 }
 0xaad   : > { %v2144_v46 = vpop.xlane.xlu1 %2143 }
 0xaae   : > { %2855 = vrcp.f32 %v2144_v46 }
 0xab4   : > { %v2856_v47 = vpop.eup %2855 }
 0xabe   : > { %v2166_v0 = vpop.f32.mrf.mxu3 }
 0xabf   : > { %v2171_v49 = vmul.f32 %v2856_v47, %v2166_v0 }
 0xac1   : > { %2173 = vrot.lane.b32.xlu2 %v2171_v49, %s3630_s3  ;;  %s3635_s3 = sld [smem:[#allocation33_spill]] }
 0xac6   : > { %v2168_v50 = vpop.f32.mrf.mxu3 }
 0xac7   : > { %v2815_v16 = vld [vmem:[%s3635_s3] ss:$0 sm:$0xff]  ;;  %s2392_s3 = scalar_lea.hbm %s3176_s27, %s2682_s4 }
 0xac8   : > { %s2396_s11 = sshll.u32 %s2392_s3, 4  ;;  %s2397_s11 = int_to_ptr.hbm [resolvable:$true] %s2396_s11 }
 0xac9   : > { %s2887_s12 = sshra.s32 %s2397_s11, 4  ;;  %s2888_s12 = int_to_ptr.hbm [resolvable:$true] %s2887_s12 }
 0xaca   : > { %s2889_s14 = scalar_lea.hbm %s2888_s12, 8  ;;  %p2894_p5 = scmp.lt.s32.totalorder %s2888_s12, %s3176_s27 }
 0xacb   : > { %p2890_p2 = scmp.ne.s32.totalorder %s2888_s12, %s2889_s14  ;;  %p2895_p6 = scmp.lt.s32.totalorder %s2893_s18, %s2889_s14 }
 0xacd   : > { %p2891_p3 = pnand %p2890_p2, %p3223_p10  ;;  %p2896_p7 = por %p2895_p6, %p2894_p5 }
 0xacf   : > { %p2892_p4 = pneg %p2891_p3 }
 0xad1   : > { %p2897_p8 = pnand %p2896_p7, %p2892_p4 }
 0xad9   : > { %v2075_v51 = vpop.permute.xlu0 %2074 }
 0xada   : > { %2077 = vst.msk [vmem:[#allocation2] sm:$0xff] %vm1433_vm8, %v2075_v51 }
 0xb1b   : > { %v2174_v53 = vpop.permute.xlu2 %2173 }
 0xb1c   : > { %2176 = vst.msk [vmem:[#allocation2] sm:$0xff] %vm1497_vm9, %v2174_v53 }
 0xb23   : > { %v2177_v54 = vld [vmem:[#allocation2] sm:$0xff] }
 0xb24   : > { %v2178_v55 = vpack.c.bf16 %v2177_v54, %v2177_v54 }
 0xb26   : > { %2654 = vmatmul.msk.bf16.vlgmr.msra.gmra.mxu0 %vm1127_vm0, %v2178_v55 }
 0xba3   : > { %v2207_v57 = vpop.f32.mrf.mxu0 }
 0xba4   : > { %v2211_v9 = vadd.f32 %v2207_v57, %v3318_v20  ;;  %v2708_v20 = vld [vmem:[%s3632_s22 + $0x18] sm:$0xff] }
 0xba5   : > { %2328 = vmatpush.bf16.msrb.mxu2 %v2708_v20 }
 0xba6   : > { %v2216_v58 = vadd.f32 %v2812_v56, %v2211_v9 }
 0xba8   : > { %v2219_v59 = vsel %vm1127_vm0, %v2216_v58, 0.0 }
 0xba9   : > { %2220 = vadd.xlane.f32.xlu0 %v2219_v59  ;;  %2329 = vmatpush.bf16.msrb.mxu2 %v2707_v7 }
 0xbab   : > { %v2209_v61 = vpop.f32.mrf.mxu0 }
 0xbad   : > { %2330 = vmatpush.bf16.msrb.mxu2 %v2706_v11 }
 0xbb1   : > { %2331 = vmatpush.bf16.msrb.mxu2 %v2705_v27 }
 0xc1c   : > { %v2221_v62 = vpop.xlane.xlu0 %2220 }
 0xc1d   : > { %v2222_v63 = vmul.f32 %v2221_v62, %v3245_v8 }
 0xc1f   : > { %v2223_v1 = vsub.f32 %v2216_v58, %v2222_v63 }
 0xc21   : > { %v2224_v2 = vmul.f32 %v2223_v1, %v2223_v1 }
 0xc23   : > { %v2225_v3 = vsel %vm1127_vm0, %v2224_v2, 0.0 }
 0xc24   : > { %2226 = vadd.xlane.f32.xlu2 %v2225_v3 }
 0xc97   : > { %v2227_v5 = vpop.xlane.xlu2 %2226 }
 0xc98   : > { %v2228_v6 = vmul.f32 %v2227_v5, %v3245_v8 }
 0xc9a   : > { %v2229_v10 = vadd.f32 1e-05, %v2228_v6 }
 0xc9c   : > { %2857 = vrsqrt.f32 %v2229_v10  ;;  %vm2236_vm3 = vweird.f32 %v2229_v10 }
 0xca2   : > { %v2858_v12 = vpop.eup %2857 }
 0xca3   : > { %v2231_v13 = vmul.f32 %v2858_v12, %v2229_v10  ;;  %vm2237_vm2 = vweird.f32 %v2858_v12 }
 0xca4   : > { %vm2238_vm4 = vmor %vm2236_vm3, %vm2237_vm2 }
 0xca5   : > { %v2232_v14 = vmul.f32 %v2858_v12, %v2231_v13 }
 0xca7   : > { %v2233_v15 = vmul.f32 0.5, %v2232_v14 }
 0xca9   : > { %v2234_v17 = vsub.f32 1.5, %v2233_v15 }
 0xcab   : > { %v2235_v18 = vmul.f32 %v2858_v12, %v2234_v17 }
 0xcad   : > { %v2239_v21 = vsel %vm2238_vm4, %v2858_v12, %v2235_v18 }
 0xcae   : > { %v2240_v22 = vmul.f32 %v2239_v21, %v2223_v1 }
 0xcb0   : > { %v2244_v24 = vmul.f32 %v2813_v19, %v2240_v22 }
 0xcb2   : > { %v2248_v25 = vadd.f32 %v2814_v23, %v2244_v24 }
 0xcb4   : > { %v2249_v26 = vpack.c.bf16 %v2248_v25, %v2248_v25 }
 0xcb6   : > { %2663 = vmatmul.msk.bf16.vlgmr.msrb.gmra.mxu1 %vm1127_vm0, %v2249_v26 }
 0xd33   : > { %v2282_v29 = vpop.f32.mrf.mxu1 }
 0xd34   : > { %v2283_v30 = vadd.f32 %v2815_v16, %v2282_v29 }
 0xd36   : > { %v2286_v31 = vmax.f32 %v2283_v30, 0.0 }
 0xd38   : > { %v2287_v32 = vpack.c.bf16 %v2286_v31, %v2286_v31 }
 0xd3a   : > { %2680 = vmatmul.msk.bf16.vlgmr.msrb.gmra.mxu2 %vm2320_vm5, %v2287_v32 }
 0xd3b   : > { %v2284_v33 = vpop.f32.mrf.mxu1 }
 0xdbd   : > { %v2333_v35 = vpop.f32.mrf.mxu2 }
 0xdbe   : > { %v2337_v36 = vadd.f32 %v2333_v35, %v2216_v58 }
 0xdc0   : > { %v2342_v28 = vadd.f32 %v2816_v34, %v2337_v36 }
 0xdc2   : > { %v2346_v37 = vsel %vm1127_vm0, %v2342_v28, 0.0  ;;  %2343 = vst.msk [vmem:[%s1098_s6] sm:$0xff] %vm1127_vm0, %v2342_v28 }
 0xdc3   : > { %2347 = vadd.xlane.f32.xlu1 %v2346_v37 }
 0xdc5   : > { %v2335_v38 = vpop.f32.mrf.mxu2 }
 0xe36   : > { %v2348_v39 = vpop.xlane.xlu1 %2347 }
 0xe37   : > { %v2349_v40 = vmul.f32 %v2348_v39, %v3245_v8 }
 0xe39   : > { %v2350_v41 = vsub.f32 %v2342_v28, %v2349_v40 }
 0xe3b   : > { %v2351_v42 = vmul.f32 %v2350_v41, %v2350_v41 }
 0xe3d   : > { %v2352_v43 = vsel %vm1127_vm0, %v2351_v42, 0.0 }
 0xe3e   : > { %2353 = vadd.xlane.f32.xlu1 %v2352_v43 }
 0xe3f   : > { %2900 = shalt.err (!%p2897_p8)
}
 0xe40   : > { %2709 = dma.vmem_to_hbm [thread:$0]  (%p3223_p10), %s2395_s9, 128, %s2397_s11, %s2378_s13   ;;  %v2817_v52 = vld [vmem:[%s3165_s25] ss:$0 sm:$0xff] }
 0xe41   : > { %v2818_v54 = vld [vmem:[%s3170_s23] ss:$0 sm:$0xff]  ;;  %s3637_s9 = sshll.u32 %s3235_s16, 3 }
 0xe42   : > { %s1120_s14 = scalar_lea.vmem %s3181_s1, %s3637_s9 }
 0xeb1   : > { %v2354_v44 = vpop.xlane.xlu1 %2353 }
 0xeb2   : > { %v2355_v45 = vmul.f32 %v2354_v44, %v3245_v8 }
 0xeb4   : > { %v2356_v46 = vadd.f32 1e-05, %v2355_v45 }
 0xeb6   : > { %2859 = vrsqrt.f32 %v2356_v46  ;;  %vm2363_vm7 = vweird.f32 %v2356_v46 }
 0xebc   : > { %v2860_v48 = vpop.eup %2859 }
 0xebd   : > { %v2358_v47 = vmul.f32 %v2860_v48, %v2356_v46  ;;  %vm2364_vm6 = vweird.f32 %v2860_v48 }
 0xebe   : > { %vm2365_vm8 = vmor %vm2363_vm7, %vm2364_vm6 }
 0xebf   : > { %v2359_v0 = vmul.f32 %v2860_v48, %v2358_v47 }
 0xec1   : > { %v2360_v49 = vmul.f32 0.5, %v2359_v0 }
 0xec3   : > { %v2361_v50 = vsub.f32 1.5, %v2360_v49 }
 0xec5   : > { %v2362_v51 = vmul.f32 %v2860_v48, %v2361_v50 }
 0xec7   : > { %v2366_v53 = vsel %vm2365_vm8, %v2860_v48, %v2362_v51 }
 0xec8   : > { %v2367_v55 = vmul.f32 %v2366_v53, %v2350_v41 }
 0xeca   : > { %v2371_v56 = vmul.f32 %v2817_v52, %v2367_v55 }
 0xecc   : > { %v2375_v8 = vadd.f32 %v2818_v54, %v2371_v56 }
 0xece   : > { %2376 = vst.msk [vmem:[%s1120_s14] sm:$0xff] %vm1127_vm0, %v2375_v8 }
 0xecf PF: > { %p2715_p9 = scmp.ge.s32.totalorder %s2937_s7, 2  ;;  %s2411_s6 = sand.u32 1, %s2925_s10  }
 0xed0   : > { %s2412_s12 = scalar_lea.sflag [#allocation6], %s2411_s6 }
 0xed1   : > { %p2712_p10 = pnand %p2715_p9, %p3227_p11 }
 0xed3   : > { %p2713_p12 = pneg %p2712_p10 }
 0xed5   : > { %2920 = dma.done.wait (%p2713_p12), %s2412_s12, 128  }
 0xed6   : > { %2922 = vsyncadd (%p2713_p12), %s2412_s12, 4294967168  ;;  %p92_p13 = scmp.ge.s32.totalorder %s3210_s15, 4   ;;  %s3638_s10 = smov %s2929_s0 }
 0xed7   : > { %s3639_s0 = smov %s2933_s17  ;;  %s3640_s17 = smov %s3221_s26 }
 0xed8   : > { %s3641_s7 = smov %s3210_s15  ;;  %94 = sbr.rel (!%p92_p13) target bundleno = 78 (0x4e), region = 245 }
 0xedd   :  { %2425 = vsyncpa [#allocation6], 1 }
 0xede   :  { %2427 = vsyncpa [#allocation6 + $0x1], 1 }

</bundles_post_ra>
